<compile_context>
chip_gen: v7x
topology: tpu7x:2x2x1
jax: 0.10.0
libtpu: 0.0.40
codegen_flags: <defaults>
</compile_context>

<pallas_src>
import functools

import jax
import jax.numpy as jnp
from jax.experimental import pallas as pl
from jax.experimental.pallas import tpu as pltpu

_BN_EPS = 1e-5


# --------------------------------------------------------------------------
# helpers
# --------------------------------------------------------------------------
def _round_up(x, m):
    return ((x + m - 1) // m) * m


def _pad_to(a, axis, size):
    if a.shape[axis] == size:
        return a
    pads = [(0, 0)] * a.ndim
    pads[axis] = (0, size - a.shape[axis])
    return jnp.pad(a, pads)


def _pick_tile(m, cap=2048):
    """Largest divisor of m (multiple of 8, <= cap); falls back to m."""
    for t in (2048, 1024, 512, 256, 128, 64, 32, 16, 8):
        if t <= cap and m % t == 0:
            return t
    return m


# --------------------------------------------------------------------------
# Pallas kernels
# --------------------------------------------------------------------------
def _fused_dual_conv_kernel(xp_ref, wc_ref, bc_ref, wd_ref, bd_ref, wp_ref, bp_ref,
                            yc_ref, ym_ref, st_ref, *, Ho, Wo):
    """One image per grid step.

    xp_ref : (Ho+2, Wo+2, Cp)  f32   reflect+channel padded input
    wc_ref : (9, Cp, Cop)      bf16  full 3x3 conv weights (tap-major)
    bc_ref : (1, Cop)          f32
    wd_ref : (9, Cp)           f32   depthwise 3x3 weights (tap-major)
    bd_ref : (1, Cp)           f32
    wp_ref : (Cp, Cop)         bf16  pointwise 1x1 weights
    bp_ref : (1, Cop)          f32
    yc_ref : (Ho*Wo, Cop)      f32   conv branch output (pre-BN)
    ym_ref : (Ho*Wo, Cop)      f32   mask branch output (pre-sigmoid)
    st_ref : (2, Cop)          f32   per-image per-channel [sum, sum_sq] of yc
    """
    Cp = xp_ref.shape[-1]
    Cop = yc_ref.shape[-1]
    x = xp_ref[...]                                      # (Ho+2, Wo+2, Cp) f32

    acc = jnp.zeros((Ho * Wo, Cop), jnp.float32)         # conv accumulator (f32)
    dw = jnp.zeros((Ho * Wo, Cp), jnp.float32)           # depthwise accumulator (f32)
    for k in range(9):                                   # unrolled 3x3 taps
        ki, kj = k // 3, k % 3
        patch = x[ki:ki + Ho, kj:kj + Wo, :].reshape(Ho * Wo, Cp)
        # 3x3 conv tap -> MXU matmul, bf16 operands, f32 accumulation.
        acc = acc + jnp.dot(patch.astype(jnp.bfloat16), wc_ref[k],
                            preferred_element_type=jnp.float32)
        # depthwise tap (per-channel scale) stays in f32 on the VPU.
        dw = dw + patch * wd_ref[k:k + 1, :]

    yc = acc + bc_ref[...]                               # (Ho*Wo, Cop)
    dw = dw + bd_ref[...]                                # (Ho*Wo, Cp)
    ym = jnp.dot(dw.astype(jnp.bfloat16), wp_ref[...],
                 preferred_element_type=jnp.float32) + bp_ref[...]

    yc_ref[...] = yc
    ym_ref[...] = ym
    # Partial BatchNorm statistics (per image); reduced across images in glue.
    st_ref[0:1, :] = jnp.sum(yc, axis=0, keepdims=True)
    st_ref[1:2, :] = jnp.sum(yc * yc, axis=0, keepdims=True)


def _bn_relu_gate_kernel(yc_ref, ym_ref, sc_ref, sh_ref, o_ref):
    """out = relu(yc * scale + shift) * sigmoid(ym)  — lane-dense elementwise tile."""
    xn = yc_ref[...] * sc_ref[...] + sh_ref[...]
    xn = jnp.maximum(xn, 0.0)
    o_ref[...] = xn * jax.nn.sigmoid(ym_ref[...])


# --------------------------------------------------------------------------
# forward
# --------------------------------------------------------------------------
def gated_conv2d_with_act(x_nchw, params, *, padding=1):
    """GatedConv2dWithAct forward. x: (N, Cin, H, W) f32 -> (N, Cout, Ho, Wo) f32."""
    N, Cin, H, W = x_nchw.shape
    Cout = params["bc"].shape[0]
    Cp = _round_up(Cin, 128)                      # lane-dense padded channel counts
    Cop = _round_up(Cout, 128)

    # ---- layout / padding glue (NCHW -> NHWC, reflect pad, zero-pad channels) ----
    x = jnp.transpose(x_nchw, (0, 2, 3, 1)).astype(jnp.float32)
    if padding > 0:
        x = jnp.pad(x, ((0, 0), (padding, padding), (padding, padding), (0, 0)),
                    mode="reflect")
    x = _pad_to(x, 3, Cp)
    Hp, Wp = H + 2 * padding, W + 2 * padding
    Ho, Wo = Hp - 2, Wp - 2                       # 3x3, stride 1, dilation 1
    Mi = Ho * Wo                                  # pixels per image

    # ---- pack weights: channel-pad, tap-major, bf16 for matmul operands ----
    wc = _pad_to(_pad_to(params["wc"], 2, Cp), 3, Cop)
    wc = wc.reshape(9, Cp, Cop).astype(jnp.bfloat16)
    bc = _pad_to(params["bc"], 0, Cop).reshape(1, Cop)
    wd = _pad_to(params["wd"], 2, Cp).reshape(9, Cp)               # f32 (VPU)
    bd = _pad_to(params["bd"], 0, Cp).reshape(1, Cp)
    wp = _pad_to(_pad_to(params["wp"], 0, Cp), 1, Cop).astype(jnp.bfloat16)
    bp = _pad_to(params["bp"], 0, Cop).reshape(1, Cop)

    cparams = pltpu.CompilerParams(dimension_semantics=("parallel",),
                                   vmem_limit_bytes=32 * 1024 * 1024)

    # ---- pass 1: fused dual conv + partial BN stats, gridded over the batch ----
    yc, ym, st = pl.pallas_call(
        functools.partial(_fused_dual_conv_kernel, Ho=Ho, Wo=Wo),
        grid=(N,),
        in_specs=[
            pl.BlockSpec((None, Hp, Wp, Cp), lambda n: (n, 0, 0, 0)),
            pl.BlockSpec((9, Cp, Cop), lambda n: (0, 0, 0)),
            pl.BlockSpec((1, Cop), lambda n: (0, 0)),
            pl.BlockSpec((9, Cp), lambda n: (0, 0)),
            pl.BlockSpec((1, Cp), lambda n: (0, 0)),
            pl.BlockSpec((Cp, Cop), lambda n: (0, 0)),
            pl.BlockSpec((1, Cop), lambda n: (0, 0)),
        ],
        out_specs=[
            pl.BlockSpec((None, Mi, Cop), lambda n: (n, 0, 0)),
            pl.BlockSpec((None, Mi, Cop), lambda n: (n, 0, 0)),
            pl.BlockSpec((None, 2, Cop), lambda n: (n, 0, 0)),
        ],
        out_shape=[
            jax.ShapeDtypeStruct((N, Mi, Cop), jnp.float32),
            jax.ShapeDtypeStruct((N, Mi, Cop), jnp.float32),
            jax.ShapeDtypeStruct((N, 2, Cop), jnp.float32),
        ],
        compiler_params=cparams,
    )(x, wc, bc, wd, bd, wp, bp)

    # ---- BatchNorm (training mode) statistics: tiny per-channel reduce in glue ----
    count = jnp.float32(N * Ho * Wo)
    mean = jnp.sum(st[:, 0, :], axis=0) / count
    var = jnp.maximum(jnp.sum(st[:, 1, :], axis=0) / count - mean * mean, 0.0)
    gamma = _pad_to(params["gamma"], 0, Cop)
    beta = _pad_to(params["beta"], 0, Cop)
    scale = gamma * jax.lax.rsqrt(var + _BN_EPS)
    shift = beta - mean * scale

    # ---- pass 2: BN + ReLU + sigmoid gate, tiled over M = N*Ho*Wo ----
    M = N * Mi
    TM = _pick_tile(M)
    out_flat = pl.pallas_call(
        _bn_relu_gate_kernel,
        grid=(M // TM,),
        in_specs=[
            pl.BlockSpec((TM, Cop), lambda i: (i, 0)),
            pl.BlockSpec((TM, Cop), lambda i: (i, 0)),
            pl.BlockSpec((1, Cop), lambda i: (0, 0)),
            pl.BlockSpec((1, Cop), lambda i: (0, 0)),
        ],
        out_specs=pl.BlockSpec((TM, Cop), lambda i: (i, 0)),
        out_shape=jax.ShapeDtypeStruct((M, Cop), jnp.float32),
        compiler_params=cparams,
    )(yc.reshape(M, Cop), ym.reshape(M, Cop),
      scale.reshape(1, Cop), shift.reshape(1, Cop))

    out = out_flat.reshape(N, Ho, Wo, Cop)[..., :Cout]
    return jnp.transpose(out, (0, 3, 1, 2))       # back to NCHW


# --------------------------------------------------------------------------
# deterministic parameter init (kaiming-normal weights, zero biases, BN at init)
# --------------------------------------------------------------------------
def _kaiming(key, shape, fan_in):
    return jax.random.normal(key, shape, jnp.float32) * jnp.sqrt(2.0 / fan_in)


def init_params(key, cin, cout):
    k1, k2, k3 = jax.random.split(key, 3)
    return {
        "wc": _kaiming(k1, (3, 3, cin, cout), 9 * cin),   # full 3x3 conv (HWIO)
        "bc": jnp.zeros((cout,), jnp.float32),
        "wd": _kaiming(k2, (3, 3, cin), 9),               # depthwise 3x3
        "bd": jnp.zeros((cin,), jnp.float32),
        "wp": _kaiming(k3, (cin, cout), cin),             # pointwise 1x1
        "bp": jnp.zeros((cout,), jnp.float32),
        "gamma": jnp.ones((cout,), jnp.float32),          # BatchNorm2d affine @ init
        "beta": jnp.zeros((cout,), jnp.float32),
    }


# --------------------------------------------------------------------------
# plain-JAX reference (f32) for a sanity check
# --------------------------------------------------------------------------
def _reference(x_nchw, p, *, padding):
    cin = x_nchw.shape[1]
    dn = ("NCHW", "OIHW", "NCHW")
    xp = x_nchw
    if padding > 0:
        xp = jnp.pad(xp, ((0, 0), (0, 0), (padding, padding), (padding, padding)),
                     mode="reflect")
    wc = jnp.transpose(p["wc"], (3, 2, 0, 1))
    yc = jax.lax.conv_general_dilated(xp, wc, (1, 1), "VALID", dimension_numbers=dn)
    yc = yc + p["bc"][None, :, None, None]
    wd = jnp.transpose(p["wd"], (2, 0, 1))[:, None]
    dw = jax.lax.conv_general_dilated(xp, wd, (1, 1), "VALID", dimension_numbers=dn,
                                      feature_group_count=cin)
    dw = dw + p["bd"][None, :, None, None]
    wp = jnp.transpose(p["wp"], (1, 0))[:, :, None, None]
    ym = jax.lax.conv_general_dilated(dw, wp, (1, 1), "VALID", dimension_numbers=dn)
    ym = ym + p["bp"][None, :, None, None]
    mean = jnp.mean(yc, axis=(0, 2, 3), keepdims=True)
    var = jnp.var(yc, axis=(0, 2, 3), keepdims=True)
    xn = (yc - mean) * jax.lax.rsqrt(var + _BN_EPS)
    xn = xn * p["gamma"][None, :, None, None] + p["beta"][None, :, None, None]
    return jnp.maximum(xn, 0.0) * jax.nn.sigmoid(ym)


if __name__ == "__main__":
    N, Cin, H, W = 2, 4, 16, 16
    Cout = 8
    padding = 1

    key = jax.random.PRNGKey(0)
    kx, kp = jax.random.split(key)
    x = jax.random.normal(kx, (N, Cin, H, W), jnp.float32)
    params = init_params(kp, Cin, Cout)

    fwd = jax.jit(functools.partial(gated_conv2d_with_act, padding=padding))
    out = fwd(x, params)
    jax.block_until_ready(out)

    assert out.shape == (N, Cout, H, W) and out.dtype == jnp.float32
    ref = _reference(x, params, padding=padding)
    err = float(jnp.max(jnp.abs(out - ref)))
    assert err < 1e-1, f"max abs err vs reference = {err}"
    print("KERNEL_OK")
</pallas_src>

<mosaic_0001>
module attributes {stable_mosaic.version = 11 : i64} {
  func.func @_fused_dual_conv_kernel(%arg0: i32, %arg1: memref<1x18x18x128xf32, #tpu.memory_space<vmem>>, %arg2: memref<9x128x128xbf16, #tpu.memory_space<vmem>>, %arg3: memref<1x128xf32, #tpu.memory_space<vmem>>, %arg4: memref<9x128xf32, #tpu.memory_space<vmem>>, %arg5: memref<1x128xf32, #tpu.memory_space<vmem>>, %arg6: memref<128x128xbf16, #tpu.memory_space<vmem>>, %arg7: memref<1x128xf32, #tpu.memory_space<vmem>>, %arg8: memref<1x256x128xf32, #tpu.memory_space<vmem>>, %arg9: memref<1x256x128xf32, #tpu.memory_space<vmem>>, %arg10: memref<1x2x128xf32, #tpu.memory_space<vmem>>) attributes {dimension_semantics = [#tpu.dimension_semantics<parallel>], iteration_bounds = array<i64: 2>, scalar_prefetch = 0 : i64, scratch_operands = 0 : i64, tpu.core_type = #tpu.core_type<tc>, window_params = [{transform_indices = @transform_0, window_bounds = array<i64: 1, 18, 18, 128>}, {pipeline_mode = #tpu.pipeline_mode<synchronous>, transform_indices = @transform_1, window_bounds = array<i64: 9, 128, 128>}, {pipeline_mode = #tpu.pipeline_mode<synchronous>, transform_indices = @transform_2, window_bounds = array<i64: 1, 128>}, {pipeline_mode = #tpu.pipeline_mode<synchronous>, transform_indices = @transform_3, window_bounds = array<i64: 9, 128>}, {pipeline_mode = #tpu.pipeline_mode<synchronous>, transform_indices = @transform_4, window_bounds = array<i64: 1, 128>}, {pipeline_mode = #tpu.pipeline_mode<synchronous>, transform_indices = @transform_5, window_bounds = array<i64: 128, 128>}, {pipeline_mode = #tpu.pipeline_mode<synchronous>, transform_indices = @transform_6, window_bounds = array<i64: 1, 128>}, {transform_indices = @transform_7, window_bounds = array<i64: 1, 256, 128>}, {transform_indices = @transform_8, window_bounds = array<i64: 1, 256, 128>}, {transform_indices = @transform_9, window_bounds = array<i64: 1, 2, 128>}]} {
    %c0 = arith.constant 0 : index
    %c0_0 = arith.constant 0 : index
    %c0_1 = arith.constant 0 : index
    %c0_2 = arith.constant 0 : index
    %0 = vector.load %arg1[%c0, %c0_0, %c0_1, %c0_2] : memref<1x18x18x128xf32, #tpu.memory_space<vmem>>, vector<1x18x18x128xf32>
    %1 = vector.shape_cast %0 : vector<1x18x18x128xf32> to vector<18x18x128xf32>
    %cst = arith.constant 0.000000e+00 : f32
    %2 = vector.broadcast %cst : f32 to vector<256x128xf32>
    %cst_3 = arith.constant 0.000000e+00 : f32
    %3 = vector.broadcast %cst_3 : f32 to vector<256x128xf32>
    %4 = vector.extract_strided_slice %1 {offsets = [0, 0, 0], sizes = [16, 16, 128], strides = [1, 1, 1]} : vector<18x18x128xf32> to vector<16x16x128xf32>
    %5 = vector.shape_cast %4 : vector<16x16x128xf32> to vector<256x128xf32>
    %6 = arith.truncf %5 : vector<256x128xf32> to vector<256x128xbf16>
    %c0_4 = arith.constant 0 : index
    %c0_5 = arith.constant 0 : index
    %c0_6 = arith.constant 0 : index
    %7 = vector.load %arg2[%c0_4, %c0_5, %c0_6] : memref<9x128x128xbf16, #tpu.memory_space<vmem>>, vector<1x128x128xbf16>
    %8 = vector.shape_cast %7 : vector<1x128x128xbf16> to vector<128x128xbf16>
    %cst_7 = arith.constant dense<0.000000e+00> : vector<256x128xf32>
    %9 = tpu.matmul %6, %8, %cst_7 {dimension_numbers = #tpu.dot_dimension_numbers<[1], [0], [0], [1], [0, 0, 1, 1], [], []>} : vector<256x128xbf16>, vector<128x128xbf16>, vector<256x128xf32> -> vector<256x128xf32>
    %10 = arith.addf %2, %9 : vector<256x128xf32>
    %c0_8 = arith.constant 0 : index
    %c0_9 = arith.constant 0 : index
    %11 = vector.load %arg4[%c0_8, %c0_9] : memref<9x128xf32, #tpu.memory_space<vmem>>, vector<1x128xf32>
    %12 = vector.broadcast %11 : vector<1x128xf32> to vector<256x128xf32>
    %13 = arith.mulf %5, %12 : vector<256x128xf32>
    %14 = arith.addf %3, %13 : vector<256x128xf32>
    %15 = vector.extract_strided_slice %1 {offsets = [0, 1, 0], sizes = [16, 16, 128], strides = [1, 1, 1]} : vector<18x18x128xf32> to vector<16x16x128xf32>
    %16 = vector.shape_cast %15 : vector<16x16x128xf32> to vector<256x128xf32>
    %17 = arith.truncf %16 : vector<256x128xf32> to vector<256x128xbf16>
    %c1 = arith.constant 1 : index
    %c0_10 = arith.constant 0 : index
    %c0_11 = arith.constant 0 : index
    %18 = vector.load %arg2[%c1, %c0_10, %c0_11] : memref<9x128x128xbf16, #tpu.memory_space<vmem>>, vector<1x128x128xbf16>
    %19 = vector.shape_cast %18 : vector<1x128x128xbf16> to vector<128x128xbf16>
    %cst_12 = arith.constant dense<0.000000e+00> : vector<256x128xf32>
    %20 = tpu.matmul %17, %19, %cst_12 {dimension_numbers = #tpu.dot_dimension_numbers<[1], [0], [0], [1], [0, 0, 1, 1], [], []>} : vector<256x128xbf16>, vector<128x128xbf16>, vector<256x128xf32> -> vector<256x128xf32>
    %21 = arith.addf %10, %20 : vector<256x128xf32>
    %c1_13 = arith.constant 1 : index
    %c0_14 = arith.constant 0 : index
    %22 = vector.load %arg4[%c1_13, %c0_14] : memref<9x128xf32, #tpu.memory_space<vmem>>, vector<1x128xf32>
    %23 = vector.broadcast %22 : vector<1x128xf32> to vector<256x128xf32>
    %24 = arith.mulf %16, %23 : vector<256x128xf32>
    %25 = arith.addf %14, %24 : vector<256x128xf32>
    %26 = vector.extract_strided_slice %1 {offsets = [0, 2, 0], sizes = [16, 16, 128], strides = [1, 1, 1]} : vector<18x18x128xf32> to vector<16x16x128xf32>
    %27 = vector.shape_cast %26 : vector<16x16x128xf32> to vector<256x128xf32>
    %28 = arith.truncf %27 : vector<256x128xf32> to vector<256x128xbf16>
    %c2 = arith.constant 2 : index
    %c0_15 = arith.constant 0 : index
    %c0_16 = arith.constant 0 : index
    %29 = vector.load %arg2[%c2, %c0_15, %c0_16] : memref<9x128x128xbf16, #tpu.memory_space<vmem>>, vector<1x128x128xbf16>
    %30 = vector.shape_cast %29 : vector<1x128x128xbf16> to vector<128x128xbf16>
    %cst_17 = arith.constant dense<0.000000e+00> : vector<256x128xf32>
    %31 = tpu.matmul %28, %30, %cst_17 {dimension_numbers = #tpu.dot_dimension_numbers<[1], [0], [0], [1], [0, 0, 1, 1], [], []>} : vector<256x128xbf16>, vector<128x128xbf16>, vector<256x128xf32> -> vector<256x128xf32>
    %32 = arith.addf %21, %31 : vector<256x128xf32>
    %c2_18 = arith.constant 2 : index
    %c0_19 = arith.constant 0 : index
    %33 = vector.load %arg4[%c2_18, %c0_19] : memref<9x128xf32, #tpu.memory_space<vmem>>, vector<1x128xf32>
    %34 = vector.broadcast %33 : vector<1x128xf32> to vector<256x128xf32>
    %35 = arith.mulf %27, %34 : vector<256x128xf32>
    %36 = arith.addf %25, %35 : vector<256x128xf32>
    %37 = vector.extract_strided_slice %1 {offsets = [1, 0, 0], sizes = [16, 16, 128], strides = [1, 1, 1]} : vector<18x18x128xf32> to vector<16x16x128xf32>
    %38 = vector.shape_cast %37 : vector<16x16x128xf32> to vector<256x128xf32>
    %39 = arith.truncf %38 : vector<256x128xf32> to vector<256x128xbf16>
    %c3 = arith.constant 3 : index
    %c0_20 = arith.constant 0 : index
    %c0_21 = arith.constant 0 : index
    %40 = vector.load %arg2[%c3, %c0_20, %c0_21] : memref<9x128x128xbf16, #tpu.memory_space<vmem>>, vector<1x128x128xbf16>
    %41 = vector.shape_cast %40 : vector<1x128x128xbf16> to vector<128x128xbf16>
    %cst_22 = arith.constant dense<0.000000e+00> : vector<256x128xf32>
    %42 = tpu.matmul %39, %41, %cst_22 {dimension_numbers = #tpu.dot_dimension_numbers<[1], [0], [0], [1], [0, 0, 1, 1], [], []>} : vector<256x128xbf16>, vector<128x128xbf16>, vector<256x128xf32> -> vector<256x128xf32>
    %43 = arith.addf %32, %42 : vector<256x128xf32>
    %c3_23 = arith.constant 3 : index
    %c0_24 = arith.constant 0 : index
    %44 = vector.load %arg4[%c3_23, %c0_24] : memref<9x128xf32, #tpu.memory_space<vmem>>, vector<1x128xf32>
    %45 = vector.broadcast %44 : vector<1x128xf32> to vector<256x128xf32>
    %46 = arith.mulf %38, %45 : vector<256x128xf32>
    %47 = arith.addf %36, %46 : vector<256x128xf32>
    %48 = vector.extract_strided_slice %1 {offsets = [1, 1, 0], sizes = [16, 16, 128], strides = [1, 1, 1]} : vector<18x18x128xf32> to vector<16x16x128xf32>
    %49 = vector.shape_cast %48 : vector<16x16x128xf32> to vector<256x128xf32>
    %50 = arith.truncf %49 : vector<256x128xf32> to vector<256x128xbf16>
    %c4 = arith.constant 4 : index
    %c0_25 = arith.constant 0 : index
    %c0_26 = arith.constant 0 : index
    %51 = vector.load %arg2[%c4, %c0_25, %c0_26] : memref<9x128x128xbf16, #tpu.memory_space<vmem>>, vector<1x128x128xbf16>
    %52 = vector.shape_cast %51 : vector<1x128x128xbf16> to vector<128x128xbf16>
    %cst_27 = arith.constant dense<0.000000e+00> : vector<256x128xf32>
    %53 = tpu.matmul %50, %52, %cst_27 {dimension_numbers = #tpu.dot_dimension_numbers<[1], [0], [0], [1], [0, 0, 1, 1], [], []>} : vector<256x128xbf16>, vector<128x128xbf16>, vector<256x128xf32> -> vector<256x128xf32>
    %54 = arith.addf %43, %53 : vector<256x128xf32>
    %c4_28 = arith.constant 4 : index
    %c0_29 = arith.constant 0 : index
    %55 = vector.load %arg4[%c4_28, %c0_29] : memref<9x128xf32, #tpu.memory_space<vmem>>, vector<1x128xf32>
    %56 = vector.broadcast %55 : vector<1x128xf32> to vector<256x128xf32>
    %57 = arith.mulf %49, %56 : vector<256x128xf32>
    %58 = arith.addf %47, %57 : vector<256x128xf32>
    %59 = vector.extract_strided_slice %1 {offsets = [1, 2, 0], sizes = [16, 16, 128], strides = [1, 1, 1]} : vector<18x18x128xf32> to vector<16x16x128xf32>
    %60 = vector.shape_cast %59 : vector<16x16x128xf32> to vector<256x128xf32>
    %61 = arith.truncf %60 : vector<256x128xf32> to vector<256x128xbf16>
    %c5 = arith.constant 5 : index
    %c0_30 = arith.constant 0 : index
    %c0_31 = arith.constant 0 : index
    %62 = vector.load %arg2[%c5, %c0_30, %c0_31] : memref<9x128x128xbf16, #tpu.memory_space<vmem>>, vector<1x128x128xbf16>
    %63 = vector.shape_cast %62 : vector<1x128x128xbf16> to vector<128x128xbf16>
    %cst_32 = arith.constant dense<0.000000e+00> : vector<256x128xf32>
    %64 = tpu.matmul %61, %63, %cst_32 {dimension_numbers = #tpu.dot_dimension_numbers<[1], [0], [0], [1], [0, 0, 1, 1], [], []>} : vector<256x128xbf16>, vector<128x128xbf16>, vector<256x128xf32> -> vector<256x128xf32>
    %65 = arith.addf %54, %64 : vector<256x128xf32>
    %c5_33 = arith.constant 5 : index
    %c0_34 = arith.constant 0 : index
    %66 = vector.load %arg4[%c5_33, %c0_34] : memref<9x128xf32, #tpu.memory_space<vmem>>, vector<1x128xf32>
    %67 = vector.broadcast %66 : vector<1x128xf32> to vector<256x128xf32>
    %68 = arith.mulf %60, %67 : vector<256x128xf32>
    %69 = arith.addf %58, %68 : vector<256x128xf32>
    %70 = vector.extract_strided_slice %1 {offsets = [2, 0, 0], sizes = [16, 16, 128], strides = [1, 1, 1]} : vector<18x18x128xf32> to vector<16x16x128xf32>
    %71 = vector.shape_cast %70 : vector<16x16x128xf32> to vector<256x128xf32>
    %72 = arith.truncf %71 : vector<256x128xf32> to vector<256x128xbf16>
    %c6 = arith.constant 6 : index
    %c0_35 = arith.constant 0 : index
    %c0_36 = arith.constant 0 : index
    %73 = vector.load %arg2[%c6, %c0_35, %c0_36] : memref<9x128x128xbf16, #tpu.memory_space<vmem>>, vector<1x128x128xbf16>
    %74 = vector.shape_cast %73 : vector<1x128x128xbf16> to vector<128x128xbf16>
    %cst_37 = arith.constant dense<0.000000e+00> : vector<256x128xf32>
    %75 = tpu.matmul %72, %74, %cst_37 {dimension_numbers = #tpu.dot_dimension_numbers<[1], [0], [0], [1], [0, 0, 1, 1], [], []>} : vector<256x128xbf16>, vector<128x128xbf16>, vector<256x128xf32> -> vector<256x128xf32>
    %76 = arith.addf %65, %75 : vector<256x128xf32>
    %c6_38 = arith.constant 6 : index
    %c0_39 = arith.constant 0 : index
    %77 = vector.load %arg4[%c6_38, %c0_39] : memref<9x128xf32, #tpu.memory_space<vmem>>, vector<1x128xf32>
    %78 = vector.broadcast %77 : vector<1x128xf32> to vector<256x128xf32>
    %79 = arith.mulf %71, %78 : vector<256x128xf32>
    %80 = arith.addf %69, %79 : vector<256x128xf32>
    %81 = vector.extract_strided_slice %1 {offsets = [2, 1, 0], sizes = [16, 16, 128], strides = [1, 1, 1]} : vector<18x18x128xf32> to vector<16x16x128xf32>
    %82 = vector.shape_cast %81 : vector<16x16x128xf32> to vector<256x128xf32>
    %83 = arith.truncf %82 : vector<256x128xf32> to vector<256x128xbf16>
    %c7 = arith.constant 7 : index
    %c0_40 = arith.constant 0 : index
    %c0_41 = arith.constant 0 : index
    %84 = vector.load %arg2[%c7, %c0_40, %c0_41] : memref<9x128x128xbf16, #tpu.memory_space<vmem>>, vector<1x128x128xbf16>
    %85 = vector.shape_cast %84 : vector<1x128x128xbf16> to vector<128x128xbf16>
    %cst_42 = arith.constant dense<0.000000e+00> : vector<256x128xf32>
    %86 = tpu.matmul %83, %85, %cst_42 {dimension_numbers = #tpu.dot_dimension_numbers<[1], [0], [0], [1], [0, 0, 1, 1], [], []>} : vector<256x128xbf16>, vector<128x128xbf16>, vector<256x128xf32> -> vector<256x128xf32>
    %87 = arith.addf %76, %86 : vector<256x128xf32>
    %c7_43 = arith.constant 7 : index
    %c0_44 = arith.constant 0 : index
    %88 = vector.load %arg4[%c7_43, %c0_44] : memref<9x128xf32, #tpu.memory_space<vmem>>, vector<1x128xf32>
    %89 = vector.broadcast %88 : vector<1x128xf32> to vector<256x128xf32>
    %90 = arith.mulf %82, %89 : vector<256x128xf32>
    %91 = arith.addf %80, %90 : vector<256x128xf32>
    %92 = vector.extract_strided_slice %1 {offsets = [2, 2, 0], sizes = [16, 16, 128], strides = [1, 1, 1]} : vector<18x18x128xf32> to vector<16x16x128xf32>
    %93 = vector.shape_cast %92 : vector<16x16x128xf32> to vector<256x128xf32>
    %94 = arith.truncf %93 : vector<256x128xf32> to vector<256x128xbf16>
    %c8 = arith.constant 8 : index
    %c0_45 = arith.constant 0 : index
    %c0_46 = arith.constant 0 : index
    %95 = vector.load %arg2[%c8, %c0_45, %c0_46] : memref<9x128x128xbf16, #tpu.memory_space<vmem>>, vector<1x128x128xbf16>
    %96 = vector.shape_cast %95 : vector<1x128x128xbf16> to vector<128x128xbf16>
    %cst_47 = arith.constant dense<0.000000e+00> : vector<256x128xf32>
    %97 = tpu.matmul %94, %96, %cst_47 {dimension_numbers = #tpu.dot_dimension_numbers<[1], [0], [0], [1], [0, 0, 1, 1], [], []>} : vector<256x128xbf16>, vector<128x128xbf16>, vector<256x128xf32> -> vector<256x128xf32>
    %98 = arith.addf %87, %97 : vector<256x128xf32>
    %c8_48 = arith.constant 8 : index
    %c0_49 = arith.constant 0 : index
    %99 = vector.load %arg4[%c8_48, %c0_49] : memref<9x128xf32, #tpu.memory_space<vmem>>, vector<1x128xf32>
    %100 = vector.broadcast %99 : vector<1x128xf32> to vector<256x128xf32>
    %101 = arith.mulf %93, %100 : vector<256x128xf32>
    %102 = arith.addf %91, %101 : vector<256x128xf32>
    %c0_50 = arith.constant 0 : index
    %c0_51 = arith.constant 0 : index
    %103 = vector.load %arg3[%c0_50, %c0_51] : memref<1x128xf32, #tpu.memory_space<vmem>>, vector<1x128xf32>
    %104 = vector.broadcast %103 : vector<1x128xf32> to vector<256x128xf32>
    %105 = arith.addf %98, %104 : vector<256x128xf32>
    %c0_52 = arith.constant 0 : index
    %c0_53 = arith.constant 0 : index
    %106 = vector.load %arg5[%c0_52, %c0_53] : memref<1x128xf32, #tpu.memory_space<vmem>>, vector<1x128xf32>
    %107 = vector.broadcast %106 : vector<1x128xf32> to vector<256x128xf32>
    %108 = arith.addf %102, %107 : vector<256x128xf32>
    %109 = arith.truncf %108 : vector<256x128xf32> to vector<256x128xbf16>
    %c0_54 = arith.constant 0 : index
    %c0_55 = arith.constant 0 : index
    %110 = vector.load %arg6[%c0_54, %c0_55] : memref<128x128xbf16, #tpu.memory_space<vmem>>, vector<128x128xbf16>
    %cst_56 = arith.constant dense<0.000000e+00> : vector<256x128xf32>
    %111 = tpu.matmul %109, %110, %cst_56 {dimension_numbers = #tpu.dot_dimension_numbers<[1], [0], [0], [1], [0, 0, 1, 1], [], []>} : vector<256x128xbf16>, vector<128x128xbf16>, vector<256x128xf32> -> vector<256x128xf32>
    %c0_57 = arith.constant 0 : index
    %c0_58 = arith.constant 0 : index
    %112 = vector.load %arg7[%c0_57, %c0_58] : memref<1x128xf32, #tpu.memory_space<vmem>>, vector<1x128xf32>
    %113 = vector.broadcast %112 : vector<1x128xf32> to vector<256x128xf32>
    %114 = arith.addf %111, %113 : vector<256x128xf32>
    %c0_59 = arith.constant 0 : index
    %c0_60 = arith.constant 0 : index
    %c0_61 = arith.constant 0 : index
    %115 = vector.load %arg8[%c0_59, %c0_60, %c0_61] : memref<1x256x128xf32, #tpu.memory_space<vmem>>, vector<1x256x128xf32>
    %116 = vector.shape_cast %115 : vector<1x256x128xf32> to vector<256x128xf32>
    %117 = vector.shape_cast %105 : vector<256x128xf32> to vector<1x256x128xf32>
    tpu.vector_store %arg8[%c0_59, %c0_60, %c0_61], %117 {strides = array<i32>} : memref<1x256x128xf32, #tpu.memory_space<vmem>>, vector<1x256x128xf32>,
    %c0_62 = arith.constant 0 : index
    %c0_63 = arith.constant 0 : index
    %c0_64 = arith.constant 0 : index
    %118 = vector.load %arg9[%c0_62, %c0_63, %c0_64] : memref<1x256x128xf32, #tpu.memory_space<vmem>>, vector<1x256x128xf32>
    %119 = vector.shape_cast %118 : vector<1x256x128xf32> to vector<256x128xf32>
    %120 = vector.shape_cast %114 : vector<256x128xf32> to vector<1x256x128xf32>
    tpu.vector_store %arg9[%c0_62, %c0_63, %c0_64], %120 {strides = array<i32>} : memref<1x256x128xf32, #tpu.memory_space<vmem>>, vector<1x256x128xf32>,
    %cst_65 = arith.constant dense<0.000000e+00> : vector<128xf32>
    %121 = vector.multi_reduction <add>, %105, %cst_65 [0] : vector<256x128xf32> to vector<128xf32>
    %122 = vector.shape_cast %121 : vector<128xf32> to vector<1x128xf32>
    %c0_66 = arith.constant 0 : index
    %c0_67 = arith.constant 0 : index
    %c0_68 = arith.constant 0 : index
    %123 = vector.load %arg10[%c0_66, %c0_67, %c0_68] : memref<1x2x128xf32, #tpu.memory_space<vmem>>, vector<1x1x128xf32>
    %124 = vector.shape_cast %123 : vector<1x1x128xf32> to vector<1x128xf32>
    %125 = vector.shape_cast %122 : vector<1x128xf32> to vector<1x1x128xf32>
    tpu.vector_store %arg10[%c0_66, %c0_67, %c0_68], %125 {strides = array<i32>} : memref<1x2x128xf32, #tpu.memory_space<vmem>>, vector<1x1x128xf32>,
    %126 = arith.mulf %105, %105 : vector<256x128xf32>
    %cst_69 = arith.constant dense<0.000000e+00> : vector<128xf32>
    %127 = vector.multi_reduction <add>, %126, %cst_69 [0] : vector<256x128xf32> to vector<128xf32>
    %128 = vector.shape_cast %127 : vector<128xf32> to vector<1x128xf32>
    %c0_70 = arith.constant 0 : index
    %c1_71 = arith.constant 1 : index
    %c0_72 = arith.constant 0 : index
    %129 = vector.load %arg10[%c0_70, %c1_71, %c0_72] : memref<1x2x128xf32, #tpu.memory_space<vmem>>, vector<1x1x128xf32>
    %130 = vector.shape_cast %129 : vector<1x1x128xf32> to vector<1x128xf32>
    %131 = vector.shape_cast %128 : vector<1x128xf32> to vector<1x1x128xf32>
    tpu.vector_store %arg10[%c0_70, %c1_71, %c0_72], %131 {strides = array<i32>} : memref<1x2x128xf32, #tpu.memory_space<vmem>>, vector<1x1x128xf32>,
    return
  }
  func.func @transform_0(%arg0: i32) -> (i32, i32, i32, i32) {
    %c0_i32 = arith.constant 0 : i32
    %c0_i32_0 = arith.constant 0 : i32
    %c0_i32_1 = arith.constant 0 : i32
    %c0_i32_2 = arith.constant 0 : i32
    return %arg0, %c0_i32, %c0_i32_0, %c0_i32_1 : i32, i32, i32, i32
  }
  func.func @transform_1(%arg0: i32) -> (i32, i32, i32) {
    %c0_i32 = arith.constant 0 : i32
    %c0_i32_0 = arith.constant 0 : i32
    %c0_i32_1 = arith.constant 0 : i32
    %c0_i32_2 = arith.constant 0 : i32
    return %c0_i32, %c0_i32_0, %c0_i32_1 : i32, i32, i32
  }
  func.func @transform_2(%arg0: i32) -> (i32, i32) {
    %c0_i32 = arith.constant 0 : i32
    %c0_i32_0 = arith.constant 0 : i32
    %c0_i32_1 = arith.constant 0 : i32
    return %c0_i32, %c0_i32_0 : i32, i32
  }
  func.func @transform_3(%arg0: i32) -> (i32, i32) {
    %c0_i32 = arith.constant 0 : i32
    %c0_i32_0 = arith.constant 0 : i32
    %c0_i32_1 = arith.constant 0 : i32
    return %c0_i32, %c0_i32_0 : i32, i32
  }
  func.func @transform_4(%arg0: i32) -> (i32, i32) {
    %c0_i32 = arith.constant 0 : i32
    %c0_i32_0 = arith.constant 0 : i32
    %c0_i32_1 = arith.constant 0 : i32
    return %c0_i32, %c0_i32_0 : i32, i32
  }
  func.func @transform_5(%arg0: i32) -> (i32, i32) {
    %c0_i32 = arith.constant 0 : i32
    %c0_i32_0 = arith.constant 0 : i32
    %c0_i32_1 = arith.constant 0 : i32
    return %c0_i32, %c0_i32_0 : i32, i32
  }
  func.func @transform_6(%arg0: i32) -> (i32, i32) {
    %c0_i32 = arith.constant 0 : i32
    %c0_i32_0 = arith.constant 0 : i32
    %c0_i32_1 = arith.constant 0 : i32
    return %c0_i32, %c0_i32_0 : i32, i32
  }
  func.func @transform_7(%arg0: i32) -> (i32, i32, i32) {
    %c0_i32 = arith.constant 0 : i32
    %c0_i32_0 = arith.constant 0 : i32
    %c0_i32_1 = arith.constant 0 : i32
    return %arg0, %c0_i32, %c0_i32_0 : i32, i32, i32
  }
  func.func @transform_8(%arg0: i32) -> (i32, i32, i32) {
    %c0_i32 = arith.constant 0 : i32
    %c0_i32_0 = arith.constant 0 : i32
    %c0_i32_1 = arith.constant 0 : i32
    return %arg0, %c0_i32, %c0_i32_0 : i32, i32, i32
  }
  func.func @transform_9(%arg0: i32) -> (i32, i32, i32) {
    %c0_i32 = arith.constant 0 : i32
    %c0_i32_0 = arith.constant 0 : i32
    %c0_i32_1 = arith.constant 0 : i32
    return %arg0, %c0_i32, %c0_i32_0 : i32, i32, i32
  }
}

module attributes {stable_mosaic.version = 11 : i64} {
  func.func @_bn_relu_gate_kernel(%arg0: i32, %arg1: memref<512x128xf32, #tpu.memory_space<vmem>>, %arg2: memref<512x128xf32, #tpu.memory_space<vmem>>, %arg3: memref<1x128xf32, #tpu.memory_space<vmem>>, %arg4: memref<1x128xf32, #tpu.memory_space<vmem>>, %arg5: memref<512x128xf32, #tpu.memory_space<vmem>>) attributes {dimension_semantics = [#tpu.dimension_semantics<parallel>], iteration_bounds = array<i64: 1>, scalar_prefetch = 0 : i64, scratch_operands = 0 : i64, tpu.core_type = #tpu.core_type<tc>, window_params = [{transform_indices = @transform_0, window_bounds = array<i64: 512, 128>}, {transform_indices = @transform_1, window_bounds = array<i64: 512, 128>}, {pipeline_mode = #tpu.pipeline_mode<synchronous>, transform_indices = @transform_2, window_bounds = array<i64: 1, 128>}, {pipeline_mode = #tpu.pipeline_mode<synchronous>, transform_indices = @transform_3, window_bounds = array<i64: 1, 128>}, {transform_indices = @transform_4, window_bounds = array<i64: 512, 128>}]} {
    %c0 = arith.constant 0 : index
    %c0_0 = arith.constant 0 : index
    %0 = vector.load %arg1[%c0, %c0_0] : memref<512x128xf32, #tpu.memory_space<vmem>>, vector<512x128xf32>
    %c0_1 = arith.constant 0 : index
    %c0_2 = arith.constant 0 : index
    %1 = vector.load %arg3[%c0_1, %c0_2] : memref<1x128xf32, #tpu.memory_space<vmem>>, vector<1x128xf32>
    %2 = vector.broadcast %1 : vector<1x128xf32> to vector<512x128xf32>
    %3 = arith.mulf %0, %2 : vector<512x128xf32>
    %c0_3 = arith.constant 0 : index
    %c0_4 = arith.constant 0 : index
    %4 = vector.load %arg4[%c0_3, %c0_4] : memref<1x128xf32, #tpu.memory_space<vmem>>, vector<1x128xf32>
    %5 = vector.broadcast %4 : vector<1x128xf32> to vector<512x128xf32>
    %6 = arith.addf %3, %5 : vector<512x128xf32>
    %cst = arith.constant 0.000000e+00 : f32
    %7 = vector.broadcast %cst : f32 to vector<512x128xf32>
    %8 = arith.maximumf %6, %7 : vector<512x128xf32>
    %c0_5 = arith.constant 0 : index
    %c0_6 = arith.constant 0 : index
    %9 = vector.load %arg2[%c0_5, %c0_6] : memref<512x128xf32, #tpu.memory_space<vmem>>, vector<512x128xf32>
    %10 = arith.negf %9 : vector<512x128xf32>
    %11 = math.exp %10 : vector<512x128xf32>
    %cst_7 = arith.constant 1.000000e+00 : f32
    %12 = vector.broadcast %cst_7 : f32 to vector<512x128xf32>
    %13 = arith.addf %12, %11 : vector<512x128xf32>
    %14 = arith.divf %12, %13 : vector<512x128xf32>
    %15 = arith.mulf %8, %14 : vector<512x128xf32>
    %c0_8 = arith.constant 0 : index
    %c0_9 = arith.constant 0 : index
    %16 = vector.load %arg5[%c0_8, %c0_9] : memref<512x128xf32, #tpu.memory_space<vmem>>, vector<512x128xf32>
    tpu.vector_store %arg5[%c0_8, %c0_9], %15 {strides = array<i32>} : memref<512x128xf32, #tpu.memory_space<vmem>>, vector<512x128xf32>,
    return
  }
  func.func @transform_0(%arg0: i32) -> (i32, i32) {
    %c0_i32 = arith.constant 0 : i32
    %c0_i32_0 = arith.constant 0 : i32
    return %arg0, %c0_i32 : i32, i32
  }
  func.func @transform_1(%arg0: i32) -> (i32, i32) {
    %c0_i32 = arith.constant 0 : i32
    %c0_i32_0 = arith.constant 0 : i32
    return %arg0, %c0_i32 : i32, i32
  }
  func.func @transform_2(%arg0: i32) -> (i32, i32) {
    %c0_i32 = arith.constant 0 : i32
    %c0_i32_0 = arith.constant 0 : i32
    %c0_i32_1 = arith.constant 0 : i32
    return %c0_i32, %c0_i32_0 : i32, i32
  }
  func.func @transform_3(%arg0: i32) -> (i32, i32) {
    %c0_i32 = arith.constant 0 : i32
    %c0_i32_0 = arith.constant 0 : i32
    %c0_i32_1 = arith.constant 0 : i32
    return %c0_i32, %c0_i32_0 : i32, i32
  }
  func.func @transform_4(%arg0: i32) -> (i32, i32) {
    %c0_i32 = arith.constant 0 : i32
    %c0_i32_0 = arith.constant 0 : i32
    return %arg0, %c0_i32 : i32, i32
  }
}

</mosaic_0001>

<bundles_post_ra>
// kernel: gated_conv2d_with_act.3
= control target key start
LH: loop header
LB: loop body
LE: loop exit
PB: predicated region body
PF: predicated region fallthrough
CT: control target
= control target key end

     0   :  { %s2086_s1 = inlined_call_operand.vmem [shape: f32[512,128], index: 1, kind: input, shape index: {}]   ;;  %s2087_s0 = inlined_call_operand.vmem [shape: f32[512,128], index: 0, kind: input, shape index: {}]   ;;  %s2088_s2 = inlined_call_operand.vmem [shape: f32[1,128], index: 2, kind: input, shape index: {}]   ;;  %s2089_s3 = inlined_call_operand.vmem [shape: f32[1,128], index: 3, kind: input, shape index: {}]   ;;  %s2090_s4 = inlined_call_operand.vmem [shape: f32[512,128], index: 4, kind: output, shape index: {}]  }
   0x1   :  { %v287_v0 = vld [vmem:[%s2086_s1] sm:$0xff]  ;;  %v288_v1 = vld [vmem:[%s2086_s1 + $0x8] sm:$0xff]  ;;  %v289_v4 = vld [vmem:[%s2086_s1 + $0x10] sm:$0xff] }
   0x2   :  { %v869_v2 = vmul.f32 -1.442695, %v287_v0  ;;  %v870_v3 = vmul.f32 -1.442695, %v288_v1  ;;  %v871_v5 = vmul.f32 -1.442695, %v289_v4 }
   0x3   :  { %v290_v6 = vld [vmem:[%s2086_s1 + $0x18] sm:$0xff]  ;;  %v291_v8 = vld [vmem:[%s2086_s1 + $0x20] sm:$0xff]  ;;  %v292_v9 = vld [vmem:[%s2086_s1 + $0x28] sm:$0xff] }
   0x4   :  { %933 = vpow2.f32 %v869_v2  ;;  %v872_v7 = vmul.f32 -1.442695, %v290_v6  ;;  %v873_v10 = vmul.f32 -1.442695, %v291_v8  ;;  %v293_v11 = vld [vmem:[%s2086_s1 + $0x30] sm:$0xff]  ;;  %v17_v12 = vld [vmem:[%s2087_s0] sm:$0xff] }
   0x5   :  { %935 = vpow2.f32 %v870_v3  ;;  %v1243_v13 = vld [vmem:[%s2088_s2] ss:$0 sm:$0xff]  ;;  %v294_v14 = vld [vmem:[%s2086_s1 + $0x38] sm:$0xff]  ;;  %v874_v15 = vmul.f32 -1.442695, %v292_v9  ;;  %v296_v20 = vld [vmem:[%s2086_s1 + $0x48] sm:$0xff] }
   0x6   :  { %937 = vpow2.f32 %v871_v5  ;;  %v295_v16 = vld [vmem:[%s2086_s1 + $0x40] sm:$0xff]  ;;  %v875_v17 = vmul.f32 -1.442695, %v293_v11  ;;  %v88_v18 = vmul.f32 %v1243_v13, %v17_v12  ;;  %v876_v19 = vmul.f32 -1.442695, %v294_v14  ;;  %v18_v22 = vld [vmem:[%s2087_s0 + $0x8] sm:$0xff] }
   0x7   :  { %939 = vpow2.f32 %v872_v7  ;;  %v1258_v21 = vld [vmem:[%s2089_s3] ss:$0 sm:$0xff]  ;;  %v877_v23 = vmul.f32 -1.442695, %v295_v16  ;;  %v297_v24 = vld [vmem:[%s2086_s1 + $0x50] sm:$0xff]  ;;  %v20_v26 = vld [vmem:[%s2087_s0 + $0x18] sm:$0xff]  ;;  %v89_v32 = vmul.f32 %v1243_v13, %v18_v22 }
   0x8   :  { %941 = vpow2.f32 %v873_v10  ;;  %v19_v25 = vld [vmem:[%s2087_s0 + $0x10] sm:$0xff]  ;;  %v21_v27 = vld [vmem:[%s2087_s0 + $0x20] sm:$0xff]  ;;  %v22_v28 = vld [vmem:[%s2087_s0 + $0x28] sm:$0xff]  ;;  %v878_v29 = vmul.f32 -1.442695, %v296_v20  ;;  %v1279_v31 = vadd.f32 %v1258_v21, %v88_v18  ;;  %v91_v38 = vmul.f32 %v1243_v13, %v20_v26 }
   0x9   :  { %943 = vpow2.f32 %v874_v15  ;;  %v23_v33 = vld [vmem:[%s2087_s0 + $0x30] sm:$0xff]  ;;  %v879_v34 = vmul.f32 -1.442695, %v297_v24  ;;  %v90_v37 = vmul.f32 %v1243_v13, %v19_v25  ;;  %v298_v39 = vld [vmem:[%s2086_s1 + $0x58] sm:$0xff]  ;;  %v92_v42 = vmul.f32 %v1243_v13, %v21_v27  ;;  %v25_v55 = vld [vmem:[%s2087_s0 + $0x40] sm:$0xff] }
   0xa   :  { %945 = vpow2.f32 %v875_v17  ;;  %v93_v43 = vmul.f32 %v1243_v13, %v22_v28  ;;  %v94_v46 = vmul.f32 %v1243_v13, %v23_v33  ;;  %v1294_v48 = vadd.f32 %v1258_v21, %v89_v32  ;;  %v24_v50 = vld [vmem:[%s2087_s0 + $0x38] sm:$0xff]  ;;  %v299_v60 = vld [vmem:[%s2086_s1 + $0x60] sm:$0xff]  ;;  %v300_v9 = vld [vmem:[%s2086_s1 + $0x68] sm:$0xff] }
   0xb   :  { %947 = vpow2.f32 %v876_v19  ;;  %v880_v51 = vmul.f32 -1.442695, %v298_v39  ;;  %v223_v52 = vmax.f32 %v1279_v31, 0.0  ;;  %v1301_v53 = vadd.f32 %v1258_v21, %v90_v37  ;;  %v26_v14 = vld [vmem:[%s2087_s0 + $0x48] sm:$0xff]  ;;  %v301_v15 = vld [vmem:[%s2086_s1 + $0x70] sm:$0xff]  ;;  %v302_v22 = vld [vmem:[%s2086_s1 + $0x78] sm:$0xff] }
   0xc   :  { %949 = vpow2.f32 %v877_v23  ;;  %v1307_v57 = vadd.f32 %v1258_v21, %v91_v38  ;;  %v1310_v58 = vadd.f32 %v1258_v21, %v92_v42  ;;  %v1313_v59 = vadd.f32 %v1258_v21, %v93_v43  ;;  %v27_v20 = vld [vmem:[%s2087_s0 + $0x50] sm:$0xff]  ;;  %v303_v27 = vld [vmem:[%s2086_s1 + $0x80] sm:$0xff]  ;;  %v304_v32 = vld [vmem:[%s2086_s1 + $0x88] sm:$0xff] }
   0xd   :  { %951 = vpow2.f32 %v878_v29  ;;  %v1319_v63 = vadd.f32 %v1258_v21, %v94_v46  ;;  %v95_v0 = vmul.f32 %v1243_v13, %v24_v50  ;;  %v224_v2 = vmax.f32 %v1294_v48, 0.0  ;;  %v305_v42 = vld [vmem:[%s2086_s1 + $0x90] sm:$0xff]  ;;  %v29_v46 = vld [vmem:[%s2087_s0 + $0x60] sm:$0xff]  ;;  %v306_v48 = vld [vmem:[%s2086_s1 + $0x98] sm:$0xff] }
   0xe   :  { %v934_v30 = vpop.eup %933  ;;  %953 = vpow2.f32 %v879_v34  ;;  %v96_v4 = vmul.f32 %v1243_v13, %v25_v55  ;;  %v225_v6 = vmax.f32 %v1301_v53, 0.0  ;;  %v881_v8 = vmul.f32 -1.442695, %v299_v60  ;;  %v30_v53 = vld [vmem:[%s2087_s0 + $0x68] sm:$0xff] }
   0xf   :  { %v936_v35 = vpop.eup %935  ;;  %v543_v36 = vadd.f32 1.0, %v934_v30  ;;  %v226_v10 = vmax.f32 %v1307_v57, 0.0  ;;  %v227_v11 = vmax.f32 %v1310_v58, 0.0  ;;  %v228_v17 = vmax.f32 %v1313_v59, 0.0  ;;  %v308_v59 = vld [vmem:[%s2086_s1 + $0xa8] sm:$0xff] }
  0x10   :  { %v938_v40 = vpop.eup %937  ;;  %v544_v41 = vadd.f32 1.0, %v936_v35  ;;  %v229_v18 = vmax.f32 %v1319_v63, 0.0  ;;  %v1339_v19 = vadd.f32 %v1258_v21, %v95_v0  ;;  %v1348_v24 = vadd.f32 %v1258_v21, %v96_v4  ;;  %v31_v4 = vld [vmem:[%s2087_s0 + $0x70] sm:$0xff]  ;;  %v310_v63 = vld [vmem:[%s2086_s1 + $0xb8] sm:$0xff] }
  0x11   :  { %v940_v44 = vpop.eup %939  ;;  %955 = vrcp.f32 %v543_v36  ;;  %v545_v45 = vadd.f32 1.0, %v938_v40  ;;  %v882_v26 = vmul.f32 -1.442695, %v300_v9  ;;  %v97_v29 = vmul.f32 %v1243_v13, %v26_v14  ;;  %v28_v36 = vld [vmem:[%s2087_s0 + $0x58] sm:$0xff] }
  0x12   :  { %v942_v47 = vpop.eup %941  ;;  %957 = vrcp.f32 %v544_v41  ;;  %v546_v49 = vadd.f32 1.0, %v940_v44  ;;  %v883_v31 = vmul.f32 -1.442695, %v301_v15  ;;  %v98_v35 = vmul.f32 %v1243_v13, %v27_v20  ;;  %v33_v20 = vld [vmem:[%s2087_s0 + $0x80] sm:$0xff] }
  0x13   :  { %959 = vrcp.f32 %v545_v45  ;;  %v547_v54 = vadd.f32 1.0, %v942_v47  ;;  %v944_v56 = vpop.eup %943  ;;  %v884_v37 = vmul.f32 -1.442695, %v302_v22  ;;  %v230_v40 = vmax.f32 %v1339_v19, 0.0 }
  0x14   :  { %961 = vrcp.f32 %v546_v49  ;;  %v946_v61 = vpop.eup %945  ;;  %v548_v62 = vadd.f32 1.0, %v944_v56  ;;  %v885_v41 = vmul.f32 -1.442695, %v303_v27  ;;  %v231_v45 = vmax.f32 %v1348_v24, 0.0  ;;  %v34_v27 = vld [vmem:[%s2087_s0 + $0x88] sm:$0xff] }
  0x15   :  { %963 = vrcp.f32 %v547_v54  ;;  %v948_v1 = vpop.eup %947  ;;  %v549_v3 = vadd.f32 1.0, %v946_v61  ;;  %v886_v47 = vmul.f32 -1.442695, %v304_v32  ;;  %v307_v54 = vld [vmem:[%s2086_s1 + $0xa0] sm:$0xff]  ;;  %v169_v57 = vadd.f32 %v1258_v21, %v98_v35 }
  0x16   :  { %965 = vpow2.f32 %v880_v51  ;;  %v950_v5 = vpop.eup %949  ;;  %v550_v7 = vadd.f32 1.0, %v948_v1  ;;  %v168_v51 = vadd.f32 %v1258_v21, %v97_v29  ;;  %v887_v58 = vmul.f32 -1.442695, %v305_v42 }
  0x17   :  { %967 = vrcp.f32 %v548_v62  ;;  %v551_v12 = vadd.f32 1.0, %v950_v5  ;;  %v952_v16 = vpop.eup %951  ;;  %v100_v62 = vmul.f32 %v1243_v13, %v29_v46  ;;  %v888_v0 = vmul.f32 -1.442695, %v306_v48 }
  0x18   :  { %969 = vrcp.f32 %v549_v3  ;;  %v954_v23 = vpop.eup %953  ;;  %v552_v25 = vadd.f32 1.0, %v952_v16  ;;  %v101_v3 = vmul.f32 %v1243_v13, %v30_v53  ;;  %v889_v5 = vmul.f32 -1.442695, %v307_v54  ;;  %v32_v16 = vld [vmem:[%s2087_s0 + $0x78] sm:$0xff]  ;;  %v37_v54 = vld [vmem:[%s2087_s0 + $0xa0] sm:$0xff] }
  0x19   :  { %971 = vrcp.f32 %v550_v7  ;;  %v553_v30 = vadd.f32 1.0, %v954_v23  ;;  %v232_v9 = vmax.f32 %v168_v51, 0.0  ;;  %v233_v14 = vmax.f32 %v169_v57, 0.0 }
  0x1a   :  { %973 = vrcp.f32 %v551_v12  ;;  %v102_v19 = vmul.f32 %v1243_v13, %v31_v4  ;;  %v1432_v24 = vadd.f32 %v1258_v21, %v100_v62  ;;  %v892_v32 = vmul.f32 -1.442695, %v310_v63  ;;  %v313_v63 = vld [vmem:[%s2086_s1 + $0xd0] sm:$0xff] }
  0x1b   :  { %v956_v28 = vpop.eup %955  ;;  %975 = vpow2.f32 %v881_v8 }
  0x1c   :  { %v958_v33 = vpop.eup %957  ;;  %v735_v34 = vmul.f32 %v956_v28, %v223_v52  ;;  %977 = vrcp.f32 %v552_v25  ;;  %v99_v52 = vmul.f32 %v1243_v13, %v28_v36  ;;  %v104_v36 = vmul.f32 %v1243_v13, %v33_v20 }
  0x1d   :  { %v960_v38 = vpop.eup %959  ;;  %v736_v39 = vmul.f32 %v958_v33, %v224_v2  ;;  %979 = vrcp.f32 %v553_v30  ;;  %v103_v30 = vmul.f32 %v1243_v13, %v32_v16 }
  0x1e   :  { %v962_v43 = vpop.eup %961  ;;  %799 = vst [vmem:[%s2090_s4] sm:$0xff] %v735_v34  ;;  %v737_v44 = vmul.f32 %v960_v38, %v225_v6  ;;  %981 = vpow2.f32 %v882_v26  ;;  %v309_v6 = vld [vmem:[%s2086_s1 + $0xb0] sm:$0xff]  ;;  %v1413_v15 = vadd.f32 %v1258_v21, %v99_v52  ;;  %v1435_v26 = vadd.f32 %v1258_v21, %v101_v3 }
  0x1f   :  { %v964_v49 = vpop.eup %963  ;;  %800 = vst [vmem:[%s2090_s4 + $0x8] sm:$0xff] %v736_v39  ;;  %v738_v50 = vmul.f32 %v962_v43, %v226_v10  ;;  %983 = vpow2.f32 %v883_v31  ;;  %v890_v10 = vmul.f32 -1.442695, %v308_v59  ;;  %v891_v22 = vmul.f32 -1.442695, %v309_v6  ;;  %v35_v31 = vld [vmem:[%s2087_s0 + $0x90] sm:$0xff] }
  0x20   :  { %v966_v55 = vpop.eup %965  ;;  %801 = vst [vmem:[%s2090_s4 + $0x10] sm:$0xff] %v737_v44  ;;  %v739_v56 = vmul.f32 %v964_v49, %v227_v11  ;;  %985 = vpow2.f32 %v884_v37  ;;  %v234_v35 = vmax.f32 %v1413_v15, 0.0  ;;  %v1453_v39 = vadd.f32 %v1258_v21, %v102_v19  ;;  %v39_v15 = vld [vmem:[%s2087_s0 + $0xb0] sm:$0xff] }
  0x21   :  { %v968_v60 = vpop.eup %967  ;;  %802 = vst [vmem:[%s2090_s4 + $0x18] sm:$0xff] %v738_v50  ;;  %v554_v61 = vadd.f32 1.0, %v966_v55  ;;  %987 = vpow2.f32 %v885_v41  ;;  %v311_v41 = vld [vmem:[%s2086_s1 + $0xc0] sm:$0xff]  ;;  %v235_v43 = vmax.f32 %v1432_v24, 0.0  ;;  %v1466_v48 = vadd.f32 %v1258_v21, %v103_v30  ;;  %v36_v50 = vld [vmem:[%s2087_s0 + $0x98] sm:$0xff]  ;;  %v38_v55 = vld [vmem:[%s2087_s0 + $0xa8] sm:$0xff] }
  0x22   :  { %v970_v1 = vpop.eup %969  ;;  %803 = vst [vmem:[%s2090_s4 + $0x20] sm:$0xff] %v739_v56  ;;  %v740_v2 = vmul.f32 %v968_v60, %v228_v17  ;;  %989 = vpow2.f32 %v886_v47  ;;  %v236_v47 = vmax.f32 %v1435_v26, 0.0  ;;  %v1472_v52 = vadd.f32 %v1258_v21, %v104_v36 }
  0x23   :  { %v972_v7 = vpop.eup %971  ;;  %v741_v8 = vmul.f32 %v970_v1, %v229_v18  ;;  %991 = vrcp.f32 %v554_v61  ;;  %v893_v56 = vmul.f32 -1.442695, %v311_v41  ;;  %v107_v1 = vmul.f32 %v1243_v13, %v36_v50  ;;  %v318_v50 = vld [vmem:[%s2086_s1 + $0xf8] sm:$0xff] }
  0x24   :  { %v974_v11 = vpop.eup %973  ;;  %804 = vst [vmem:[%s2090_s4 + $0x28] sm:$0xff] %v740_v2  ;;  %v742_v12 = vmul.f32 %v972_v7, %v230_v40  ;;  %993 = vpow2.f32 %v887_v58  ;;  %v105_v40 = vmul.f32 %v1243_v13, %v34_v27  ;;  %v237_v58 = vmax.f32 %v1453_v39, 0.0  ;;  %v312_v2 = vld [vmem:[%s2086_s1 + $0xc8] sm:$0xff]  ;;  %v317_v39 = vld [vmem:[%s2086_s1 + $0xf0] sm:$0xff] }
  0x25   :  { %v976_v17 = vpop.eup %975  ;;  %805 = vst [vmem:[%s2090_s4 + $0x30] sm:$0xff] %v741_v8  ;;  %v743_v18 = vmul.f32 %v974_v11, %v231_v45  ;;  %995 = vpow2.f32 %v888_v0  ;;  %v106_v45 = vmul.f32 %v1243_v13, %v35_v31  ;;  %v109_v6 = vmul.f32 %v1243_v13, %v38_v55 }
  0x26   :  { %v978_v23 = vpop.eup %977  ;;  %806 = vst [vmem:[%s2090_s4 + $0x38] sm:$0xff] %v742_v12  ;;  %v555_v25 = vadd.f32 1.0, %v976_v17  ;;  %997 = vpow2.f32 %v889_v5  ;;  %v1482_v59 = vadd.f32 %v1258_v21, %v105_v40  ;;  %v108_v5 = vmul.f32 %v1243_v13, %v37_v54  ;;  %v319_v54 = vld [vmem:[%s2086_s1 + $0x100] sm:$0xff] }
  0x27   :  { %v980_v28 = vpop.eup %979  ;;  %807 = vst [vmem:[%s2090_s4 + $0x40] sm:$0xff] %v743_v18  ;;  %v744_v29 = vmul.f32 %v978_v23, %v232_v9  ;;  %999 = vpow2.f32 %v890_v10  ;;  %v1485_v0 = vadd.f32 %v1258_v21, %v106_v45  ;;  %v238_v8 = vmax.f32 %v1466_v48, 0.0  ;;  %v314_v23 = vld [vmem:[%s2086_s1 + $0xd8] sm:$0xff]  ;;  %v41_v48 = vld [vmem:[%s2087_s0 + $0xc0] sm:$0xff] }
  0x28   :  { %v982_v33 = vpop.eup %981  ;;  %v745_v34 = vmul.f32 %v980_v28, %v233_v14  ;;  %1001 = vrcp.f32 %v555_v25  ;;  %v239_v9 = vmax.f32 %v1472_v52, 0.0  ;;  %v240_v12 = vmax.f32 %v1482_v59, 0.0  ;;  %v42_v52 = vld [vmem:[%s2087_s0 + $0xc8] sm:$0xff]  ;;  %v43_v59 = vld [vmem:[%s2087_s0 + $0xd0] sm:$0xff] }
  0x29   :  { %v984_v37 = vpop.eup %983  ;;  %808 = vst [vmem:[%s2090_s4 + $0x48] sm:$0xff] %v744_v29  ;;  %v556_v38 = vadd.f32 1.0, %v982_v33  ;;  %1003 = vpow2.f32 %v891_v22  ;;  %v894_v16 = vmul.f32 -1.442695, %v312_v2  ;;  %v241_v18 = vmax.f32 %v1485_v0, 0.0  ;;  %v40_v22 = vld [vmem:[%s2087_s0 + $0xb8] sm:$0xff] }
  0x2a   :  { %v986_v42 = vpop.eup %985  ;;  %809 = vst [vmem:[%s2090_s4 + $0x50] sm:$0xff] %v745_v34  ;;  %v557_v44 = vadd.f32 1.0, %v984_v37  ;;  %1005 = vpow2.f32 %v892_v32  ;;  %v1507_v19 = vadd.f32 %v1258_v21, %v107_v1  ;;  %v1516_v27 = vadd.f32 %v1258_v21, %v108_v5  ;;  %v315_v29 = vld [vmem:[%s2086_s1 + $0xe0] sm:$0xff]  ;;  %v316_v34 = vld [vmem:[%s2086_s1 + $0xe8] sm:$0xff] }
  0x2b   :  { %v988_v46 = vpop.eup %987  ;;  %1007 = vrcp.f32 %v556_v38  ;;  %v558_v49 = vadd.f32 1.0, %v986_v42  ;;  %v1519_v28 = vadd.f32 %v1258_v21, %v109_v6  ;;  %v110_v31 = vmul.f32 %v1243_v13, %v39_v15 }
  0x2c   :  { %v990_v51 = vpop.eup %989  ;;  %1009 = vrcp.f32 %v557_v44  ;;  %v559_v53 = vadd.f32 1.0, %v988_v46  ;;  %v895_v33 = vmul.f32 -1.442695, %v313_v63  ;;  %v111_v36 = vmul.f32 %v1243_v13, %v40_v22  ;;  %v45_v22 = vld [vmem:[%s2087_s0 + $0xe0] sm:$0xff] }
  0x2d   :  { %v992_v57 = vpop.eup %991  ;;  %1011 = vrcp.f32 %v558_v49  ;;  %v560_v60 = vadd.f32 1.0, %v990_v51  ;;  %v896_v38 = vmul.f32 -1.442695, %v314_v23  ;;  %v242_v42 = vmax.f32 %v1507_v19, 0.0  ;;  %v323_v23 = vld [vmem:[%s2086_s1 + $0x120] sm:$0xff] }
  0x2e   :  { %v994_v61 = vpop.eup %993  ;;  %v746_v62 = vmul.f32 %v992_v57, %v234_v35  ;;  %1013 = vrcp.f32 %v559_v53  ;;  %v243_v46 = vmax.f32 %v1516_v27, 0.0  ;;  %v898_v49 = vmul.f32 -1.442695, %v316_v34  ;;  %v47_v34 = vld [vmem:[%s2087_s0 + $0xf0] sm:$0xff] }
  0x2f   :  { %v996_v3 = vpop.eup %995  ;;  %1015 = vrcp.f32 %v560_v60  ;;  %v561_v4 = vadd.f32 1.0, %v994_v61  ;;  %v244_v51 = vmax.f32 %v1519_v28, 0.0  ;;  %v899_v53 = vmul.f32 -1.442695, %v317_v39  ;;  %v320_v60 = vld [vmem:[%s2086_s1 + $0x108] sm:$0xff] }
  0x30   :  { %v998_v7 = vpop.eup %997  ;;  %810 = vst [vmem:[%s2090_s4 + $0x58] sm:$0xff] %v746_v62  ;;  %v562_v10 = vadd.f32 1.0, %v996_v3  ;;  %1017 = vpow2.f32 %v893_v56  ;;  %v181_v57 = vadd.f32 %v1258_v21, %v110_v31  ;;  %v112_v1 = vmul.f32 %v1243_v13, %v41_v48  ;;  %v321_v3 = vld [vmem:[%s2086_s1 + $0x110] sm:$0xff]  ;;  %v46_v28 = vld [vmem:[%s2087_s0 + $0xe8] sm:$0xff] }
  0x31   :  { %v1000_v11 = vpop.eup %999  ;;  %1019 = vrcp.f32 %v561_v4  ;;  %v563_v14 = vadd.f32 1.0, %v998_v7  ;;  %v900_v2 = vmul.f32 -1.442695, %v318_v50  ;;  %v113_v6 = vmul.f32 %v1243_v13, %v42_v52 }
  0x32   :  { %v1002_v17 = vpop.eup %1001  ;;  %1021 = vrcp.f32 %v562_v10  ;;  %v564_v20 = vadd.f32 1.0, %v1000_v11  ;;  %v901_v7 = vmul.f32 -1.442695, %v319_v54  ;;  %v114_v10 = vmul.f32 %v1243_v13, %v43_v59  ;;  %v44_v11 = vld [vmem:[%s2087_s0 + $0xd8] sm:$0xff] }
  0x33   :  { %v1004_v24 = vpop.eup %1003  ;;  %v747_v25 = vmul.f32 %v1002_v17, %v235_v43  ;;  %1023 = vrcp.f32 %v563_v14  ;;  %v897_v43 = vmul.f32 -1.442695, %v315_v29  ;;  %v322_v14 = vld [vmem:[%s2086_s1 + $0x118] sm:$0xff]  ;;  %v245_v63 = vmax.f32 %v181_v57, 0.0 }
  0x34   :  { %v1006_v30 = vpop.eup %1005  ;;  %1025 = vrcp.f32 %v564_v20  ;;  %v565_v32 = vadd.f32 1.0, %v1004_v24  ;;  %v903_v17 = vmul.f32 -1.442695, %v321_v3  ;;  %v1593_v20 = vadd.f32 %v1258_v21, %v112_v1 }
  0x35   :  { %v1008_v35 = vpop.eup %1007  ;;  %811 = vst [vmem:[%s2090_s4 + $0x60] sm:$0xff] %v747_v25  ;;  %v566_v37 = vadd.f32 1.0, %v1006_v30  ;;  %1027 = vpow2.f32 %v894_v16  ;;  %v115_v27 = vmul.f32 %v1243_v13, %v44_v11  ;;  %v904_v29 = vmul.f32 -1.442695, %v322_v14 }
  0x36   :  { %v1010_v40 = vpop.eup %1009  ;;  %v748_v41 = vmul.f32 %v1008_v35, %v236_v47  ;;  %1029 = vrcp.f32 %v565_v32  ;;  %v1612_v31 = vadd.f32 %v1258_v21, %v113_v6  ;;  %v905_v39 = vmul.f32 -1.442695, %v323_v23  ;;  %v326_v23 = vld [vmem:[%s2086_s1 + $0x138] sm:$0xff] }
  0x37   :  { %v1012_v44 = vpop.eup %1011  ;;  %v749_v45 = vmul.f32 %v1010_v40, %v237_v58  ;;  %1031 = vrcp.f32 %v566_v37  ;;  %v182_v58 = vadd.f32 %v1258_v21, %v111_v36  ;;  %v116_v37 = vmul.f32 %v1243_v13, %v45_v22 }
  0x38   :  { %v1014_v26 = vpop.eup %1013  ;;  %812 = vst [vmem:[%s2090_s4 + $0x68] sm:$0xff] %v748_v41  ;;  %v750_v47 = vmul.f32 %v1012_v44, %v238_v8  ;;  %1033 = vpow2.f32 %v895_v33  ;;  %v1615_v33 = vadd.f32 %v1258_v21, %v114_v10  ;;  %v118_v48 = vmul.f32 %v1243_v13, %v47_v34 }
  0x39   :  { %v1016_v55 = vpop.eup %1015  ;;  %813 = vst [vmem:[%s2090_s4 + $0x70] sm:$0xff] %v749_v45  ;;  %v751_v56 = vmul.f32 %v1014_v26, %v239_v9  ;;  %1035 = vpow2.f32 %v896_v38  ;;  %v48_v38 = vld [vmem:[%s2087_s0 + $0xf8] sm:$0xff]  ;;  %v248_v26 = vmax.f32 %v1612_v31, 0.0  ;;  %v1646_v54 = vadd.f32 %v1258_v21, %v116_v37 }
  0x3a   :  { %v1018_v61 = vpop.eup %1017  ;;  %814 = vst [vmem:[%s2090_s4 + $0x78] sm:$0xff] %v750_v47  ;;  %v752_v62 = vmul.f32 %v1016_v55, %v240_v12  ;;  %1037 = vpow2.f32 %v897_v43  ;;  %v902_v12 = vmul.f32 -1.442695, %v320_v60  ;;  %v117_v43 = vmul.f32 %v1243_v13, %v46_v28  ;;  %v50_v60 = vld [vmem:[%s2087_s0 + $0x108] sm:$0xff] }
  0x3b   :  { %v1020_v4 = vpop.eup %1019  ;;  %815 = vst [vmem:[%s2090_s4 + $0x80] sm:$0xff] %v751_v56  ;;  %v567_v5 = vadd.f32 1.0, %v1018_v61  ;;  %1039 = vpow2.f32 %v898_v49  ;;  %v324_v49 = vld [vmem:[%s2086_s1 + $0x128] sm:$0xff]  ;;  %v49_v56 = vld [vmem:[%s2087_s0 + $0x100] sm:$0xff]  ;;  %v251_v11 = vmax.f32 %v1646_v54, 0.0  ;;  %v121_v14 = vmul.f32 %v1243_v13, %v50_v60 }
  0x3c   :  { %v1022_v8 = vpop.eup %1021  ;;  %816 = vst [vmem:[%s2090_s4 + $0x88] sm:$0xff] %v752_v62  ;;  %v753_v9 = vmul.f32 %v1020_v4, %v241_v18  ;;  %1041 = vpow2.f32 %v899_v53  ;;  %v246_v18 = vmax.f32 %v182_v58, 0.0  ;;  %v249_v53 = vmax.f32 %v1615_v33, 0.0  ;;  %v51_v4 = vld [vmem:[%s2087_s0 + $0x110] sm:$0xff]  ;;  %v54_v54 = vld [vmem:[%s2087_s0 + $0x128] sm:$0xff]  ;;  %v331_v33 = vld [vmem:[%s2086_s1 + $0x160] sm:$0xff] }
  0x3d   :  { %v1024_v15 = vpop.eup %1023  ;;  %v754_v16 = vmul.f32 %v1022_v8, %v242_v42  ;;  %1043 = vrcp.f32 %v567_v5  ;;  %v247_v42 = vmax.f32 %v1593_v20, 0.0  ;;  %v1652_v58 = vadd.f32 %v1258_v21, %v117_v43 }
  0x3e   :  { %v1026_v19 = vpop.eup %1025  ;;  %817 = vst [vmem:[%s2090_s4 + $0x90] sm:$0xff] %v753_v9  ;;  %v755_v0 = vmul.f32 %v1024_v15, %v243_v46  ;;  %1045 = vpow2.f32 %v900_v2  ;;  %v1633_v46 = vadd.f32 %v1258_v21, %v115_v27  ;;  %v906_v61 = vmul.f32 -1.442695, %v324_v49  ;;  %v325_v9 = vld [vmem:[%s2086_s1 + $0x130] sm:$0xff] }
  0x3f   :  { %v1028_v24 = vpop.eup %1027  ;;  %818 = vst [vmem:[%s2090_s4 + $0x98] sm:$0xff] %v754_v16  ;;  %v756_v25 = vmul.f32 %v1026_v19, %v244_v51  ;;  %1047 = vpow2.f32 %v901_v7  ;;  %v119_v51 = vmul.f32 %v1243_v13, %v48_v38  ;;  %v1659_v2 = vadd.f32 %v1258_v21, %v118_v48  ;;  %v52_v19 = vld [vmem:[%s2087_s0 + $0x118] sm:$0xff] }
  0x40   :  { %v1030_v30 = vpop.eup %1029  ;;  %819 = vst [vmem:[%s2090_s4 + $0xa0] sm:$0xff] %v755_v0  ;;  %v568_v32 = vadd.f32 1.0, %v1028_v24  ;;  %1049 = vpow2.f32 %v902_v12  ;;  %v250_v1 = vmax.f32 %v1633_v46, 0.0  ;;  %v120_v8 = vmul.f32 %v1243_v13, %v49_v56  ;;  %v330_v46 = vld [vmem:[%s2086_s1 + $0x158] sm:$0xff] }
  0x41   :  { %v1032_v35 = vpop.eup %1031  ;;  %820 = vst [vmem:[%s2090_s4 + $0xa8] sm:$0xff] %v756_v25  ;;  %v757_v36 = vmul.f32 %v1030_v30, %v245_v63  ;;  %1051 = vpow2.f32 %v903_v17  ;;  %v1665_v7 = vadd.f32 %v1258_v21, %v119_v51  ;;  %v252_v16 = vmax.f32 %v1652_v58, 0.0  ;;  %v327_v30 = vld [vmem:[%s2086_s1 + $0x140] sm:$0xff] }
  0x42   :  { %v1034_v40 = vpop.eup %1033  ;;  %v758_v41 = vmul.f32 %v1032_v35, %v246_v18  ;;  %1053 = vrcp.f32 %v568_v32  ;;  %v122_v17 = vmul.f32 %v1243_v13, %v51_v4  ;;  %v253_v18 = vmax.f32 %v1659_v2, 0.0  ;;  %v55_v2 = vld [vmem:[%s2087_s0 + $0x130] sm:$0xff] }
  0x43   :  { %v1036_v44 = vpop.eup %1035  ;;  %821 = vst [vmem:[%s2090_s4 + $0xb0] sm:$0xff] %v757_v36  ;;  %v569_v45 = vadd.f32 1.0, %v1034_v40  ;;  %1055 = vpow2.f32 %v904_v29  ;;  %v907_v22 = vmul.f32 -1.442695, %v325_v9  ;;  %v254_v25 = vmax.f32 %v1665_v7, 0.0  ;;  %v53_v29 = vld [vmem:[%s2087_s0 + $0x120] sm:$0xff] }
  0x44   :  { %v1038_v50 = vpop.eup %1037  ;;  %822 = vst [vmem:[%s2090_s4 + $0xb8] sm:$0xff] %v758_v41  ;;  %v570_v47 = vadd.f32 1.0, %v1036_v44  ;;  %1057 = vpow2.f32 %v905_v39  ;;  %v1687_v27 = vadd.f32 %v1258_v21, %v120_v8  ;;  %v1696_v34 = vadd.f32 %v1258_v21, %v121_v14  ;;  %v328_v36 = vld [vmem:[%s2086_s1 + $0x148] sm:$0xff]  ;;  %v329_v41 = vld [vmem:[%s2086_s1 + $0x150] sm:$0xff]  ;;  %v56_v8 = vld [vmem:[%s2087_s0 + $0x138] sm:$0xff] }
  0x45   :  { %v1040_v52 = vpop.eup %1039  ;;  %1059 = vrcp.f32 %v569_v45  ;;  %v571_v55 = vadd.f32 1.0, %v1038_v50  ;;  %v123_v35 = vmul.f32 %v1243_v13, %v52_v19  ;;  %v1703_v38 = vadd.f32 %v1258_v21, %v122_v17  ;;  %v57_v19 = vld [vmem:[%s2087_s0 + $0x140] sm:$0xff] }
  0x46   :  { %v1042_v57 = vpop.eup %1041  ;;  %1061 = vrcp.f32 %v570_v47  ;;  %v572_v59 = vadd.f32 1.0, %v1040_v52  ;;  %v908_v40 = vmul.f32 -1.442695, %v326_v23  ;;  %v124_v43 = vmul.f32 %v1243_v13, %v53_v29  ;;  %v336_v29 = vld [vmem:[%s2086_s1 + $0x188] sm:$0xff] }
  0x47   :  { %v1044_v62 = vpop.eup %1043  ;;  %1063 = vrcp.f32 %v571_v55  ;;  %v573_v3 = vadd.f32 1.0, %v1042_v57  ;;  %v909_v45 = vmul.f32 -1.442695, %v327_v30  ;;  %v255_v50 = vmax.f32 %v1687_v27, 0.0 }
  0x48   :  { %v1046_v5 = vpop.eup %1045  ;;  %v759_v6 = vmul.f32 %v1044_v62, %v247_v42  ;;  %1065 = vrcp.f32 %v572_v59  ;;  %v1719_v52 = vadd.f32 %v1258_v21, %v123_v35  ;;  %v911_v55 = vmul.f32 -1.442695, %v329_v41  ;;  %v332_v59 = vld [vmem:[%s2086_s1 + $0x168] sm:$0xff] }
  0x49   :  { %v1048_v10 = vpop.eup %1047  ;;  %1067 = vrcp.f32 %v573_v3  ;;  %v574_v12 = vadd.f32 1.0, %v1046_v5  ;;  %v256_v57 = vmax.f32 %v1696_v34, 0.0  ;;  %v912_v58 = vmul.f32 -1.442695, %v330_v46  ;;  %v333_v3 = vld [vmem:[%s2086_s1 + $0x170] sm:$0xff]  ;;  %v58_v34 = vld [vmem:[%s2087_s0 + $0x148] sm:$0xff] }
  0x4a   :  { %v1050_v15 = vpop.eup %1049  ;;  %823 = vst [vmem:[%s2090_s4 + $0xc0] sm:$0xff] %v759_v6  ;;  %v575_v63 = vadd.f32 1.0, %v1048_v10  ;;  %1069 = vpow2.f32 %v906_v61  ;;  %v257_v62 = vmax.f32 %v1703_v38, 0.0  ;;  %v125_v6 = vmul.f32 %v1243_v13, %v54_v54  ;;  %v334_v10 = vld [vmem:[%s2086_s1 + $0x178] sm:$0xff]  ;;  %v337_v54 = vld [vmem:[%s2086_s1 + $0x190] sm:$0xff] }
  0x4b   :  { %v1052_v0 = vpop.eup %1051  ;;  %1071 = vrcp.f32 %v574_v12  ;;  %v576_v20 = vadd.f32 1.0, %v1050_v15  ;;  %v913_v9 = vmul.f32 -1.442695, %v331_v33  ;;  %v258_v12 = vmax.f32 %v1719_v52, 0.0 }
  0x4c   :  { %v1054_v24 = vpop.eup %1053  ;;  %1073 = vrcp.f32 %v575_v63  ;;  %v577_v28 = vadd.f32 1.0, %v1052_v0  ;;  %v914_v15 = vmul.f32 -1.442695, %v332_v59  ;;  %v126_v17 = vmul.f32 %v1243_v13, %v55_v2  ;;  %v62_v2 = vld [vmem:[%s2087_s0 + $0x168] sm:$0xff] }
  0x4d   :  { %v1056_v31 = vpop.eup %1055  ;;  %v760_v32 = vmul.f32 %v1054_v24, %v248_v26  ;;  %1075 = vrcp.f32 %v576_v20  ;;  %v910_v26 = vmul.f32 -1.442695, %v328_v36  ;;  %v915_v0 = vmul.f32 -1.442695, %v333_v3  ;;  %v63_v3 = vld [vmem:[%s2087_s0 + $0x170] sm:$0xff] }
  0x4e   :  { %v1058_v37 = vpop.eup %1057  ;;  %1077 = vrcp.f32 %v577_v28  ;;  %v578_v39 = vadd.f32 1.0, %v1056_v31  ;;  %v127_v23 = vmul.f32 %v1243_v13, %v56_v8  ;;  %v916_v24 = vmul.f32 -1.442695, %v334_v10  ;;  %v64_v10 = vld [vmem:[%s2087_s0 + $0x178] sm:$0xff] }
  0x4f   :  { %v1060_v42 = vpop.eup %1059  ;;  %824 = vst [vmem:[%s2090_s4 + $0xc8] sm:$0xff] %v760_v32  ;;  %v579_v44 = vadd.f32 1.0, %v1058_v37  ;;  %1079 = vpow2.f32 %v907_v22  ;;  %v1776_v28 = vadd.f32 %v1258_v21, %v125_v6  ;;  %v128_v32 = vmul.f32 %v1243_v13, %v57_v19 }
  0x50   :  { %v1062_v48 = vpop.eup %1061  ;;  %v761_v49 = vmul.f32 %v1060_v42, %v249_v53  ;;  %1081 = vrcp.f32 %v578_v39  ;;  %v1792_v37 = vadd.f32 %v1258_v21, %v126_v17  ;;  %v59_v39 = vld [vmem:[%s2087_s0 + $0x150] sm:$0xff]  ;;  %v1801_v41 = vadd.f32 %v1258_v21, %v127_v23  ;;  %v60_v42 = vld [vmem:[%s2087_s0 + $0x158] sm:$0xff] }
  0x51   :  { %v1064_v47 = vpop.eup %1063  ;;  %v762_v51 = vmul.f32 %v1062_v48, %v250_v1  ;;  %1083 = vrcp.f32 %v579_v44  ;;  %v195_v1 = vadd.f32 %v1258_v21, %v124_v43  ;;  %v61_v43 = vld [vmem:[%s2087_s0 + $0x160] sm:$0xff]  ;;  %v918_v44 = vmul.f32 -1.442695, %v336_v29 }
  0x52   :  { %v1066_v53 = vpop.eup %1065  ;;  %825 = vst [vmem:[%s2090_s4 + $0xd0] sm:$0xff] %v761_v49  ;;  %v763_v56 = vmul.f32 %v1064_v47, %v251_v11  ;;  %1085 = vpow2.f32 %v908_v40  ;;  %v260_v48 = vmax.f32 %v1776_v28, 0.0  ;;  %v1813_v21 = vld [vmem:[%s2088_s2] ss:$0 sm:$0xff]  ;;  %v262_v59 = vmax.f32 %v1801_v41, 0.0 }
  0x53   :  { %v1068_v60 = vpop.eup %1067  ;;  %826 = vst [vmem:[%s2090_s4 + $0xd8] sm:$0xff] %v762_v51  ;;  %v764_v61 = vmul.f32 %v1066_v53, %v252_v16  ;;  %1087 = vpow2.f32 %v909_v45  ;;  %v259_v27 = vmax.f32 %v195_v1, 0.0  ;;  %v129_v49 = vmul.f32 %v1813_v21, %v58_v34  ;;  %v1822_v47 = vld [vmem:[%s2089_s3] ss:$0 sm:$0xff] }
  0x54   :  { %v1070_v4 = vpop.eup %1069  ;;  %827 = vst [vmem:[%s2090_s4 + $0xe0] sm:$0xff] %v763_v56  ;;  %v765_v5 = vmul.f32 %v1068_v60, %v253_v18  ;;  %1089 = vpow2.f32 %v910_v26  ;;  %v335_v18 = vld [vmem:[%s2086_s1 + $0x180] sm:$0xff]  ;;  %v1825_v51 = vadd.f32 %v1822_v47, %v128_v32  ;;  %v130_v52 = vmul.f32 %v1813_v21, %v59_v39 }
  0x55   :  { %v1072_v11 = vpop.eup %1071  ;;  %828 = vst [vmem:[%s2090_s4 + $0xe8] sm:$0xff] %v764_v61  ;;  %v580_v14 = vadd.f32 1.0, %v1070_v4  ;;  %1091 = vpow2.f32 %v911_v55  ;;  %v917_v35 = vmul.f32 -1.442695, %v335_v18  ;;  %v131_v53 = vmul.f32 %v1813_v21, %v60_v42  ;;  %v339_v28 = vld [vmem:[%s2086_s1 + $0x1a0] sm:$0xff] }
  0x56   :  { %v1074_v16 = vpop.eup %1073  ;;  %829 = vst [vmem:[%s2090_s4 + $0xf0] sm:$0xff] %v765_v5  ;;  %v766_v63 = vmul.f32 %v1072_v11, %v254_v25  ;;  %1093 = vpow2.f32 %v912_v58  ;;  %v132_v56 = vmul.f32 %v1813_v21, %v61_v43  ;;  %v261_v58 = vmax.f32 %v1792_v37, 0.0  ;;  %v65_v34 = vld [vmem:[%s2087_s0 + $0x180] sm:$0xff] }
  0x57   :  { %v1076_v20 = vpop.eup %1075  ;;  %v767_v22 = vmul.f32 %v1074_v16, %v255_v50  ;;  %1095 = vrcp.f32 %v580_v14  ;;  %v919_v4 = vmul.f32 -1.442695, %v337_v54  ;;  %v263_v6 = vmax.f32 %v1825_v51, 0.0  ;;  %v338_v16 = vld [vmem:[%s2086_s1 + $0x198] sm:$0xff]  ;;  %v343_v51 = vld [vmem:[%s2086_s1 + $0x1c0] sm:$0xff] }
  0x58   :  { %v1078_v7 = vpop.eup %1077  ;;  %830 = vst [vmem:[%s2090_s4 + $0xf8] sm:$0xff] %v766_v63  ;;  %v768_v25 = vmul.f32 %v1076_v20, %v256_v57  ;;  %1097 = vpow2.f32 %v913_v9  ;;  %v1849_v8 = vadd.f32 %v1822_v47, %v130_v52  ;;  %v1855_v14 = vadd.f32 %v1822_v47, %v131_v53 }
  0x59   :  { %v1080_v30 = vpop.eup %1079  ;;  %831 = vst [vmem:[%s2090_s4 + $0x100] sm:$0xff] %v767_v22  ;;  %v769_v31 = vmul.f32 %v1078_v7, %v257_v62  ;;  %1099 = vpow2.f32 %v914_v15  ;;  %v1839_v62 = vadd.f32 %v1822_v47, %v129_v49  ;;  %v1858_v15 = vadd.f32 %v1822_v47, %v132_v56 }
  0x5a   :  { %v1082_v36 = vpop.eup %1081  ;;  %832 = vst [vmem:[%s2090_s4 + $0x108] sm:$0xff] %v768_v25  ;;  %v581_v38 = vadd.f32 1.0, %v1080_v30  ;;  %1101 = vpow2.f32 %v915_v0  ;;  %v133_v19 = vmul.f32 %v1813_v21, %v62_v2  ;;  %v134_v0 = vmul.f32 %v1813_v21, %v63_v3  ;;  %v345_v2 = vld [vmem:[%s2086_s1 + $0x1d0] sm:$0xff] }
  0x5b   :  { %v1084_v13 = vpop.eup %1083  ;;  %833 = vst [vmem:[%s2090_s4 + $0x110] sm:$0xff] %v769_v31  ;;  %v770_v40 = vmul.f32 %v1082_v36, %v258_v12  ;;  %1103 = vpow2.f32 %v916_v24  ;;  %v264_v20 = vmax.f32 %v1839_v62, 0.0  ;;  %v135_v23 = vmul.f32 %v1813_v21, %v64_v10  ;;  %v67_v62 = vld [vmem:[%s2087_s0 + $0x190] sm:$0xff] }
  0x5c   :  { %v1086_v45 = vpop.eup %1085  ;;  %v771_v46 = vmul.f32 %v1084_v13, %v259_v27  ;;  %1105 = vrcp.f32 %v581_v38  ;;  %v265_v7 = vmax.f32 %v1849_v8, 0.0  ;;  %v920_v27 = vmul.f32 -1.442695, %v338_v16  ;;  %v66_v13 = vld [vmem:[%s2087_s0 + $0x188] sm:$0xff]  ;;  %v346_v8 = vld [vmem:[%s2086_s1 + $0x1d8] sm:$0xff] }
  0x5d   :  { %v1088_v50 = vpop.eup %1087  ;;  %834 = vst [vmem:[%s2090_s4 + $0x118] sm:$0xff] %v770_v40  ;;  %v582_v26 = vadd.f32 1.0, %v1086_v45  ;;  %1107 = vpow2.f32 %v917_v35  ;;  %v266_v30 = vmax.f32 %v1855_v14, 0.0  ;;  %v267_v31 = vmax.f32 %v1858_v15, 0.0  ;;  %v340_v35 = vld [vmem:[%s2086_s1 + $0x1a8] sm:$0xff]  ;;  %v341_v40 = vld [vmem:[%s2086_s1 + $0x1b0] sm:$0xff] }
  0x5e   :  { %v1090_v55 = vpop.eup %1089  ;;  %835 = vst [vmem:[%s2090_s4 + $0x120] sm:$0xff] %v771_v46  ;;  %v583_v33 = vadd.f32 1.0, %v1088_v50  ;;  %1109 = vpow2.f32 %v918_v44  ;;  %v1883_v38 = vadd.f32 %v1822_v47, %v133_v19  ;;  %v1886_v39 = vadd.f32 %v1822_v47, %v134_v0  ;;  %v342_v46 = vld [vmem:[%s2086_s1 + $0x1b8] sm:$0xff]  ;;  %v347_v14 = vld [vmem:[%s2086_s1 + $0x1e0] sm:$0xff] }
  0x5f   :  { %v1092_v57 = vpop.eup %1091  ;;  %1111 = vrcp.f32 %v582_v26  ;;  %v584_v60 = vadd.f32 1.0, %v1090_v55  ;;  %v1895_v43 = vadd.f32 %v1822_v47, %v135_v23  ;;  %v921_v45 = vmul.f32 -1.442695, %v339_v28 }
  0x60   :  { %v1094_v61 = vpop.eup %1093  ;;  %1113 = vrcp.f32 %v583_v33  ;;  %v585_v1 = vadd.f32 1.0, %v1092_v57  ;;  %v136_v49 = vmul.f32 %v1813_v21, %v65_v34  ;;  %v922_v26 = vmul.f32 -1.442695, %v340_v35 }
  0x61   :  { %v1096_v5 = vpop.eup %1095  ;;  %1115 = vrcp.f32 %v584_v60  ;;  %v586_v9 = vadd.f32 1.0, %v1094_v61  ;;  %v137_v55 = vmul.f32 %v1813_v21, %v66_v13  ;;  %v923_v33 = vmul.f32 -1.442695, %v341_v40  ;;  %v344_v60 = vld [vmem:[%s2086_s1 + $0x1c8] sm:$0xff] }
  0x62   :  { %v1098_v11 = vpop.eup %1097  ;;  %v772_v12 = vmul.f32 %v1096_v5, %v260_v48  ;;  %1117 = vrcp.f32 %v585_v1  ;;  %v268_v57 = vmax.f32 %v1883_v38, 0.0  ;;  %v925_v1 = vmul.f32 -1.442695, %v343_v51  ;;  %v72_v51 = vld [vmem:[%s2087_s0 + $0x1b8] sm:$0xff] }
  0x63   :  { %v1100_v63 = vpop.eup %1099  ;;  %1119 = vrcp.f32 %v586_v9  ;;  %v587_v17 = vadd.f32 1.0, %v1098_v11  ;;  %v270_v5 = vmax.f32 %v1895_v43, 0.0  ;;  %v208_v11 = vadd.f32 %v1822_v47, %v137_v55  ;;  %v70_v43 = vld [vmem:[%s2087_s0 + $0x1a8] sm:$0xff] }
  0x64   :  { %v1102_v18 = vpop.eup %1101  ;;  %836 = vst [vmem:[%s2090_s4 + $0x128] sm:$0xff] %v772_v12  ;;  %v588_v22 = vadd.f32 1.0, %v1100_v63  ;;  %1121 = vpow2.f32 %v919_v4  ;;  %v926_v12 = vmul.f32 -1.442695, %v344_v60  ;;  %v138_v63 = vmul.f32 %v1813_v21, %v67_v62 }
  0x65   :  { %v1104_v24 = vpop.eup %1103  ;;  %1123 = vrcp.f32 %v587_v17  ;;  %v589_v25 = vadd.f32 1.0, %v1102_v18  ;;  %v927_v19 = vmul.f32 -1.442695, %v345_v2 }
  0x66   :  { %v1106_v29 = vpop.eup %1105  ;;  %1125 = vrcp.f32 %v588_v22  ;;  %v590_v32 = vadd.f32 1.0, %v1104_v24  ;;  %v348_v22 = vld [vmem:[%s2086_s1 + $0x1e8] sm:$0xff]  ;;  %v209_v35 = vadd.f32 %v1822_v47, %v138_v63 }
  0x67   :  { %v1108_v36 = vpop.eup %1107  ;;  %v773_v37 = vmul.f32 %v1106_v29, %v261_v58  ;;  %1127 = vrcp.f32 %v589_v25  ;;  %v924_v58 = vmul.f32 -1.442695, %v342_v46  ;;  %v68_v25 = vld [vmem:[%s2087_s0 + $0x198] sm:$0xff]  ;;  %v272_v29 = vmax.f32 %v208_v11, 0.0  ;;  %v75_v11 = vld [vmem:[%s2087_s0 + $0x1d0] sm:$0xff] }
  0x68   :  { %v1110_v42 = vpop.eup %1109  ;;  %1129 = vrcp.f32 %v590_v32  ;;  %v591_v44 = vadd.f32 1.0, %v1108_v36  ;;  %v930_v36 = vmul.f32 -1.442695, %v348_v22  ;;  %v139_v38 = vmul.f32 %v1813_v21, %v68_v25  ;;  %v77_v22 = vld [vmem:[%s2087_s0 + $0x1e0] sm:$0xff] }
  0x69   :  { %v1112_v48 = vpop.eup %1111  ;;  %837 = vst [vmem:[%s2090_s4 + $0x130] sm:$0xff] %v773_v37  ;;  %v592_v50 = vadd.f32 1.0, %v1110_v42  ;;  %1131 = vpow2.f32 %v920_v27  ;;  %v929_v27 = vmul.f32 -1.442695, %v347_v14 }
  0x6a   :  { %v1114_v52 = vpop.eup %1113  ;;  %v774_v54 = vmul.f32 %v1112_v48, %v262_v59  ;;  %1133 = vrcp.f32 %v591_v44  ;;  %v269_v59 = vmax.f32 %v1886_v39, 0.0  ;;  %v71_v48 = vld [vmem:[%s2087_s0 + $0x1b0] sm:$0xff]  ;;  %v210_v55 = vadd.f32 %v1822_v47, %v139_v38 }
  0x6b   :  { %v1116_v53 = vpop.eup %1115  ;;  %v775_v56 = vmul.f32 %v1114_v52, %v263_v6  ;;  %1135 = vrcp.f32 %v592_v50  ;;  %v207_v6 = vadd.f32 %v1822_v47, %v136_v49  ;;  %v273_v50 = vmax.f32 %v209_v35, 0.0  ;;  %v350_v52 = vld [vmem:[%s2086_s1 + $0x1f8] sm:$0xff] }
  0x6c   :  { %v1118_v61 = vpop.eup %1117  ;;  %838 = vst [vmem:[%s2090_s4 + $0x138] sm:$0xff] %v774_v54  ;;  %v776_v41 = vmul.f32 %v1116_v53, %v264_v20  ;;  %1137 = vpow2.f32 %v921_v45  ;;  %v928_v20 = vmul.f32 -1.442695, %v346_v8  ;;  %v142_v60 = vmul.f32 %v1813_v21, %v71_v48 }
  0x6d   :  { %v1120_v3 = vpop.eup %1119  ;;  %839 = vst [vmem:[%s2090_s4 + $0x140] sm:$0xff] %v775_v56  ;;  %v777_v4 = vmul.f32 %v1118_v61, %v265_v7  ;;  %1139 = vpow2.f32 %v922_v26  ;;  %v271_v7 = vmax.f32 %v207_v6, 0.0  ;;  %v73_v56 = vld [vmem:[%s2087_s0 + $0x1c0] sm:$0xff]  ;;  %v148_v35 = vmul.f32 %v1813_v21, %v77_v22 }
  0x6e   :  { %v1122_v9 = vpop.eup %1121  ;;  %840 = vst [vmem:[%s2090_s4 + $0x148] sm:$0xff] %v776_v41  ;;  %v778_v10 = vmul.f32 %v1120_v3, %v266_v30  ;;  %1141 = vpow2.f32 %v923_v33  ;;  %v69_v30 = vld [vmem:[%s2087_s0 + $0x1a0] sm:$0xff]  ;;  %v141_v33 = vmul.f32 %v1813_v21, %v70_v43  ;;  %v144_v3 = vmul.f32 %v1813_v21, %v73_v56 }
  0x6f   :  { %v1124_v16 = vpop.eup %1123  ;;  %841 = vst [vmem:[%s2090_s4 + $0x150] sm:$0xff] %v777_v4  ;;  %v593_v17 = vadd.f32 1.0, %v1122_v9  ;;  %1143 = vpow2.f32 %v924_v58  ;;  %v140_v42 = vmul.f32 %v1813_v21, %v69_v30  ;;  %v274_v9 = vmax.f32 %v210_v55, 0.0  ;;  %v78_v30 = vld [vmem:[%s2087_s0 + $0x1e8] sm:$0xff] }
  0x70   :  { %v1126_v0 = vpop.eup %1125  ;;  %842 = vst [vmem:[%s2090_s4 + $0x158] sm:$0xff] %v778_v10  ;;  %v779_v18 = vmul.f32 %v1124_v16, %v267_v31  ;;  %1145 = vpow2.f32 %v925_v1  ;;  %v349_v31 = vld [vmem:[%s2086_s1 + $0x1f0] sm:$0xff]  ;;  %v932_v1 = vmul.f32 -1.442695, %v350_v52  ;;  %v212_v10 = vadd.f32 %v1822_v47, %v141_v33 }
  0x71   :  { %v1128_v23 = vpop.eup %1127  ;;  %v780_v24 = vmul.f32 %v1126_v0, %v268_v57  ;;  %1147 = vrcp.f32 %v593_v17  ;;  %v931_v44 = vmul.f32 -1.442695, %v349_v31  ;;  %v1999_v58 = vadd.f32 %v1822_v47, %v140_v42  ;;  %v76_v17 = vld [vmem:[%s2087_s0 + $0x1d8] sm:$0xff] }
  0x72   :  { %v1130_v28 = vpop.eup %1129  ;;  %843 = vst [vmem:[%s2090_s4 + $0x160] sm:$0xff] %v779_v18  ;;  %v781_v15 = vmul.f32 %v1128_v23, %v269_v59  ;;  %1149 = vpow2.f32 %v926_v12  ;;  %v143_v59 = vmul.f32 %v1813_v21, %v72_v51  ;;  %v213_v16 = vadd.f32 %v1822_v47, %v142_v60  ;;  %v80_v60 = vld [vmem:[%s2087_s0 + $0x1f8] sm:$0xff] }
  0x73   :  { %v1132_v32 = vpop.eup %1131  ;;  %844 = vst [vmem:[%s2090_s4 + $0x168] sm:$0xff] %v780_v24  ;;  %v782_v34 = vmul.f32 %v1130_v28, %v270_v5  ;;  %1151 = vpow2.f32 %v927_v19  ;;  %v74_v5 = vld [vmem:[%s2087_s0 + $0x1c8] sm:$0xff]  ;;  %v275_v14 = vmax.f32 %v1999_v58, 0.0  ;;  %v215_v24 = vadd.f32 %v1822_v47, %v144_v3 }
  0x74   :  { %v1134_v37 = vpop.eup %1133  ;;  %845 = vst [vmem:[%s2090_s4 + $0x170] sm:$0xff] %v781_v15  ;;  %v594_v39 = vadd.f32 1.0, %v1132_v32  ;;  %1153 = vpow2.f32 %v928_v20  ;;  %v214_v0 = vadd.f32 %v1822_v47, %v143_v59  ;;  %v145_v18 = vmul.f32 %v1813_v21, %v74_v5 }
  0x75   :  { %v1136_v13 = vpop.eup %1135  ;;  %846 = vst [vmem:[%s2090_s4 + $0x178] sm:$0xff] %v782_v34  ;;  %v783_v40 = vmul.f32 %v1134_v37, %v271_v7  ;;  %1155 = vpow2.f32 %v929_v27  ;;  %v146_v7 = vmul.f32 %v1813_v21, %v75_v11  ;;  %v276_v28 = vmax.f32 %v212_v10, 0.0 }
  0x76   :  { %v1138_v45 = vpop.eup %1137  ;;  %v784_v46 = vmul.f32 %v1136_v13, %v272_v29  ;;  %1157 = vrcp.f32 %v594_v39  ;;  %v147_v15 = vmul.f32 %v1813_v21, %v76_v17  ;;  %v277_v34 = vmax.f32 %v213_v16, 0.0 }
  0x77   :  { %v1140_v49 = vpop.eup %1139  ;;  %847 = vst [vmem:[%s2090_s4 + $0x180] sm:$0xff] %v783_v40  ;;  %v595_v26 = vadd.f32 1.0, %v1138_v45  ;;  %1159 = vpow2.f32 %v930_v36  ;;  %v79_v36 = vld [vmem:[%s2087_s0 + $0x1f0] sm:$0xff]  ;;  %v278_v38 = vmax.f32 %v214_v0, 0.0  ;;  %v216_v39 = vadd.f32 %v1822_v47, %v145_v18 }
  0x78   :  { %v1142_v54 = vpop.eup %1141  ;;  %848 = vst [vmem:[%s2090_s4 + $0x188] sm:$0xff] %v784_v46  ;;  %v596_v53 = vadd.f32 1.0, %v1140_v49  ;;  %1161 = vpow2.f32 %v931_v44  ;;  %v279_v42 = vmax.f32 %v215_v24, 0.0  ;;  %v217_v43 = vadd.f32 %v1822_v47, %v146_v7 }
  0x79   :  { %v1144_v57 = vpop.eup %1143  ;;  %1163 = vrcp.f32 %v595_v26  ;;  %v597_v61 = vadd.f32 1.0, %v1142_v54  ;;  %v149_v44 = vmul.f32 %v1813_v21, %v78_v30  ;;  %v218_v49 = vadd.f32 %v1822_v47, %v147_v15 }
  0x7a   :  { %v1146_v41 = vpop.eup %1145  ;;  %1165 = vrcp.f32 %v596_v53  ;;  %v598_v62 = vadd.f32 1.0, %v1144_v57  ;;  %v219_v52 = vadd.f32 %v1822_v47, %v148_v35  ;;  %v280_v33 = vmax.f32 %v216_v39, 0.0 }
  0x7b   :  { %v1148_v2 = vpop.eup %1147  ;;  %1167 = vrcp.f32 %v597_v61  ;;  %v599_v4 = vadd.f32 1.0, %v1146_v41  ;;  %v281_v57 = vmax.f32 %v217_v43, 0.0  ;;  %v220_v58 = vadd.f32 %v1822_v47, %v149_v44 }
  0x7c   :  { %v1150_v6 = vpop.eup %1149  ;;  %v785_v8 = vmul.f32 %v1148_v2, %v273_v50  ;;  %1169 = vrcp.f32 %v598_v62  ;;  %v150_v50 = vmul.f32 %v1813_v21, %v79_v36  ;;  %v282_v59 = vmax.f32 %v218_v49, 0.0 }
  0x7d   :  { %v1152_v12 = vpop.eup %1151  ;;  %1171 = vrcp.f32 %v599_v4  ;;  %v600_v63 = vadd.f32 1.0, %v1150_v6  ;;  %v283_v2 = vmax.f32 %v219_v52, 0.0  ;;  %v151_v6 = vmul.f32 %v1813_v21, %v80_v60 }
  0x7e   :  { %v1154_v19 = vpop.eup %1153  ;;  %849 = vst [vmem:[%s2090_s4 + $0x190] sm:$0xff] %v785_v8  ;;  %v601_v20 = vadd.f32 1.0, %v1152_v12  ;;  %1173 = vpow2.f32 %v932_v1  ;;  %v221_v62 = vadd.f32 %v1822_v47, %v150_v50  ;;  %v284_v10 = vmax.f32 %v220_v58, 0.0 }
  0x7f   :  { %v1156_v23 = vpop.eup %1155  ;;  %1175 = vrcp.f32 %v600_v63  ;;  %v602_v25 = vadd.f32 1.0, %v1154_v19  ;;  %v222_v21 = vadd.f32 %v1822_v47, %v151_v6 }
  0x80   :  { %v1158_v27 = vpop.eup %1157  ;;  %1177 = vrcp.f32 %v601_v20  ;;  %v603_v29 = vadd.f32 1.0, %v1156_v23 }
  0x81   :  { %v1160_v31 = vpop.eup %1159  ;;  %v786_v32 = vmul.f32 %v1158_v27, %v274_v9  ;;  %1179 = vrcp.f32 %v602_v25  ;;  %v286_v18 = vmax.f32 %v222_v21, 0.0 }
  0x82   :  { %v1162_v37 = vpop.eup %1161  ;;  %1181 = vrcp.f32 %v603_v29  ;;  %v604_v13 = vadd.f32 1.0, %v1160_v31 }
  0x83   :  { %v1164_v40 = vpop.eup %1163  ;;  %850 = vst [vmem:[%s2090_s4 + $0x198] sm:$0xff] %v786_v32  ;;  %v605_v45 = vadd.f32 1.0, %v1162_v37 }
  0x84   :  { %v1166_v46 = vpop.eup %1165  ;;  %v787_v48 = vmul.f32 %v1164_v40, %v275_v14  ;;  %1183 = vrcp.f32 %v604_v13  ;;  %v285_v14 = vmax.f32 %v221_v62, 0.0 }
  0x85   :  { %v1168_v26 = vpop.eup %1167  ;;  %v788_v51 = vmul.f32 %v1166_v46, %v276_v28  ;;  %1185 = vrcp.f32 %v605_v45 }
  0x86   :  { %v1170_v54 = vpop.eup %1169  ;;  %851 = vst [vmem:[%s2090_s4 + $0x1a0] sm:$0xff] %v787_v48  ;;  %v789_v55 = vmul.f32 %v1168_v26, %v277_v34 }
  0x87   :  { %v1172_v53 = vpop.eup %1171  ;;  %852 = vst [vmem:[%s2090_s4 + $0x1a8] sm:$0xff] %v788_v51  ;;  %v790_v56 = vmul.f32 %v1170_v54, %v278_v38 }
  0x88   :  { %v1174_v61 = vpop.eup %1173  ;;  %853 = vst [vmem:[%s2090_s4 + $0x1b0] sm:$0xff] %v789_v55  ;;  %v791_v41 = vmul.f32 %v1172_v53, %v279_v42 }
  0x89   :  { %v1176_v1 = vpop.eup %1175  ;;  %854 = vst [vmem:[%s2090_s4 + $0x1b8] sm:$0xff] %v790_v56  ;;  %v606_v3 = vadd.f32 1.0, %v1174_v61 }
  0x8a   :  { %v1178_v4 = vpop.eup %1177  ;;  %855 = vst [vmem:[%s2090_s4 + $0x1c0] sm:$0xff] %v791_v41  ;;  %v792_v5 = vmul.f32 %v1176_v1, %v280_v33 }
  0x8b   :  { %v1180_v8 = vpop.eup %1179  ;;  %v793_v9 = vmul.f32 %v1178_v4, %v281_v57  ;;  %1187 = vrcp.f32 %v606_v3 }
  0x8c   :  { %v1182_v11 = vpop.eup %1181  ;;  %856 = vst [vmem:[%s2090_s4 + $0x1c8] sm:$0xff] %v792_v5  ;;  %v794_v12 = vmul.f32 %v1180_v8, %v282_v59 }
  0x8d   :  { %857 = vst [vmem:[%s2090_s4 + $0x1d0] sm:$0xff] %v793_v9  ;;  %v795_v16 = vmul.f32 %v1182_v11, %v283_v2 }
  0x8e   :  { %v1184_v63 = vpop.eup %1183  ;;  %858 = vst [vmem:[%s2090_s4 + $0x1d8] sm:$0xff] %v794_v12 }
  0x8f   :  { %v1186_v17 = vpop.eup %1185  ;;  %859 = vst [vmem:[%s2090_s4 + $0x1e0] sm:$0xff] %v795_v16  ;;  %v796_v19 = vmul.f32 %v1184_v63, %v284_v10 }
  0x90   :  { %v797_v0 = vmul.f32 %v1186_v17, %v285_v14 }
  0x91   :  { %860 = vst [vmem:[%s2090_s4 + $0x1e8] sm:$0xff] %v796_v19 }
  0x92   :  { %861 = vst [vmem:[%s2090_s4 + $0x1f0] sm:$0xff] %v797_v0 }
  0x95   :  { %v1188_v20 = vpop.eup %1187 }
  0x96   :  { %v798_v22 = vmul.f32 %v1188_v20, %v286_v18 }
  0x98   :  { %862 = vst [vmem:[%s2090_s4 + $0x1f8] sm:$0xff] %v798_v22 }

// kernel: gated_conv2d_with_act.2
= control target key start
LH: loop header
LB: loop body
LE: loop exit
PB: predicated region body
PF: predicated region fallthrough
CT: control target
= control target key end

     0   :  { %s5671_s30 = smov 0   ;;  %s8120_s0 = inlined_call_operand.vmem [shape: f32[2,18,18,128], index: 0, kind: input, shape index: {}]   ;;  %s8121_s1 = inlined_call_operand.vmem [shape: bf16[9,128,128], index: 1, kind: input, shape index: {}]   ;;  %s8122_s2 = inlined_call_operand.vmem [shape: f32[1,128], index: 2, kind: input, shape index: {}]   ;;  %s8123_s3 = inlined_call_operand.vmem [shape: f32[9,128], index: 3, kind: input, shape index: {}]   ;;  %s8124_s4 = inlined_call_operand.vmem [shape: f32[1,128], index: 4, kind: input, shape index: {}]   ;;  %s8125_s5 = inlined_call_operand.vmem [shape: bf16[128,128], index: 5, kind: input, shape index: {}]   ;;  %s8126_s6 = inlined_call_operand.vmem [shape: f32[1,128], index: 6, kind: input, shape index: {}]   ;;  %s8127_s7 = inlined_call_operand.vmem [shape: f32[2,256,128], index: 7, kind: output, shape index: {0}]   ;;  %s8128_s8 = inlined_call_operand.vmem [shape: f32[2,256,128], index: 8, kind: output, shape index: {1}]   ;;  %s8129_s9 = inlined_call_operand.vmem [shape: f32[2,2,128], index: 9, kind: output, shape index: {2}]  }
   0x1 LB: > { %s4268_s10 = sadd.s32 4294967295, %s5619_s30   ;;  %p4272_p0 = scmp.ge.s32.totalorder %s5619_s30, 1  ;;  %s5619_s30 = sphi %s5671_s30, %s20_s30  }
   0x2   : > { %p292_p1 = scmp.lt.s32.totalorder %s5619_s30, 3 }
   0x4   : > { %p293_p2 = pnand %p4272_p0, %p292_p1 }
   0x6   : > { %296 = sbr.rel (%p293_p2) target bundleno = 601 (0x259), region = 48 }
   0xd   : > { %v5488_v0 = vld [vmem:[%s8121_s1 + $0x40] sm:$0xff]   ;;  %p337_p3 = scmp.lt.s32.totalorder %s4268_s10, 1  ;;  %v5490_v2 = vld [vmem:[%s8121_s1 + $0x48] sm:$0xff]   ;;  %v5492_v4 = vld [vmem:[%s8121_s1 + $0x50] sm:$0xff]   ;;  %vm560_vm0 = vcmask 1046528   ;;  %vm1193_vm1 = vcmask 1045504  }
   0xe   : > { %v5489_v1 = vld [vmem:[%s8121_s1 + $0x100] sm:$0xff]   ;;  %4743 = vmatprep.subr.bf16.mxu1 %v5488_v0  ;;  %v5491_v3 = vld [vmem:[%s8121_s1 + $0x108] sm:$0xff]   ;;  %v5493_v5 = vld [vmem:[%s8121_s1 + $0x110] sm:$0xff]  }
   0xf   : > { %4935 = vmatprep.subr.bf16.mxu0 %v5489_v1  ;;  %4744 = vmatpush3.bf16.msra.mxu1 %v5488_v0  ;;  %s8824_s10 = smov (!%p337_p3, %s4268_s10), 1  ;;  %v5494_v6 = vld [vmem:[%s8121_s1 + $0x58] sm:$0xff]   ;;  %v5496_v8 = vld [vmem:[%s8121_s1 + $0x60] sm:$0xff]   ;;  %v5498_v10 = vld [vmem:[%s8121_s1 + $0x68] sm:$0xff]  }
  0x10   : > { %4936 = vmatpush3.bf16.msra.mxu0 %v5489_v1  ;;  %4745 = vmatprep.subr.bf16.mxu1 %v5490_v2  ;;  %v5495_v7 = vld [vmem:[%s8121_s1 + $0x118] sm:$0xff]   ;;  %s5479_s27 = smul.u32 432, %s8824_s10  ;;  %v5497_v9 = vld [vmem:[%s8121_s1 + $0x120] sm:$0xff]   ;;  %v5499_v14 = vld [vmem:[%s8121_s1 + $0x128] sm:$0xff]   ;;  %s4501_s21 = sshll.u32 %s8824_s10, 8 }
  0x11   : > { %4937 = vmatprep.subr.bf16.mxu0 %v5491_v3  ;;  %v5500_v24 = vld [vmem:[%s8121_s1 + $0x70] sm:$0xff]   ;;  %v5769_v33 = vld [vmem:[%s8123_s3] ss:$0 sm:$0xff]  ;;  %v5502_v38 = vld [vmem:[%s8121_s1 + $0x78] sm:$0xff]   ;;  %s7945_s24 = scalar_lea.vmem %s8128_s8, %s4501_s21  ;;  %s7957_s28 = scalar_lea.vmem %s8127_s7, %s4501_s21 }
  0x12   : > { %s5715_s15 = scalar_lea.vmem %s8120_s0, %s5479_s27  ;;  %v5501_v29 = vld [vmem:[%s8121_s1 + $0x130] sm:$0xff]   ;;  %v5503_v39 = vld [vmem:[%s8121_s1 + $0x138] sm:$0xff]   ;;  %v5787_v40 = vld [vmem:[%s8123_s3 + $0x1] ss:$0 sm:$0xff]  ;;  %s4278_s29 = sshll.u32 %s8824_s10, 1 }
  0x13   : > { %4746 = vmatpush3.bf16.msra.mxu1 %v5490_v2  ;;  %v5721_v11 = vld [vmem:[%s5715_s15] sm:$0xff]  ;;  %v5724_v12 = vld [vmem:[%s5715_s15 + $0x8] sm:$0xff]  ;;  %v359_v13 = vld [vmem:[%s5715_s15 + $0x10] sm:$0x3]  ;;  %s355_s13 = scalar_lea.vmem %s8129_s9, %s4278_s29 }
  0x14   : > { %4938 = vmatpush3.bf16.msra.mxu0 %v5491_v3  ;;  %4747 = vmatprep.subr.bf16.mxu1 %v5492_v4  ;;  %v561_v15 = vrot.slane %v5721_v11, 1  ;;  %v562_v16 = vrot.slane %v5724_v12, 1  ;;  %v564_v17 = vrot.slane %v359_v13, 1  ;;  %v5733_v18 = vld [vmem:[%s5715_s15 + $0x18] sm:$0xff]  ;;  %v5736_v19 = vld [vmem:[%s5715_s15 + $0x20] sm:$0xff]  ;;  %v5748_v23 = vld [vmem:[%s5715_s15 + $0x30] sm:$0xff] }
  0x15   : > { %4939 = vmatprep.subr.bf16.mxu0 %v5493_v5  ;;  %v5745_v22 = vld [vmem:[%s5715_s15 + $0x28] sm:$0x3]  ;;  %v566_v26 = vrot.slane %v5733_v18, 1  ;;  %v5757_v27 = vld [vmem:[%s5715_s15 + $0x38] sm:$0xff]  ;;  %v365_v28 = vld [vmem:[%s5715_s15 + $0x40] sm:$0x3]  ;;  %v452_v42 = vmul.f32 %v5769_v33, %v5748_v23 }
  0x16   : > { %v5739_v20 = vsel %vm560_vm0, %v561_v15, %v562_v16  ;;  %v5742_v21 = vsel %vm560_vm0, %v562_v16, %v564_v17  ;;  %v567_v30 = vrot.slane %v5736_v19, 1  ;;  %v569_v31 = vrot.slane %v5745_v22, 1  ;;  %v5800_v46 = vld [vmem:[%s5715_s15 + $0x48] sm:$0xff]  ;;  %v5811_v52 = vld [vmem:[%s5715_s15 + $0x50] sm:$0xff]  ;;  %v5814_v53 = vld [vmem:[%s5715_s15 + $0x58] sm:$0x3] }
  0x17   : > { %4748 = vmatpush3.bf16.msra.mxu1 %v5492_v4  ;;  %8390 = vst [vmem:[#allocation2_spill] sm:$0xff] %v5739_v20  ;;  %8391 = vst [vmem:[#allocation3_spill] sm:$0xff] %v5742_v21  ;;  %v673_v25 = vpack.c.bf16 %v5742_v21, %v5739_v20  ;;  %v571_v32 = vrot.slane %v5748_v23, 1  ;;  %v572_v36 = vrot.slane %v5757_v27, 1  ;;  %v574_v37 = vrot.slane %v365_v28, 1  ;;  %v5504_v56 = vld [vmem:[%s8121_s1 + $0x140] sm:$0xff]  }
  0x18   : > { %4940 = vmatpush3.bf16.msra.mxu0 %v5493_v5  ;;  %4749 = vmatprep.subr.bf16.mxu1 %v5494_v6  ;;  %v5772_v34 = vsel %vm560_vm0, %v566_v26, %v567_v30  ;;  %v5775_v35 = vsel %vm560_vm0, %v567_v30, %v569_v31  ;;  %v453_v43 = vmul.f32 %v5769_v33, %v5757_v27  ;;  %v1204_v45 = vrot.slane %v5748_v23, 2  ;;  %v5819_v55 = vld [vmem:[%s8123_s3 + $0x2] ss:$0 sm:$0xff]  ;;  %v5838_v62 = vld [vmem:[%s8123_s3 + $0x4] ss:$0 sm:$0xff]  ;;  %v5505_v17 = vld [vmem:[%s8121_s1 + $0x148] sm:$0xff]  }
  0x19   : > { %4941 = vmatprep.subr.bf16.mxu0 %v5495_v7  ;;  %4759 = vmatprep.mubr.bf16.mxu1 %v673_v25  ;;  %8392 = vst [vmem:[#allocation4_spill] sm:$0xff] %v5772_v34  ;;  %8393 = vst [vmem:[#allocation5_spill] sm:$0xff] %v5775_v35  ;;  %v674_v41 = vpack.c.bf16 %v5775_v35, %v5772_v34  ;;  %v5796_v44 = vsel %vm560_vm0, %v571_v32, %v572_v36  ;;  %v1205_v50 = vrot.slane %v5757_v27, 2  ;;  %v5849_v3 = vld [vmem:[%s8123_s3 + $0x3] ss:$0 sm:$0xff]  ;;  %v6095_v21 = vld [vmem:[%s5715_s15 + $0x128] sm:$0xff] }
  0x1a   : > { %8394 = vst [vmem:[#allocation6_spill] sm:$0xff] %v5796_v44  ;;  %v5803_v47 = vsel %vm560_vm0, %v572_v36, %v574_v37  ;;  %v1133_v48 = vmul.f32 %v5787_v40, %v5796_v44  ;;  %v1207_v51 = vrot.slane %v365_v28, 2  ;;  %v576_v57 = vrot.slane %v5800_v46, 1  ;;  %v5893_v36 = vld [vmem:[%s5715_s15 + $0x78] sm:$0xff]  ;;  %v5896_v37 = vld [vmem:[%s5715_s15 + $0x80] sm:$0xff]  ;;  %8425 = vst [vmem:[#allocation37_spill] sm:$0xff] %v6095_v21 }
  0x1b   : > { %4750 = vmatpush3.bf16.msra.mxu1 %v5494_v6  ;;  %4951 = vmatprep.mubr.bf16.mxu0 %v674_v41  ;;  %8395 = vst [vmem:[#allocation7_spill] sm:$0xff] %v5803_v47  ;;  %v1134_v49 = vmul.f32 %v5787_v40, %v5803_v47  ;;  %v5827_v58 = vpack.c.bf16 %v5803_v47, %v5796_v44  ;;  %v577_v1 = vrot.slane %v5811_v52, 1  ;;  %v579_v2 = vrot.slane %v5814_v53, 1  ;;  %v6098_v20 = vld [vmem:[%s5715_s15 + $0x130] sm:$0x3] }
  0x1c   : > { %4942 = vmatpush3.bf16.msra.mxu0 %v5495_v7  ;;  %4751 = vmatprep.subr.bf16.mxu1 %v5496_v8  ;;  %v1165_v54 = vadd.f32 %v1133_v48, %v452_v42  ;;  %v5830_v60 = vsel %vm1193_vm1, %v1204_v45, %v1205_v50  ;;  %v5833_v61 = vsel %vm1193_vm1, %v1205_v50, %v1207_v51  ;;  %v586_v51 = vrot.slane %v5893_v36, 1 }
  0x1d   : > { %4943 = vmatprep.subr.bf16.mxu0 %v5497_v9  ;;  %8396 = vst [vmem:[#allocation8_spill] sm:$0xff] %v5827_v58  ;;  %v1166_v59 = vadd.f32 %v1134_v49, %v453_v43  ;;  %v1589_v63 = vmul.f32 %v5819_v55, %v5830_v60  ;;  %v1590_v0 = vmul.f32 %v5819_v55, %v5833_v61  ;;  %v5509_v43 = vld [vmem:[%s8121_s1 + $0x8] sm:$0xff]   ;;  %8426 = vst [vmem:[#allocation38_spill] sm:$0xff] %v6098_v20 }
  0x1e   : > { %v454_v4 = vmul.f32 %v5769_v33, %v5800_v46  ;;  %v455_v5 = vmul.f32 %v5769_v33, %v5811_v52  ;;  %v1917_v6 = vmul.f32 %v5849_v3, %v5800_v46  ;;  %v1918_v7 = vmul.f32 %v5849_v3, %v5811_v52 }
  0x1f   : > { %4752 = vmatpush3.bf16.msra.mxu1 %v5496_v8  ;;  %v5860_v8 = vld [vmem:[%s5715_s15 + $0x60] sm:$0xff]  ;;  %v1621_v13 = vadd.f32 %v1589_v63, %v1165_v54  ;;  %v5869_v15 = vsel %vm560_vm0, %v576_v57, %v577_v1  ;;  %v5872_v16 = vsel %vm560_vm0, %v577_v1, %v579_v2  ;;  %v587_v54 = vrot.slane %v5896_v37, 1  ;;  %v5935_v1 = vld [vmem:[%s5715_s15 + $0x90] sm:$0xff]  ;;  %v5938_v2 = vld [vmem:[%s5715_s15 + $0x98] sm:$0xff] }
  0x20   : > { %4944 = vmatpush3.bf16.msra.mxu0 %v5497_v9  ;;  %4753 = vmatprep.subr.bf16.mxu1 %v5498_v10  ;;  %v5863_v9 = vld [vmem:[%s5715_s15 + $0x68] sm:$0xff]  ;;  %v1135_v25 = vmul.f32 %v5787_v40, %v5869_v15  ;;  %v1136_v26 = vmul.f32 %v5787_v40, %v5872_v16  ;;  %v2255_v28 = vmul.f32 %v5838_v62, %v5869_v15  ;;  %v581_v42 = vrot.slane %v5860_v8, 1 }
  0x21   : > { %4945 = vmatprep.subr.bf16.mxu0 %v5499_v14  ;;  %v1949_v30 = vadd.f32 %v1917_v6, %v1621_v13  ;;  %v2256_v32 = vmul.f32 %v5838_v62, %v5872_v16  ;;  %v582_v49 = vrot.slane %v5863_v9, 1  ;;  %v5953_v13 = vld [vmem:[%s5715_s15 + $0xb0] sm:$0xff] }
  0x23   : > { %4754 = vmatpush3.bf16.msra.mxu1 %v5498_v10  ;;  %v5866_v10 = vld [vmem:[%s5715_s15 + $0x70] sm:$0x3]  ;;  %v5912_v45 = vadd.f32 %v2255_v28, %v1949_v30  ;;  %v5924_v57 = vsel %vm560_vm0, %v581_v42, %v582_v49 }
  0x24   : > { %4946 = vmatpush3.bf16.msra.mxu0 %v5499_v14  ;;  %4755 = vmatprep.subr.bf16.mxu1 %v5500_v24  ;;  %v1622_v14 = vadd.f32 %v1590_v0, %v1166_v59  ;;  %v584_v50 = vrot.slane %v5866_v10, 1  ;;  %8400 = vst [vmem:[#allocation12_spill] sm:$0xff] %v5924_v57  ;;  %v5511_v28 = vld [vmem:[%s8121_s1 + $0x10] sm:$0xff]  }
  0x25   : > { %4947 = vmatprep.subr.bf16.mxu0 %v5501_v29  ;;  %8398 = vst [vmem:[#allocation10_spill] sm:$0xff] %v5912_v45  ;;  %v5515_v45 = vld [vmem:[%s8121_s1 + $0x170] sm:$0xff]  }
  0x26   : > { %v1950_v31 = vadd.f32 %v1918_v7, %v1622_v14  ;;  %v5927_v59 = vsel %vm560_vm0, %v582_v49, %v584_v50  ;;  %v5950_v7 = vld [vmem:[%s5715_s15 + $0xa8] sm:$0xff] }
  0x27   : > { %4756 = vmatpush3.bf16.msra.mxu1 %v5500_v24  ;;  %v5879_v24 = vpack.c.bf16 %v5872_v16, %v5869_v15  ;;  %8401 = vst [vmem:[#allocation13_spill] sm:$0xff] %v5927_v59  ;;  %v5932_v0 = vpack.c.bf16 %v5927_v59, %v5924_v57  ;;  %v6073_v57 = vld [vmem:[%s5715_s15 + $0x118] sm:$0x3] }
  0x28   : > { %4948 = vmatpush3.bf16.msra.mxu0 %v5501_v29  ;;  %4757 = vmatprep.subr.bf16.mxu1 %v5502_v38  ;;  %v5507_v29 = vld [vmem:[%s8121_s1] sm:$0xff]   ;;  %v5914_v48 = vadd.f32 %v2256_v32, %v1950_v31  ;;  %v596_v31 = vrot.slane %v5950_v7, 1  ;;  %v597_v32 = vrot.slane %v5953_v13, 1  ;;  %8422 = vst [vmem:[#allocation34_spill] sm:$0xff] %v6073_v57 }
  0x29   : > { %4949 = vmatprep.subr.bf16.mxu0 %v5503_v39  ;;  %8397 = vst [vmem:[#allocation9_spill] sm:$0xff] %v5879_v24  ;;  %8402 = vst [vmem:[#allocation14_spill] sm:$0xff] %v5932_v0 }
  0x2a   : > { %8399 = vst [vmem:[#allocation11_spill] sm:$0xff] %v5914_v48  ;;  %v6048_v48 = vld [vmem:[%s5715_s15 + $0xf8] sm:$0xff] }
  0x2b   : > { %4758 = vmatpush3.bf16.msra.mxu1 %v5502_v38  ;;  %v5900_v38 = vadd.f32 %v1135_v25, %v454_v4  ;;  %v5941_v4 = vld [vmem:[%s5715_s15 + $0xa0] sm:$0x3]  ;;  %v5508_v25 = vld [vmem:[%s8121_s1 + $0x158] sm:$0xff]   ;;  %8415 = vst [vmem:[#allocation27_spill] sm:$0xff] %v6048_v48 }
  0x2c   : > { %4950 = vmatpush3.bf16.msra.mxu0 %v5503_v39  ;;  %v5902_v39 = vadd.f32 %v1136_v26, %v455_v5  ;;  %4791 = vmatprep.subr.bf16.mxu1 %v5507_v29  ;;  %v5944_v5 = vsel %vm560_vm0, %v586_v51, %v587_v54  ;;  %v5965_v26 = vld [vmem:[%s5715_s15 + $0xb8] sm:$0x3]  ;;  %v594_v30 = vrot.slane %v5941_v4, 1  ;;  %v5985_v51 = vld [vmem:[%s5715_s15 + $0xc0] sm:$0xff] }
  0x2d   : > { %4983 = vmatprep.subr.bf16.mxu0 %v5504_v56  ;;  %8403 = vst [vmem:[#allocation15_spill] sm:$0xff] %v5944_v5  ;;  %v599_v50 = vrot.slane %v5965_v26, 1 }
  0x2e   : > { %4760 = vmatmul.mubr.bf16.vlgmr.msra.gmra.mrb[0].mxu1 %v674_v41  ;;  %v5906_v41 = vld [vmem:[%s5715_s15 + $0x88] sm:$0x3] }
  0x2f   : > { %4952 = vmatmul.mubr.bf16.vlgmr.msra.gmra.mrb[0].mxu0 %v5827_v58  ;;  %4763 = vmatprep.mubr.bf16.mxu1 %v5827_v58  ;;  %v589_v63 = vrot.slane %v5906_v41, 1  ;;  %v6017_v58 = vld [vmem:[%s5715_s15 + $0xe0] sm:$0xff] }
  0x30   : > { %4984 = vmatpush3.bf16.msra.mxu0 %v5504_v56  ;;  %4955 = vmatprep.mubr.bf16.mxu0 %v5879_v24  ;;  %v5506_v56 = vld [vmem:[%s8121_s1 + $0x150] sm:$0xff]  }
  0x31   : > { %4985 = vmatprep.subr.bf16.mxu0 %v5505_v17  ;;  %4792 = vmatpush3.bf16.msra.mxu1 %v5507_v29  ;;  %v5947_v6 = vsel %vm560_vm0, %v587_v54, %v589_v63  ;;  %v592_v29 = vrot.slane %v5938_v2, 1  ;;  %v5988_v54 = vld [vmem:[%s5715_s15 + $0xc8] sm:$0xff]  ;;  %v5513_v63 = vld [vmem:[%s8121_s1 + $0x18] sm:$0xff]  }
  0x32   : > { %4793 = vmatprep.subr.bf16.mxu1 %v5509_v43  ;;  %8404 = vst [vmem:[#allocation16_spill] sm:$0xff] %v5947_v6  ;;  %v5957_v14 = vpack.c.bf16 %v5947_v6, %v5944_v5 }
  0x33   : > { %v5981_v49 = vsel %vm560_vm0, %v592_v29, %v594_v30  ;;  %v6004_v30 = vsel %vm560_vm0, %v597_v32, %v599_v50 }
  0x34   : > { %4986 = vmatpush3.bf16.msra.mxu0 %v5505_v17  ;;  %8405 = vst [vmem:[#allocation17_spill] sm:$0xff] %v5957_v14  ;;  %v591_v17 = vrot.slane %v5935_v1, 1  ;;  %8407 = vst [vmem:[#allocation19_spill] sm:$0xff] %v5981_v49 }
  0x35   : > { %4987 = vmatprep.subr.bf16.mxu0 %v5506_v56  ;;  %4794 = vmatpush3.bf16.msra.mxu1 %v5509_v43  ;;  %8410 = vst [vmem:[#allocation22_spill] sm:$0xff] %v6004_v30  ;;  %v6007_v43 = vld [vmem:[%s5715_s15 + $0xd0] sm:$0x3] }
  0x36   : > { %4764 = vmatmul.mubr.bf16.gmra.mrb[4].mxu1 %v5879_v24  ;;  %v5978_v42 = vsel %vm560_vm0, %v591_v17, %v592_v29  ;;  %4795 = vmatprep.subr.bf16.mxu1 %v5511_v28  ;;  %v6001_v29 = vsel %vm560_vm0, %v596_v31, %v597_v32  ;;  %v6014_v24 = vld [vmem:[%s5715_s15 + $0xd8] sm:$0xff]  ;;  %v601_v31 = vrot.slane %v5985_v51, 1  ;;  %v5512_v32 = vld [vmem:[%s8121_s1 + $0x168] sm:$0xff]   ;;  %v604_v50 = vrot.slane %v6007_v43, 1 }
  0x37   : > { %4956 = vmatmul.mubr.bf16.gmra.mrb[4].mxu0 %v5932_v0  ;;  %4767 = vmatprep.mubr.bf16.mxu1 %v5932_v0  ;;  %8406 = vst [vmem:[#allocation18_spill] sm:$0xff] %v5978_v42  ;;  %v5998_v17 = vpack.c.bf16 %v5981_v49, %v5978_v42  ;;  %8409 = vst [vmem:[#allocation21_spill] sm:$0xff] %v6001_v29  ;;  %v6011_v0 = vpack.c.bf16 %v6004_v30, %v6001_v29  ;;  %v6020_v49 = vld [vmem:[%s5715_s15 + $0xe8] sm:$0x3]  ;;  %v5514_v30 = vld [vmem:[%s8121_s1 + $0x20] sm:$0xff]  }
  0x38   : > { %4959 = vmatprep.mubr.bf16.mxu0 %v5957_v14  ;;  %4988 = vmatpush3.bf16.msra.mxu0 %v5506_v56  ;;  %v5510_v56 = vld [vmem:[%s8121_s1 + $0x160] sm:$0xff]   ;;  %v6037_v29 = vld [vmem:[%s5715_s15 + $0xf0] sm:$0xff]  ;;  %v609_v5 = vrot.slane %v6020_v49, 1 }
  0x39   : > { %4989 = vmatprep.subr.bf16.mxu0 %v5508_v25  ;;  %8408 = vst [vmem:[#allocation20_spill] sm:$0xff] %v5998_v17  ;;  %8411 = vst [vmem:[#allocation23_spill] sm:$0xff] %v6011_v0  ;;  %4796 = vmatpush3.bf16.msra.mxu1 %v5511_v28  ;;  %v606_v28 = vrot.slane %v6014_v24, 1 }
  0x3a   : > { %4797 = vmatprep.subr.bf16.mxu1 %v5513_v63  ;;  %8412 = vst [vmem:[#allocation24_spill] sm:$0xff] %v6037_v29 }
  0x3c   : > { %4990 = vmatpush3.bf16.msra.mxu0 %v5508_v25  ;;  %v602_v25 = vrot.slane %v5988_v54, 1 }
  0x3d   : > { %4991 = vmatprep.subr.bf16.mxu0 %v5510_v56  ;;  %4798 = vmatpush3.bf16.msra.mxu1 %v5513_v63 }
  0x3e   : > { %4768 = vmatmul.mubr.bf16.gmra.mrb[8].mxu1 %v5957_v14  ;;  %v607_v14 = vrot.slane %v6017_v58, 1  ;;  %v6041_v42 = vsel %vm560_vm0, %v601_v31, %v602_v25  ;;  %v6044_v6 = vsel %vm560_vm0, %v602_v25, %v604_v50  ;;  %v6063_v25 = vld [vmem:[%s5715_s15 + $0x108] sm:$0xff]  ;;  %v6066_v50 = vld [vmem:[%s5715_s15 + $0x110] sm:$0xff]  ;;  %4799 = vmatprep.subr.bf16.mxu1 %v5514_v30 }
  0x3f   : > { %4960 = vmatmul.mubr.bf16.gmra.mrb[8].mxu0 %v5998_v17  ;;  %4771 = vmatprep.mubr.bf16.mxu1 %v5998_v17  ;;  %8413 = vst [vmem:[#allocation25_spill] sm:$0xff] %v6041_v42  ;;  %8414 = vst [vmem:[#allocation26_spill] sm:$0xff] %v6044_v6  ;;  %v6051_v17 = vld [vmem:[%s5715_s15 + $0x100] sm:$0x3] }
  0x40   : > { %4963 = vmatprep.mubr.bf16.mxu0 %v6011_v0  ;;  %4992 = vmatpush3.bf16.msra.mxu0 %v5510_v56  ;;  %8416 = vst [vmem:[#allocation28_spill] sm:$0xff] %v6051_v17  ;;  %v6057_v59 = vsel %vm560_vm0, %v606_v28, %v607_v14  ;;  %v6060_v31 = vsel %vm560_vm0, %v607_v14, %v609_v5  ;;  %8419 = vst [vmem:[#allocation31_spill] sm:$0xff] %v6063_v25  ;;  %v611_v5 = vrot.slane %v6037_v29, 1  ;;  %v6144_v29 = vld [vmem:[%s5715_s15 + $0x150] sm:$0xff] }
  0x41   : > { %4993 = vmatprep.subr.bf16.mxu0 %v5512_v32  ;;  %8417 = vst [vmem:[#allocation29_spill] sm:$0xff] %v6057_v59  ;;  %8418 = vst [vmem:[#allocation30_spill] sm:$0xff] %v6060_v31  ;;  %v6070_v56 = vpack.c.bf16 %v6044_v6, %v6041_v42  ;;  %v6077_v28 = vpack.c.bf16 %v6060_v31, %v6057_v59  ;;  %v612_v14 = vrot.slane %v6048_v48, 1  ;;  %v614_v63 = vrot.slane %v6051_v17, 1  ;;  %v5516_v6 = vld [vmem:[%s8121_s1 + $0x28] sm:$0xff]   ;;  %v6092_v59 = vld [vmem:[%s5715_s15 + $0x120] sm:$0xff] }
  0x42   : > { %8420 = vst [vmem:[#allocation32_spill] sm:$0xff] %v6066_v50  ;;  %v616_v42 = vrot.slane %v6063_v25, 1  ;;  %v617_v31 = vrot.slane %v6066_v50, 1  ;;  %8424 = vst [vmem:[#allocation36_spill] sm:$0xff] %v6092_v59  ;;  %v6120_v48 = vld [vmem:[%s5715_s15 + $0x140] sm:$0xff]  ;;  %4800 = vmatpush3.bf16.msra.mxu1 %v5514_v30  ;;  %v622_v30 = vrot.slane %v6095_v21, 1 }
  0x43   : > { %8421 = vst [vmem:[#allocation33_spill] sm:$0xff] %v6070_v56  ;;  %8423 = vst [vmem:[#allocation35_spill] sm:$0xff] %v6077_v28  ;;  %v6105_v50 = vsel %vm560_vm0, %v611_v5, %v612_v14  ;;  %v5517_v5 = vld [vmem:[%s8121_s1 + $0x30] sm:$0xff]   ;;  %4801 = vmatprep.subr.bf16.mxu1 %v5516_v6 }
  0x44   : > { %4994 = vmatpush3.bf16.msra.mxu0 %v5512_v32  ;;  %v619_v32 = vrot.slane %v6073_v57, 1  ;;  %8427 = vst [vmem:[#allocation39_spill] sm:$0xff] %v6105_v50  ;;  %v6111_v57 = vld [vmem:[%s5715_s15 + $0x138] sm:$0xff]  ;;  %v6114_v25 = vsel %vm560_vm0, %v616_v42, %v617_v31  ;;  %8432 = vst [vmem:[#allocation44_spill] sm:$0xff] %v6120_v48  ;;  %v6179_v21 = vld [vmem:[%s5715_s15 + $0x170] sm:$0xff] }
  0x45   : > { %4995 = vmatprep.subr.bf16.mxu0 %v5515_v45  ;;  %8429 = vst [vmem:[#allocation41_spill] sm:$0xff] %v6111_v57  ;;  %8430 = vst [vmem:[#allocation42_spill] sm:$0xff] %v6114_v25 }
  0x46   : > { %4772 = vmatmul.mubr.bf16.gmra.mrb[12].mxu1 %v6011_v0  ;;  %v5518_v0 = vld [vmem:[%s8121_s1 + $0x178] sm:$0xff]   ;;  %v6117_v17 = vsel %vm560_vm0, %v617_v31, %v619_v32  ;;  %v624_v31 = vrot.slane %v6098_v20, 1  ;;  %v626_v32 = vrot.slane %v6111_v57, 1  ;;  %8436 = vst [vmem:[#allocation48_spill] sm:$0xff] %v6144_v29  ;;  %v6170_v57 = vld [vmem:[%s5715_s15 + $0x168] sm:$0xff] }
  0x47   : > { %4964 = vmatmul.mubr.bf16.gmra.mrb[12].mxu0 %v6070_v56  ;;  %4775 = vmatprep.mubr.bf16.mxu1 %v6070_v56  ;;  %v6108_v56 = vsel %vm560_vm0, %v612_v14, %v614_v63  ;;  %8431 = vst [vmem:[#allocation43_spill] sm:$0xff] %v6117_v17  ;;  %v6130_v63 = vld [vmem:[%s5715_s15 + $0x148] sm:$0x3]  ;;  %v6134_v42 = vpack.c.bf16 %v6117_v17, %v6114_v25  ;;  %v5519_v17 = vld [vmem:[%s8121_s1 + $0x38] sm:$0xff]  }
  0x48   : > { %4967 = vmatprep.mubr.bf16.mxu0 %v6077_v28  ;;  %8428 = vst [vmem:[#allocation40_spill] sm:$0xff] %v6108_v56  ;;  %4996 = vmatpush3.bf16.msra.mxu0 %v5515_v45  ;;  %v6127_v14 = vpack.c.bf16 %v6108_v56, %v6105_v50  ;;  %8434 = vst [vmem:[#allocation46_spill] sm:$0xff] %v6130_v63  ;;  %v621_v45 = vrot.slane %v6092_v59, 1  ;;  %v627_v56 = vrot.slane %v6120_v48, 1  ;;  %v629_v50 = vrot.slane %v6130_v63, 1  ;;  %v6152_v25 = vld [vmem:[%s5715_s15 + $0x158] sm:$0xff] }
  0x49   : > { %4997 = vmatprep.subr.bf16.mxu0 %v5518_v0  ;;  %8435 = vst [vmem:[#allocation47_spill] sm:$0xff] %v6134_v42  ;;  %4802 = vmatpush3.bf16.msra.mxu1 %v5516_v6  ;;  %8437 = vst [vmem:[#allocation49_spill] sm:$0xff] %v6152_v25  ;;  %v6155_v6 = vld [vmem:[%s5715_s15 + $0x160] sm:$0x3]  ;;  %v6167_v48 = vsel %vm560_vm0, %v622_v30, %v624_v31  ;;  %v6182_v59 = vld [vmem:[%s5715_s15 + $0x178] sm:$0x3] }
  0x4a   : > { %8433 = vst [vmem:[#allocation45_spill] sm:$0xff] %v6127_v14  ;;  %4803 = vmatprep.subr.bf16.mxu1 %v5517_v5  ;;  %8438 = vst [vmem:[#allocation50_spill] sm:$0xff] %v6155_v6  ;;  %v6164_v63 = vsel %vm560_vm0, %v621_v45, %v622_v30  ;;  %v6176_v20 = vsel %vm560_vm0, %v627_v56, %v629_v50  ;;  %v631_v30 = vrot.slane %v6144_v29, 1  ;;  %v6200_v31 = vld [vmem:[%s8121_s1 + $0x80] sm:$0xff]   ;;  %v1202_v29 = vrot.slane %v5745_v22, 2 }
  0x4b   : > { %8439 = vst [vmem:[#allocation51_spill] sm:$0xff] %v6164_v63  ;;  %8440 = vst [vmem:[#allocation52_spill] sm:$0xff] %v6167_v48  ;;  %v6186_v45 = vpack.c.bf16 %v6167_v48, %v6164_v63  ;;  %v639_v48 = vrot.slane %v6182_v59, 1  ;;  %v6213_v63 = vld [vmem:[%s5715_s15 + $0x188] sm:$0xff]  ;;  %v1199_v22 = vrot.slane %v5733_v18, 2 }
  0x4c   : > { %8442 = vst [vmem:[#allocation54_spill] sm:$0xff] %v6176_v20  ;;  %8443 = vst [vmem:[#allocation55_spill] sm:$0xff] %v6182_v59  ;;  %4998 = vmatpush3.bf16.msra.mxu0 %v5518_v0  ;;  %v636_v0 = vrot.slane %v6170_v57, 1  ;;  %v1131_v59 = vmul.f32 %v5787_v40, %v5772_v34 }
  0x4d   : > { %4804 = vmatpush3.bf16.msra.mxu1 %v5517_v5  ;;  %8444 = vst [vmem:[#allocation56_spill] sm:$0xff] %v6186_v45  ;;  %v634_v5 = vrot.slane %v6155_v6, 1  ;;  %8447 = vst [vmem:[#allocation59_spill] sm:$0xff] %v6213_v63  ;;  %v451_v6 = vmul.f32 %v5769_v33, %v5736_v19 }
  0x4e   : > { %4776 = vmatmul.mubr.bf16.gmra.mrb[16].mxu1 %v6077_v28  ;;  %v6160_v28 = vld [vmem:[%s8121_s1 + $0x180] sm:$0xff]   ;;  %4805 = vmatprep.subr.bf16.mxu1 %v5519_v17 }
  0x4f   : > { %4968 = vmatmul.mubr.bf16.gmra.mrb[16].mxu0 %v6127_v14  ;;  %4779 = vmatprep.mubr.bf16.mxu1 %v6127_v14  ;;  %v6173_v14 = vsel %vm560_vm0, %v626_v32, %v627_v56  ;;  %v632_v56 = vrot.slane %v6152_v25, 1  ;;  %v637_v32 = vrot.slane %v6179_v21, 1  ;;  %v6227_v25 = vld [vmem:[%s5715_s15 + $0x190] sm:$0x3] }
  0x50   : > { %4971 = vmatprep.mubr.bf16.mxu0 %v6134_v42  ;;  %8441 = vst [vmem:[#allocation53_spill] sm:$0xff] %v6173_v14  ;;  %5031 = vmatprep.subr.bf16.mxu0 %v6160_v28  ;;  %v6192_v50 = vpack.c.bf16 %v6176_v20, %v6173_v14  ;;  %v6206_v20 = vld [vmem:[%s5715_s15 + $0x180] sm:$0xff]  ;;  %v450_v14 = vmul.f32 %v5769_v33, %v5733_v18  ;;  %8450 = vst [vmem:[#allocation62_spill] sm:$0xff] %v6227_v25 }
  0x51   : > { %4806 = vmatpush3.bf16.msra.mxu1 %v5519_v17  ;;  %8446 = vst [vmem:[#allocation58_spill] sm:$0xff] %v6206_v20  ;;  %v6221_v17 = vsel %vm560_vm0, %v631_v30, %v632_v56  ;;  %v6233_v33 = vsel %vm560_vm0, %v636_v0, %v637_v32  ;;  %v6236_v34 = vsel %vm560_vm0, %v637_v32, %v639_v48  ;;  %v1980_v30 = vrot.slane %v6206_v20, 1 }
  0x52   : > { %8445 = vst [vmem:[#allocation57_spill] sm:$0xff] %v6192_v50  ;;  %8448 = vst [vmem:[#allocation60_spill] sm:$0xff] %v6221_v17  ;;  %4839 = vmatprep.subr.bf16.mxu1 %v6200_v31  ;;  %v1200_v0 = vrot.slane %v5736_v19, 2  ;;  %v6250_v48 = vpack.c.bf16 %v6236_v34, %v6233_v33 }
  0x53   : > { %8451 = vst [vmem:[#allocation63_spill] sm:$0xff] %v6233_v33  ;;  %8452 = vst [vmem:[#allocation64_spill] sm:$0xff] %v6236_v34  ;;  %v1212_v34 = vrot.slane %v5814_v53, 2 }
  0x54   : > { %8454 = vst [vmem:[#allocation66_spill] sm:$0xff] %v6250_v48  ;;  %v6253_v20 = vsel %vm1193_vm1, %v1199_v22, %v1200_v0  ;;  %v6284_v22 = vld [vmem:[%s8123_s3 + $0x6] ss:$0 sm:$0xff] }
  0x56   : > { %4780 = vmatmul.mubr.bf16.gmra.mrb[20].mxu1 %v6134_v42  ;;  %v6224_v42 = vsel %vm560_vm0, %v632_v56, %v634_v5  ;;  %v1981_v56 = vrot.slane %v6213_v63, 1 }
  0x57   : > { %4972 = vmatmul.mubr.bf16.gmra.mrb[20].mxu0 %v6186_v45  ;;  %4783 = vmatprep.mubr.bf16.mxu1 %v6186_v45  ;;  %8449 = vst [vmem:[#allocation61_spill] sm:$0xff] %v6224_v42  ;;  %v1132_v45 = vmul.f32 %v5787_v40, %v5775_v35  ;;  %v6243_v5 = vpack.c.bf16 %v6224_v42, %v6221_v17  ;;  %v1983_v40 = vrot.slane %v6227_v25, 1 }
  0x58   : > { %4975 = vmatprep.mubr.bf16.mxu0 %v6192_v50  ;;  %v1163_v35 = vadd.f32 %v1131_v59, %v450_v14  ;;  %v6257_v42 = vsel %vm560_vm0, %v1980_v30, %v1981_v56  ;;  %v6260_v17 = vsel %vm1193_vm1, %v1200_v0, %v1202_v29  ;;  %v1587_v25 = vmul.f32 %v5819_v55, %v6253_v20  ;;  %v6269_v14 = vld [vmem:[%s8123_s3 + $0x5] ss:$0 sm:$0xff] }
  0x59   : > { %8453 = vst [vmem:[#allocation65_spill] sm:$0xff] %v6243_v5  ;;  %v1164_v32 = vadd.f32 %v1132_v45, %v451_v6  ;;  %8455 = vst [vmem:[#allocation67_spill] sm:$0xff] %v6257_v42  ;;  %v1915_v59 = vmul.f32 %v5849_v3, %v5748_v23  ;;  %v6274_v6 = vsel %vm560_vm0, %v1981_v56, %v1983_v40  ;;  %v1209_v30 = vrot.slane %v5800_v46, 2 }
  0x5a   : > { %8456 = vst [vmem:[#allocation68_spill] sm:$0xff] %v6260_v17  ;;  %8457 = vst [vmem:[#allocation69_spill] sm:$0xff] %v6274_v6  ;;  %v1588_v29 = vmul.f32 %v5819_v55, %v6260_v17  ;;  %v1916_v45 = vmul.f32 %v5849_v3, %v5757_v27  ;;  %v2253_v0 = vmul.f32 %v5838_v62, %v5796_v44 }
  0x5b   : > { %v411_v56 = vpack.c.bf16 %v5724_v12, %v5721_v11  ;;  %v1619_v40 = vadd.f32 %v1587_v25, %v1163_v35  ;;  %v2254_v3 = vmul.f32 %v5838_v62, %v5803_v47  ;;  %v2588_v44 = vmul.f32 %v6269_v14, %v5830_v60 }
  0x5c   : > { %v1620_v63 = vadd.f32 %v1588_v29, %v1164_v32  ;;  %v6304_v11 = vpack.c.bf16 %v6274_v6, %v6257_v42  ;;  %v2589_v35 = vmul.f32 %v6269_v14, %v5833_v61  ;;  %v6313_v25 = vpack.c.bf16 %v6260_v17, %v6253_v20 }
  0x5d   : > { %v1947_v12 = vadd.f32 %v1915_v59, %v1619_v40  ;;  %v2916_v40 = vmul.f32 %v6284_v22, %v5800_v46 }
  0x5e   : > { %4784 = vmatmul.mubr.bf16.gmra.mrb[24].mxu1 %v6192_v50  ;;  %v6297_v50 = vld [vmem:[%s8123_s3 + $0x7] ss:$0 sm:$0xff]  ;;  %8458 = vst [vmem:[#allocation70_spill] sm:$0xff] %v6304_v11  ;;  %v1948_v32 = vadd.f32 %v1916_v45, %v1620_v63 }
  0x5f   : > { %4976 = vmatmul.mubr.bf16.gmra.mrb[24].mxu0 %v6243_v5  ;;  %4787 = vmatprep.mubr.bf16.mxu1 %v6243_v5  ;;  %v1210_v5 = vrot.slane %v5811_v52, 2  ;;  %v2285_v47 = vadd.f32 %v2253_v0, %v1947_v12  ;;  %v3254_v45 = vmul.f32 %v6297_v50, %v5869_v15 }
  0x60   : > { %4979 = vmatprep.mubr.bf16.mxu0 %v6250_v48  ;;  %v2286_v17 = vadd.f32 %v2254_v3, %v1948_v32  ;;  %v3255_v3 = vmul.f32 %v6297_v50, %v5872_v16  ;;  %v1215_v32 = vrot.slane %v5863_v9, 2 }
  0x61   : > { %v6309_v62 = vsel %vm1193_vm1, %v1209_v30, %v1210_v5  ;;  %v6316_v29 = vsel %vm1193_vm1, %v1210_v5, %v1212_v34  ;;  %v2917_v34 = vmul.f32 %v6284_v22, %v5811_v52  ;;  %v6336_v5 = vld [vmem:[%s8123_s3 + $0x8] ss:$0 sm:$0xff] }
  0x62   : > { %v1591_v53 = vmul.f32 %v5819_v55, %v6309_v62  ;;  %v6322_v59 = vpack.c.bf16 %v6316_v29, %v6309_v62  ;;  %v1592_v30 = vmul.f32 %v5819_v55, %v6316_v29  ;;  %v2620_v55 = vadd.f32 %v2588_v44, %v2285_v47 }
  0x63   : > { %v2621_v12 = vadd.f32 %v2589_v35, %v2286_v17  ;;  %v3589_v44 = vmul.f32 %v6336_v5, %v6309_v62  ;;  %v6366_v17 = vpack.c.bf16 %v5757_v27, %v5748_v23  ;;  %v1214_v35 = vrot.slane %v5860_v8, 2  ;;  %v5525_v23 = vld [vmem:[%s8121_s1 + $0x88] sm:$0xff]  }
  0x64   : > { %8459 = vst [vmem:[#allocation71_spill] sm:$0xff] %v6322_v59  ;;  %v6329_v63 = vadd.f32 %v1591_v53, %v5900_v38  ;;  %v6342_v0 = vadd.f32 %v1592_v30, %v5902_v39  ;;  %v6346_v38 = vpack.c.bf16 %v5811_v52, %v5800_v46  ;;  %v2948_v15 = vadd.f32 %v2916_v40, %v2620_v55  ;;  %v5521_v53 = vld [vmem:[%s8121_s1 + $0x188] sm:$0xff]  }
  0x65   : > { %v2949_v47 = vadd.f32 %v2917_v34, %v2621_v12  ;;  %v3590_v39 = vmul.f32 %v6336_v5, %v6316_v29  ;;  %v6358_v46 = vpack.c.bf16 %v5736_v19, %v5733_v18  ;;  %v6362_v52 = vpack.c.bf16 %v5833_v61, %v5830_v60 }
  0x66   : > { %4788 = vmatmul.mubr.bf16.gmra.mrb[28].mxu1 %v6250_v48  ;;  %v3286_v16 = vadd.f32 %v3254_v45, %v2948_v15  ;;  %v1217_v19 = vrot.slane %v5866_v10, 2  ;;  %v1219_v30 = vrot.slane %v5893_v36, 2  ;;  %v1220_v40 = vrot.slane %v5896_v37, 2 }
  0x67   : > { %4980 = vmatmul.mubr.bf16.gmra.mrb[28].mxu0 %v6304_v11  ;;  %4807 = vmatprep.mubr.bf16.mxu1 %v411_v56  ;;  %8460 = vst [vmem:[#allocation72_spill] sm:$0xff] %v6358_v46  ;;  %8461 = vst [vmem:[#allocation73_spill] sm:$0xff] %v6362_v52  ;;  %v3287_v56 = vadd.f32 %v3255_v3, %v2949_v47  ;;  %v1222_v34 = vrot.slane %v5906_v41, 2  ;;  %v6390_v10 = vsel %vm1193_vm1, %v1214_v35, %v1215_v32  ;;  %v5522_v3 = vld [vmem:[%s8121_s1 + $0x190] sm:$0xff]  }
  0x68   : > { %4999 = vmatprep.mubr.bf16.mxu0 %v6313_v25  ;;  %v6373_v18 = vadd.f32 %v3589_v44, %v3286_v16  ;;  %v6393_v45 = vsel %vm1193_vm1, %v1215_v32, %v1217_v19  ;;  %v6396_v55 = vsel %vm1193_vm1, %v1219_v30, %v1220_v40  ;;  %v6414_v15 = vpack.c.bf16 %v5863_v9, %v5860_v8  ;;  %v5524_v8 = vld [vmem:[%s8121_s1 + $0x198] sm:$0xff]   ;;  %v5526_v19 = vld [vmem:[%s8121_s1 + $0x1a0] sm:$0xff]   ;;  %v8483_v11 = vld [vmem:[#allocation32_spill] sm:$0xff] }
  0x69   : > { %v6380_v27 = vadd.f32 %v3590_v39, %v3287_v56  ;;  %8462 = vst [vmem:[#allocation74_spill] sm:$0xff] %v6396_v55  ;;  %v6399_v41 = vsel %vm1193_vm1, %v1220_v40, %v1222_v34  ;;  %v6410_v12 = vpack.c.bf16 %v6393_v45, %v6390_v10  ;;  %v1225_v47 = vrot.slane %v5938_v2, 2  ;;  %v5529_v9 = vld [vmem:[%s8121_s1 + $0x98] sm:$0xff]  }
  0x6a   : > { %8463 = vst [vmem:[#allocation75_spill] sm:$0xff] %v6399_v41  ;;  %v6418_v44 = vpack.c.bf16 %v6399_v41, %v6396_v55  ;;  %v1227_v39 = vrot.slane %v5941_v4, 2  ;;  %v1229_v16 = vrot.slane %v5950_v7, 2  ;;  %v1230_v56 = vrot.slane %v5953_v13, 2 }
  0x6b   : > { %8464 = vst [vmem:[#allocation76_spill] sm:$0xff] %v6410_v12  ;;  %v1232_v35 = vrot.slane %v5965_v26, 2  ;;  %v6453_v30 = vpack.c.bf16 %v5896_v37, %v5893_v36  ;;  %v6461_v40 = vpack.c.bf16 %v5938_v2, %v5935_v1  ;;  %v1237_v36 = vrot.slane %v6007_v43, 2  ;;  %v5530_v43 = vld [vmem:[%s8121_s1 + $0xa0] sm:$0xff]  }
  0x6c   : > { %8465 = vst [vmem:[#allocation77_spill] sm:$0xff] %v6418_v44  ;;  %v6440_v26 = vsel %vm1193_vm1, %v1225_v47, %v1227_v39  ;;  %v6443_v32 = vsel %vm1193_vm1, %v1229_v16, %v1230_v56  ;;  %v1239_v37 = vrot.slane %v6014_v24, 2  ;;  %v1240_v2 = vrot.slane %v6017_v58, 2 }
  0x6d   : > { %8467 = vst [vmem:[#allocation79_spill] sm:$0xff] %v6440_v26  ;;  %8468 = vst [vmem:[#allocation80_spill] sm:$0xff] %v6443_v32 }
  0x6e   : > { %4808 = vmatmul.mubr.bf16.vlgmr.msra.gmra.mrb[0].mxu1 %v6358_v46  ;;  %v6490_v16 = vsel %vm1193_vm1, %v1239_v37, %v1240_v2  ;;  %v8480_v37 = vld [vmem:[#allocation27_spill] sm:$0xff] }
  0x6f   : > { %5000 = vmatmul.mubr.bf16.vlgmr.msra.gmra.mrb[0].mxu0 %v6362_v52  ;;  %4811 = vmatprep.mubr.bf16.mxu1 %v6366_v17  ;;  %8474 = vst [vmem:[#allocation86_spill] sm:$0xff] %v6490_v16 }
  0x70   : > { %5032 = vmatpush3.bf16.msra.mxu0 %v6160_v28  ;;  %5003 = vmatprep.mubr.bf16.mxu0 %v6322_v59  ;;  %v5527_v28 = vld [vmem:[%s8121_s1 + $0x90] sm:$0xff]  }
  0x71   : > { %5033 = vmatprep.subr.bf16.mxu0 %v5521_v53  ;;  %4840 = vmatpush3.bf16.msra.mxu1 %v6200_v31  ;;  %v1224_v31 = vrot.slane %v5935_v1, 2  ;;  %v5528_v1 = vld [vmem:[%s8121_s1 + $0x1a8] sm:$0xff]  }
  0x72   : > { %4841 = vmatprep.subr.bf16.mxu1 %v5525_v23 }
  0x73   : > { %v6437_v4 = vsel %vm1193_vm1, %v1224_v31, %v1225_v47  ;;  %v1235_v31 = vrot.slane %v5988_v54, 2 }
  0x74   : > { %5034 = vmatpush3.bf16.msra.mxu0 %v5521_v53  ;;  %8466 = vst [vmem:[#allocation78_spill] sm:$0xff] %v6437_v4  ;;  %v6446_v53 = vsel %vm1193_vm1, %v1230_v56, %v1232_v35  ;;  %v5531_v56 = vld [vmem:[%s8121_s1 + $0x1b0] sm:$0xff]   ;;  %v6500_v35 = vpack.c.bf16 %v5953_v13, %v5950_v7 }
  0x75   : > { %5035 = vmatprep.subr.bf16.mxu0 %v5522_v3  ;;  %4842 = vmatpush3.bf16.msra.mxu1 %v5525_v23  ;;  %8469 = vst [vmem:[#allocation81_spill] sm:$0xff] %v6446_v53  ;;  %v6457_v23 = vpack.c.bf16 %v6440_v26, %v6437_v4  ;;  %v6465_v34 = vpack.c.bf16 %v6446_v53, %v6443_v32  ;;  %v8481_v7 = vld [vmem:[#allocation28_spill] sm:$0xff] }
  0x76   : > { %4812 = vmatmul.mubr.bf16.gmra.mrb[4].mxu1 %v6346_v38  ;;  %4843 = vmatprep.subr.bf16.mxu1 %v5527_v28  ;;  %v6487_v39 = vsel %vm1193_vm1, %v1235_v31, %v1237_v36  ;;  %v1247_v13 = vrot.slane %v8481_v7, 2  ;;  %v8497_v32 = vld [vmem:[#allocation44_spill] sm:$0xff] }
  0x77   : > { %5004 = vmatmul.mubr.bf16.gmra.mrb[4].mxu0 %v6410_v12  ;;  %4815 = vmatprep.mubr.bf16.mxu1 %v6414_v15  ;;  %8470 = vst [vmem:[#allocation82_spill] sm:$0xff] %v6457_v23  ;;  %8471 = vst [vmem:[#allocation83_spill] sm:$0xff] %v6465_v34 }
  0x78   : > { %5007 = vmatprep.mubr.bf16.mxu0 %v6418_v44  ;;  %5036 = vmatpush3.bf16.msra.mxu0 %v5522_v3  ;;  %v1234_v3 = vrot.slane %v5985_v51, 2  ;;  %8473 = vst [vmem:[#allocation85_spill] sm:$0xff] %v6487_v39 }
  0x79   : > { %5037 = vmatprep.subr.bf16.mxu0 %v5524_v8  ;;  %4844 = vmatpush3.bf16.msra.mxu1 %v5527_v28  ;;  %v1242_v28 = vrot.slane %v6020_v49, 2 }
  0x7a   : > { %4845 = vmatprep.subr.bf16.mxu1 %v5529_v9  ;;  %v6484_v47 = vsel %vm1193_vm1, %v1234_v3, %v1235_v31  ;;  %v8479_v31 = vld [vmem:[#allocation24_spill] sm:$0xff] }
  0x7b   : > { %8472 = vst [vmem:[#allocation84_spill] sm:$0xff] %v6484_v47  ;;  %v6493_v49 = vsel %vm1193_vm1, %v1240_v2, %v1242_v28  ;;  %v1244_v36 = vrot.slane %v8479_v31, 2  ;;  %v1245_v2 = vrot.slane %v8480_v37, 2 }
  0x7c   : > { %5038 = vmatpush3.bf16.msra.mxu0 %v5524_v8  ;;  %8475 = vst [vmem:[#allocation87_spill] sm:$0xff] %v6493_v49  ;;  %v6504_v8 = vpack.c.bf16 %v6487_v39, %v6484_v47  ;;  %v6512_v3 = vpack.c.bf16 %v6493_v49, %v6490_v16  ;;  %v5532_v49 = vld [vmem:[%s8121_s1 + $0xa8] sm:$0xff]   ;;  %v6544_v47 = vpack.c.bf16 %v6017_v58, %v6014_v24  ;;  %v8495_v24 = vld [vmem:[#allocation38_spill] sm:$0xff] }
  0x7d   : > { %5039 = vmatprep.subr.bf16.mxu0 %v5526_v19  ;;  %4846 = vmatpush3.bf16.msra.mxu1 %v5529_v9  ;;  %v8482_v9 = vld [vmem:[#allocation31_spill] sm:$0xff]  ;;  %v6531_v7 = vsel %vm1193_vm1, %v1244_v36, %v1245_v2  ;;  %v6534_v16 = vsel %vm1193_vm1, %v1245_v2, %v1247_v13  ;;  %v6552_v2 = vpack.c.bf16 %v8480_v37, %v8479_v31  ;;  %v5533_v31 = vld [vmem:[%s8121_s1 + $0xb0] sm:$0xff]   ;;  %v8498_v37 = vld [vmem:[#allocation46_spill] sm:$0xff] }
  0x7e   : > { %4816 = vmatmul.mubr.bf16.gmra.mrb[8].mxu1 %v6453_v30  ;;  %8476 = vst [vmem:[#allocation88_spill] sm:$0xff] %v6504_v8  ;;  %4847 = vmatprep.subr.bf16.mxu1 %v5530_v43  ;;  %8478 = vst [vmem:[#allocation90_spill] sm:$0xff] %v6512_v3  ;;  %v1249_v28 = vrot.slane %v8482_v9, 2  ;;  %v6548_v36 = vpack.c.bf16 %v6534_v16, %v6531_v7 }
  0x7f   : > { %5008 = vmatmul.mubr.bf16.gmra.mrb[8].mxu0 %v6457_v23  ;;  %4819 = vmatprep.mubr.bf16.mxu1 %v6461_v40  ;;  %8485 = vst [vmem:[#allocation24_spill] sm:$0xff] %v6531_v7  ;;  %8486 = vst [vmem:[#allocation27_spill] sm:$0xff] %v6534_v16  ;;  %v1260_v16 = vrot.slane %v8497_v32, 2 }
  0x80   : > { %5011 = vmatprep.mubr.bf16.mxu0 %v6465_v34  ;;  %5040 = vmatpush3.bf16.msra.mxu0 %v5526_v19  ;;  %v6508_v19 = vpack.c.bf16 %v5988_v54, %v5985_v51  ;;  %v1250_v51 = vrot.slane %v8483_v11, 2  ;;  %v8484_v54 = vld [vmem:[#allocation34_spill] sm:$0xff]  ;;  %8489 = vst [vmem:[#allocation32_spill] sm:$0xff] %v6544_v47  ;;  %8491 = vst [vmem:[#allocation91_spill] sm:$0xff] %v6552_v2 }
  0x81   : > { %5041 = vmatprep.subr.bf16.mxu0 %v5528_v1  ;;  %v1252_v48 = vrot.slane %v8484_v54, 2  ;;  %4848 = vmatpush3.bf16.msra.mxu1 %v5530_v43  ;;  %8490 = vst [vmem:[#allocation34_spill] sm:$0xff] %v6548_v36  ;;  %v8493_v43 = vld [vmem:[#allocation36_spill] sm:$0xff] }
  0x82   : > { %8477 = vst [vmem:[#allocation89_spill] sm:$0xff] %v6508_v19  ;;  %v6537_v54 = vsel %vm1193_vm1, %v1249_v28, %v1250_v51  ;;  %4849 = vmatprep.subr.bf16.mxu1 %v5532_v49  ;;  %v1254_v13 = vrot.slane %v8493_v43, 2  ;;  %v8494_v28 = vld [vmem:[#allocation37_spill] sm:$0xff] }
  0x83   : > { %8487 = vst [vmem:[#allocation28_spill] sm:$0xff] %v6537_v54  ;;  %v6540_v39 = vsel %vm1193_vm1, %v1250_v51, %v1252_v48  ;;  %v1255_v58 = vrot.slane %v8494_v28, 2  ;;  %v8496_v51 = vld [vmem:[#allocation41_spill] sm:$0xff] }
  0x84   : > { %5042 = vmatpush3.bf16.msra.mxu0 %v5528_v1  ;;  %v5534_v1 = vld [vmem:[%s8121_s1 + $0x1b8] sm:$0xff]   ;;  %8488 = vst [vmem:[#allocation31_spill] sm:$0xff] %v6540_v39  ;;  %v6556_v48 = vpack.c.bf16 %v6540_v39, %v6537_v54  ;;  %v1259_v53 = vrot.slane %v8496_v51, 2  ;;  %v1262_v39 = vrot.slane %v8498_v37, 2  ;;  %v6581_v54 = vld [vmem:[%s8123_s3] ss:$0 sm:$0xff] }
  0x85   : > { %5043 = vmatprep.subr.bf16.mxu0 %v5531_v56  ;;  %4850 = vmatpush3.bf16.msra.mxu1 %v5532_v49  ;;  %v6576_v49 = vld [vmem:[%s8121_s1 + $0x1c0] sm:$0xff]   ;;  %8499 = vst [vmem:[#allocation36_spill] sm:$0xff] %v6581_v54  ;;  %v478_v7 = vmul.f32 %v6581_v54, %v6170_v57  ;;  %v6587_v37 = vsel %vm1193_vm1, %v1254_v13, %v1255_v58 }
  0x86   : > { %4820 = vmatmul.mubr.bf16.gmra.mrb[12].mxu1 %v6500_v35  ;;  %8492 = vst [vmem:[#allocation92_spill] sm:$0xff] %v6556_v48  ;;  %8500 = vst [vmem:[#allocation37_spill] sm:$0xff] %v6587_v37  ;;  %v479_v4 = vmul.f32 %v6581_v54, %v6179_v21  ;;  %v6595_v46 = vsel %vm1193_vm1, %v1259_v53, %v1260_v16  ;;  %4851 = vmatprep.subr.bf16.mxu1 %v5533_v31 }
  0x87   : > { %5012 = vmatmul.mubr.bf16.gmra.mrb[12].mxu0 %v6504_v8  ;;  %4823 = vmatprep.mubr.bf16.mxu1 %v6508_v19  ;;  %8502 = vst [vmem:[#allocation41_spill] sm:$0xff] %v6595_v46  ;;  %v6611_v53 = vpack.c.bf16 %v8483_v11, %v8482_v9  ;;  %v8511_v8 = vld [vmem:[#allocation50_spill] sm:$0xff]  ;;  %v1269_v9 = vrot.slane %v6170_v57, 2 }
  0x88   : > { %5015 = vmatprep.mubr.bf16.mxu0 %v6512_v3  ;;  %5044 = vmatpush3.bf16.msra.mxu0 %v5531_v56  ;;  %v1257_v56 = vrot.slane %v8495_v24, 2  ;;  %v5535_v24 = vld [vmem:[%s8121_s1 + $0xb8] sm:$0xff]  }
  0x89   : > { %5045 = vmatprep.subr.bf16.mxu0 %v5534_v1  ;;  %8506 = vst [vmem:[#allocation93_spill] sm:$0xff] %v6611_v53  ;;  %4852 = vmatpush3.bf16.msra.mxu1 %v5533_v31 }
  0x8a   : > { %v6590_v26 = vsel %vm1193_vm1, %v1255_v58, %v1257_v56  ;;  %v8505_v58 = vld [vmem:[#allocation64_spill] sm:$0xff]  ;;  %4853 = vmatprep.subr.bf16.mxu1 %v5535_v24 }
  0x8b   : > { %8501 = vst [vmem:[#allocation38_spill] sm:$0xff] %v6590_v26 }
  0x8c   : > { %5046 = vmatpush3.bf16.msra.mxu0 %v5534_v1  ;;  %v8509_v1 = vld [vmem:[#allocation48_spill] sm:$0xff] }
  0x8d   : > { %v1264_v3 = vrot.slane %v8509_v1, 2  ;;  %5079 = vmatprep.subr.bf16.mxu0 %v6576_v49  ;;  %4854 = vmatpush3.bf16.msra.mxu1 %v5535_v24  ;;  %v6697_v24 = vld [vmem:[%s8123_s3 + $0x3] ss:$0 sm:$0xff] }
  0x8e   : > { %4824 = vmatmul.mubr.bf16.gmra.mrb[16].mxu1 %v6544_v47  ;;  %v5571_v47 = vld [vmem:[%s5715_s15 + $0x8] sm:$0xff] }
  0x8f   : > { %5016 = vmatmul.mubr.bf16.gmra.mrb[16].mxu0 %v6548_v36  ;;  %4827 = vmatprep.mubr.bf16.mxu1 %v6552_v2  ;;  %v6598_v36 = vsel %vm1193_vm1, %v1260_v16, %v1262_v39  ;;  %v6615_v39 = vpack.c.bf16 %v8494_v28, %v8493_v43  ;;  %v6619_v16 = vpack.c.bf16 %v6590_v26, %v6587_v37  ;;  %v1270_v43 = vrot.slane %v6179_v21, 2  ;;  %v8513_v28 = vld [vmem:[#allocation55_spill] sm:$0xff]  ;;  %v5570_v26 = vld [vmem:[%s5715_s15] sm:$0xff] }
  0x90   : > { %5019 = vmatprep.mubr.bf16.mxu0 %v6556_v48  ;;  %8503 = vst [vmem:[#allocation44_spill] sm:$0xff] %v6598_v36  ;;  %v6603_v48 = vld [vmem:[%s8123_s3 + $0x1] ss:$0 sm:$0xff]  ;;  %v6627_v11 = vpack.c.bf16 %v6598_v36, %v6595_v46  ;;  %v1272_v31 = vrot.slane %v8513_v28, 2  ;;  %v448_v37 = vmul.f32 %v5570_v26, %v6581_v54  ;;  %v449_v34 = vmul.f32 %v5571_v47, %v6581_v54  ;;  %v5572_v46 = vld [vmem:[%s5715_s15 + $0x10] sm:$0x3] }
  0x91   : > { %8504 = vst [vmem:[#allocation46_spill] sm:$0xff] %v6603_v48  ;;  %v1159_v13 = vmul.f32 %v6603_v48, %v6233_v33  ;;  %v1160_v56 = vmul.f32 %v6603_v48, %v8505_v58  ;;  %8507 = vst [vmem:[#allocation94_spill] sm:$0xff] %v6615_v39  ;;  %v8510_v33 = vld [vmem:[#allocation49_spill] sm:$0xff]  ;;  %v1267_v58 = vrot.slane %v8511_v8, 2  ;;  %v6640_v36 = vld [vmem:[%s8121_s1 + $0xc0] sm:$0xff]   ;;  %v1197_v55 = vrot.slane %v5572_v46, 2 }
  0x92   : > { %8508 = vst [vmem:[#allocation95_spill] sm:$0xff] %v6619_v16  ;;  %v1265_v2 = vrot.slane %v8510_v33, 2  ;;  %8512 = vst [vmem:[#allocation48_spill] sm:$0xff] %v6627_v11  ;;  %v6660_v46 = vsel %vm1193_vm1, %v1270_v43, %v1272_v31  ;;  %4887 = vmatprep.subr.bf16.mxu1 %v6640_v36 }
  0x93   : > { %v1191_v8 = vadd.f32 %v1159_v13, %v478_v7  ;;  %v1192_v41 = vadd.f32 %v1160_v56, %v479_v4  ;;  %v6652_v4 = vsel %vm1193_vm1, %v1269_v9, %v1270_v43  ;;  %v8517_v7 = vld [vmem:[#allocation2_spill] sm:$0xff]  ;;  %v8518_v56 = vld [vmem:[#allocation3_spill] sm:$0xff] }
  0x94   : > { %v6646_v28 = vsel %vm1193_vm1, %v1264_v3, %v1265_v2  ;;  %v6649_v54 = vsel %vm1193_vm1, %v1265_v2, %v1267_v58  ;;  %8516 = vst [vmem:[#allocation55_spill] sm:$0xff] %v6652_v4  ;;  %v1129_v13 = vmul.f32 %v6603_v48, %v8517_v7  ;;  %8519 = vst [vmem:[#allocation2_spill] sm:$0xff] %v6660_v46  ;;  %v6665_v3 = vld [vmem:[%s8123_s3 + $0x2] ss:$0 sm:$0xff]  ;;  %v6672_v58 = vld [vmem:[%s8123_s3 + $0x4] ss:$0 sm:$0xff] }
  0x95   : > { %8514 = vst [vmem:[#allocation49_spill] sm:$0xff] %v6646_v28  ;;  %8515 = vst [vmem:[#allocation50_spill] sm:$0xff] %v6649_v54  ;;  %v1615_v2 = vmul.f32 %v6665_v3, %v6652_v4  ;;  %v2281_v9 = vmul.f32 %v6672_v58, %v6257_v42  ;;  %v2282_v43 = vmul.f32 %v6672_v58, %v6274_v6  ;;  %v8520_v7 = vld [vmem:[#allocation58_spill] sm:$0xff] }
  0x96   : > { %4828 = vmatmul.mubr.bf16.gmra.mrb[20].mxu1 %v6611_v53  ;;  %v1130_v53 = vmul.f32 %v6603_v48, %v8518_v56  ;;  %v1616_v31 = vmul.f32 %v6665_v3, %v6660_v46  ;;  %v2315_v56 = vrot.slane %v8520_v7, 2  ;;  %v6687_v48 = vpack.c.bf16 %v6649_v54, %v6646_v28 }
  0x97   : > { %5020 = vmatmul.mubr.bf16.gmra.mrb[20].mxu0 %v6619_v16  ;;  %4831 = vmatprep.mubr.bf16.mxu1 %v6615_v39  ;;  %v6691_v42 = vpack.c.bf16 %v8510_v33, %v8509_v1  ;;  %v1647_v16 = vadd.f32 %v1615_v2, %v1191_v8  ;;  %v6706_v33 = vpack.c.bf16 %v6660_v46, %v6652_v4  ;;  %v8526_v1 = vld [vmem:[#allocation62_spill] sm:$0xff]  ;;  %v1195_v2 = vrot.slane %v5571_v47, 2 }
  0x98   : > { %5023 = vmatprep.mubr.bf16.mxu0 %v6627_v11  ;;  %v6683_v11 = vpack.c.bf16 %v8497_v32, %v8496_v51  ;;  %8522 = vst [vmem:[#allocation96_spill] sm:$0xff] %v6687_v48  ;;  %v1648_v6 = vadd.f32 %v1616_v31, %v1192_v41  ;;  %v1943_v32 = vmul.f32 %v6697_v24, %v8520_v7  ;;  %v8524_v51 = vld [vmem:[#allocation59_spill] sm:$0xff]  ;;  %v2318_v8 = vrot.slane %v8526_v1, 2 }
  0x99   : > { %8523 = vst [vmem:[#allocation97_spill] sm:$0xff] %v6691_v42  ;;  %v1944_v54 = vmul.f32 %v6697_v24, %v8524_v51  ;;  %v2316_v28 = vrot.slane %v8524_v51, 2  ;;  %8525 = vst [vmem:[#allocation98_spill] sm:$0xff] %v6706_v33  ;;  %v1194_v41 = vrot.slane %v5570_v26, 2  ;;  %v1161_v7 = vadd.f32 %v1129_v13, %v448_v37 }
  0x9a   : > { %8521 = vst [vmem:[#allocation3_spill] sm:$0xff] %v6683_v11  ;;  %v1975_v31 = vadd.f32 %v1943_v32, %v1647_v16  ;;  %v1162_v23 = vadd.f32 %v1130_v53, %v449_v34  ;;  %v5576_v53 = vld [vmem:[%s5715_s15 + $0x18] sm:$0xff]  ;;  %v6737_v32 = vpack.c.bf16 %v6179_v21, %v6170_v57  ;;  %v5537_v57 = vld [vmem:[%s8121_s1 + $0x1c8] sm:$0xff]  }
  0x9b   : > { %v1976_v39 = vadd.f32 %v1944_v54, %v1648_v6  ;;  %v6710_v19 = vsel %vm1193_vm1, %v2315_v56, %v2316_v28  ;;  %v6714_v51 = vsel %vm1193_vm1, %v2316_v28, %v2318_v8  ;;  %v1196_v47 = vsel %vm1193_vm1, %v1194_v41, %v1195_v2  ;;  %v8529_v8 = vld [vmem:[#allocation5_spill] sm:$0xff] }
  0x9c   : > { %v2616_v46 = vmul.f32 %v6269_v14, %v6710_v19  ;;  %v2313_v6 = vadd.f32 %v2281_v9, %v1975_v31  ;;  %v2617_v34 = vmul.f32 %v6269_v14, %v6714_v51  ;;  %v1198_v54 = vsel %vm1193_vm1, %v1195_v2, %v1197_v55  ;;  %v5577_v9 = vld [vmem:[%s5715_s15 + $0x20] sm:$0xff]  ;;  %8528 = vst [vmem:[#allocation62_spill] sm:$0xff] %v6737_v32 }
  0x9d   : > { %v2314_v26 = vadd.f32 %v2282_v43, %v1976_v39  ;;  %v1585_v37 = vmul.f32 %v6665_v3, %v1196_v47  ;;  %v1913_v16 = vmul.f32 %v5576_v53, %v6697_v24  ;;  %v1586_v13 = vmul.f32 %v6665_v3, %v1198_v54  ;;  %v8527_v43 = vld [vmem:[#allocation4_spill] sm:$0xff] }
  0x9e   : > { %4832 = vmatmul.mubr.bf16.gmra.mrb[24].mxu1 %v6683_v11  ;;  %v6728_v28 = vadd.f32 %v2616_v46, %v2313_v6  ;;  %v1914_v39 = vmul.f32 %v5577_v9, %v6697_v24  ;;  %v2251_v56 = vmul.f32 %v6672_v58, %v8527_v43  ;;  %v2252_v41 = vmul.f32 %v6672_v58, %v8529_v8  ;;  %v5540_v43 = vld [vmem:[%s8121_s1 + $0x1d8] sm:$0xff]   ;;  %v5580_v8 = vld [vmem:[%s5715_s15 + $0x30] sm:$0xff] }
  0x9f   : > { %5024 = vmatmul.mubr.bf16.gmra.mrb[24].mxu0 %v6687_v48  ;;  %4835 = vmatprep.mubr.bf16.mxu1 %v6691_v42  ;;  %v6739_v55 = vadd.f32 %v2617_v34, %v2314_v26  ;;  %v1617_v1 = vadd.f32 %v1585_v37, %v1161_v7  ;;  %v6745_v46 = vpack.c.bf16 %v6714_v51, %v6710_v19  ;;  %v8531_v26 = vld [vmem:[#allocation68_spill] sm:$0xff] }
  0xa0   : > { %5027 = vmatprep.mubr.bf16.mxu0 %v6706_v33  ;;  %v1306_v2 = vpack.c.bf16 %v1198_v54, %v1196_v47  ;;  %v1618_v31 = vadd.f32 %v1586_v13, %v1162_v23  ;;  %v5541_v23 = vld [vmem:[%s8121_s1 + $0xc8] sm:$0xff]   ;;  %v2586_v7 = vmul.f32 %v6269_v14, %v6253_v20  ;;  %v2587_v47 = vmul.f32 %v6269_v14, %v8531_v26  ;;  %v8532_v34 = vld [vmem:[#allocation12_spill] sm:$0xff]  ;;  %v8533_v20 = vld [vmem:[#allocation13_spill] sm:$0xff] }
  0xa1   : > { %8530 = vst [vmem:[#allocation4_spill] sm:$0xff] %v6745_v46  ;;  %v1945_v6 = vadd.f32 %v1913_v16, %v1617_v1  ;;  %v2257_v54 = vmul.f32 %v6672_v58, %v8532_v34  ;;  %v2258_v37 = vmul.f32 %v6672_v58, %v8533_v20  ;;  %v6777_v16 = vld [vmem:[%s5715_s15 + $0x60] sm:$0xff] }
  0xa2   : > { %v1946_v53 = vadd.f32 %v1914_v39, %v1618_v31  ;;  %v1919_v13 = vmul.f32 %v6777_v16, %v6697_v24  ;;  %v6782_v39 = vld [vmem:[%s5715_s15 + $0x68] sm:$0xff]  ;;  %v2591_v31 = vmul.f32 %v6269_v14, %v6316_v29 }
  0xa3   : > { %v2283_v9 = vadd.f32 %v2251_v56, %v1945_v6  ;;  %v5545_v6 = vld [vmem:[%s8121_s1 + $0xd8] sm:$0xff]  }
  0xa4   : > { %v2284_v21 = vadd.f32 %v2252_v41, %v1946_v53  ;;  %v2914_v41 = vmul.f32 %v5580_v8, %v6284_v22  ;;  %v5581_v53 = vld [vmem:[%s5715_s15 + $0x38] sm:$0xff]  ;;  %v5542_v8 = vld [vmem:[%s8121_s1 + $0x1e0] sm:$0xff]  }
  0xa5   : > { %v2618_v56 = vadd.f32 %v2586_v7, %v2283_v9  ;;  %v2915_v9 = vmul.f32 %v5581_v53, %v6284_v22  ;;  %v1951_v7 = vadd.f32 %v1919_v13, %v6329_v63  ;;  %v3588_v53 = vmul.f32 %v6336_v5, %v5833_v61  ;;  %v5546_v63 = vld [vmem:[%s8121_s1 + $0xe0] sm:$0xff]  }
  0xa6   : > { %4836 = vmatmul.mubr.bf16.gmra.mrb[28].mxu1 %v6737_v32  ;;  %v2619_v1 = vadd.f32 %v2587_v47, %v2284_v21 }
  0xa7   : > { %5028 = vmatmul.mubr.bf16.gmra.mrb[28].mxu0 %v6745_v46  ;;  %4855 = vmatprep.mubr.bf16.mxu1 %v1306_v2  ;;  %v2590_v2 = vmul.f32 %v6269_v14, %v6309_v62  ;;  %v2946_v21 = vadd.f32 %v2914_v41, %v2618_v56  ;;  %v3587_v41 = vmul.f32 %v6336_v5, %v5830_v60  ;;  %v6827_v60 = vld [vmem:[%s8124_s4] ss:$0 sm:$0xff] }
  0xa8   : > { %5047 = vmatprep.mubr.bf16.mxu0 %v6366_v17  ;;  %v2947_v47 = vadd.f32 %v2915_v9, %v2619_v1  ;;  %8536 = vst [vmem:[#allocation5_spill] sm:$0xff] %v6827_v60  ;;  %v2289_v61 = vadd.f32 %v2257_v54, %v1951_v7  ;;  %v5544_v9 = vld [vmem:[%s8121_s1 + $0x1e8] sm:$0xff]   ;;  %v3256_v7 = vmul.f32 %v6297_v50, %v8532_v34 }
  0xa9   : > { %v5548_v54 = vld [vmem:[%s8121_s1 + $0xe8] sm:$0xff]  }
  0xae   : > { %4856 = vmatmul.mubr.bf16.vlgmr.msra.gmra.mrb[0].mxu1 %v6313_v25  ;;  %v5538_v25 = vld [vmem:[%s8121_s1 + $0x1d0] sm:$0xff]  }
  0xaf   : > { %5048 = vmatmul.mubr.bf16.vlgmr.msra.gmra.mrb[0].mxu0 %v6346_v38  ;;  %4859 = vmatprep.mubr.bf16.mxu1 %v6362_v52 }
  0xb0   : > { %5080 = vmatpush3.bf16.msra.mxu0 %v6576_v49  ;;  %5051 = vmatprep.mubr.bf16.mxu0 %v6414_v15  ;;  %v5543_v49 = vld [vmem:[%s8121_s1 + $0xd0] sm:$0xff]  }
  0xb1   : > { %5081 = vmatprep.subr.bf16.mxu0 %v5537_v57  ;;  %4888 = vmatpush3.bf16.msra.mxu1 %v6640_v36  ;;  %v1920_v36 = vmul.f32 %v6782_v39, %v6697_v24 }
  0xb2   : > { %4889 = vmatprep.subr.bf16.mxu1 %v5541_v23 }
  0xb3   : > { %v1952_v26 = vadd.f32 %v1920_v36, %v6342_v0 }
  0xb4   : > { %5082 = vmatpush3.bf16.msra.mxu0 %v5537_v57  ;;  %v8534_v57 = vld [vmem:[#allocation6_spill] sm:$0xff] }
  0xb5   : > { %5083 = vmatprep.subr.bf16.mxu0 %v5538_v25  ;;  %4890 = vmatpush3.bf16.msra.mxu1 %v5541_v23  ;;  %v3252_v62 = vmul.f32 %v6297_v50, %v8534_v57  ;;  %v8535_v23 = vld [vmem:[#allocation7_spill] sm:$0xff]  ;;  %v2290_v1 = vadd.f32 %v2258_v37, %v1952_v26  ;;  %v8538_v57 = vld [vmem:[#allocation10_spill] sm:$0xff]  ;;  %v8544_v26 = vld [vmem:[#allocation89_spill] sm:$0xff] }
  0xb6   : > { %4860 = vmatmul.mubr.bf16.gmra.mrb[4].mxu1 %v6322_v59  ;;  %4891 = vmatprep.subr.bf16.mxu1 %v5543_v49  ;;  %v3253_v29 = vmul.f32 %v6297_v50, %v8535_v23  ;;  %v6850_v23 = vadd.f32 %v6827_v60, %v6380_v27  ;;  %v8545_v27 = vld [vmem:[#allocation15_spill] sm:$0xff] }
  0xb7   : > { %5052 = vmatmul.mubr.bf16.gmra.mrb[4].mxu0 %v6453_v30  ;;  %4863 = vmatprep.mubr.bf16.mxu1 %v6410_v12  ;;  %v3284_v56 = vadd.f32 %v3252_v62, %v2946_v21  ;;  %v8571_v12 = vld [vmem:[#allocation48_spill] sm:$0xff] }
  0xb8   : > { %5055 = vmatprep.mubr.bf16.mxu0 %v6461_v40  ;;  %5084 = vmatpush3.bf16.msra.mxu0 %v5538_v25  ;;  %v3285_v0 = vadd.f32 %v3253_v29, %v2947_v47  ;;  %v2592_v25 = vmul.f32 %v6269_v14, %v6390_v10  ;;  %8542 = vst [vmem:[#allocation6_spill] sm:$0xff] %v6850_v23  ;;  %v7007_v23 = vld [vmem:[%s5715_s15 + $0xc0] sm:$0xff] }
  0xb9   : > { %5085 = vmatprep.subr.bf16.mxu0 %v5540_v43  ;;  %4892 = vmatpush3.bf16.msra.mxu1 %v5543_v49  ;;  %v3619_v13 = vadd.f32 %v3587_v41, %v3284_v56  ;;  %v2593_v49 = vmul.f32 %v6269_v14, %v6393_v45  ;;  %v2622_v14 = vadd.f32 %v2590_v2, %v8538_v57  ;;  %v8543_v2 = vld [vmem:[#allocation82_spill] sm:$0xff]  ;;  %v5547_v56 = vld [vmem:[%s8121_s1 + $0x1f0] sm:$0xff]  }
  0xba   : > { %4893 = vmatprep.subr.bf16.mxu1 %v5545_v6  ;;  %v3620_v36 = vadd.f32 %v3588_v53, %v3285_v0  ;;  %v2919_v29 = vmul.f32 %v6782_v39, %v6284_v22  ;;  %v3257_v47 = vmul.f32 %v6297_v50, %v8533_v20  ;;  %v5549_v0 = vld [vmem:[%s8121_s1 + $0xf0] sm:$0xff]  }
  0xbb   : > { %v6833_v21 = vadd.f32 %v6827_v60, %v3619_v13  ;;  %v3592_v13 = vmul.f32 %v6336_v5, %v6393_v45  ;;  %v2625_v57 = vadd.f32 %v2593_v49, %v2290_v1  ;;  %v8547_v49 = vld [vmem:[#allocation74_spill] sm:$0xff]  ;;  %v8548_v1 = vld [vmem:[#allocation75_spill] sm:$0xff] }
  0xbc   : > { %5086 = vmatpush3.bf16.msra.mxu0 %v5540_v43  ;;  %v8539_v43 = vld [vmem:[#allocation11_spill] sm:$0xff]  ;;  %v6842_v37 = vadd.f32 %v6827_v60, %v3620_v36  ;;  %v2624_v36 = vadd.f32 %v2592_v25, %v2289_v61  ;;  %v3593_v61 = vmul.f32 %v6336_v5, %v8547_v49  ;;  %8574 = vst [vmem:[#allocation75_spill] sm:$0xff] %v7007_v23 }
  0xbd   : > { %5087 = vmatprep.subr.bf16.mxu0 %v5542_v8  ;;  %4894 = vmatpush3.bf16.msra.mxu1 %v5545_v6  ;;  %8537 = vst [vmem:[#allocation68_spill] sm:$0xff] %v6833_v21  ;;  %v2623_v62 = vadd.f32 %v2591_v31, %v8539_v43  ;;  %v6846_v6 = vadd.f32 %v6827_v60, %v6373_v18  ;;  %v6878_v43 = vld [vmem:[%s5715_s15 + $0x78] sm:$0xff] }
  0xbe   : > { %4864 = vmatmul.mubr.bf16.gmra.mrb[8].mxu1 %v6418_v44  ;;  %4895 = vmatprep.subr.bf16.mxu1 %v5546_v63  ;;  %8540 = vst [vmem:[#allocation12_spill] sm:$0xff] %v6842_v37  ;;  %v2918_v31 = vmul.f32 %v6777_v16, %v6284_v22  ;;  %v3258_v18 = vmul.f32 %v6297_v50, %v8545_v27  ;;  %v7013_v21 = vld [vmem:[%s5715_s15 + $0x198] sm:$0xff]  ;;  %v7029_v37 = vld [vmem:[%s5715_s15 + $0xc8] sm:$0xff] }
  0xbf   : > { %8541 = vst [vmem:[#allocation13_spill] sm:$0xff] %v6846_v6  ;;  %5056 = vmatmul.mubr.bf16.gmra.mrb[8].mxu0 %v6500_v35  ;;  %4867 = vmatprep.mubr.bf16.mxu1 %v8543_v2  ;;  %v2951_v53 = vadd.f32 %v2919_v29, %v2623_v62  ;;  %v8546_v2 = vld [vmem:[#allocation16_spill] sm:$0xff] }
  0xc0   : > { %5059 = vmatprep.mubr.bf16.mxu0 %v8544_v26  ;;  %5088 = vmatpush3.bf16.msra.mxu0 %v5542_v8  ;;  %v2950_v41 = vadd.f32 %v2918_v31, %v2622_v14  ;;  %v3591_v8 = vmul.f32 %v6336_v5, %v6390_v10  ;;  %v6883_v31 = vld [vmem:[%s5715_s15 + $0x80] sm:$0xff]  ;;  %v3259_v25 = vmul.f32 %v6297_v50, %v8546_v2  ;;  %v5551_v50 = vld [vmem:[%s8121_s1 + $0xf8] sm:$0xff]   ;;  %v7002_v6 = vld [vmem:[%s5715_s15 + $0xb0] sm:$0xff] }
  0xc1   : > { %5089 = vmatprep.subr.bf16.mxu0 %v5544_v9  ;;  %4896 = vmatpush3.bf16.msra.mxu1 %v5546_v63  ;;  %v2920_v63 = vmul.f32 %v6878_v43, %v6284_v22  ;;  %v3289_v62 = vadd.f32 %v3257_v47, %v2951_v53  ;;  %v2921_v29 = vmul.f32 %v6883_v31, %v6284_v22  ;;  %v5550_v22 = vld [vmem:[%s8121_s1 + $0x1f8] sm:$0xff]  }
  0xc2   : > { %4897 = vmatprep.subr.bf16.mxu1 %v5548_v54  ;;  %v3288_v14 = vadd.f32 %v3256_v7, %v2950_v41  ;;  %v3594_v7 = vmul.f32 %v6336_v5, %v8548_v1  ;;  %v8551_v5 = vld [vmem:[#allocation88_spill] sm:$0xff] }
  0xc3   : > { %v2952_v46 = vadd.f32 %v2920_v63, %v2624_v36  ;;  %v3624_v41 = vadd.f32 %v3592_v13, %v3289_v62  ;;  %v2953_v53 = vadd.f32 %v2921_v29, %v2625_v57  ;;  %v8550_v63 = vld [vmem:[#allocation32_spill] sm:$0xff]  ;;  %v8554_v13 = vld [vmem:[#allocation91_spill] sm:$0xff]  ;;  %v6921_v62 = vld [vmem:[%s8125_s5] sm:$0xff]  }
  0xc4   : > { %5090 = vmatpush3.bf16.msra.mxu0 %v5544_v9  ;;  %v3623_v47 = vadd.f32 %v3591_v8, %v3288_v14  ;;  %v8549_v9 = vld [vmem:[#allocation83_spill] sm:$0xff] }
  0xc5   : > { %5091 = vmatprep.subr.bf16.mxu0 %v5547_v56  ;;  %4898 = vmatpush3.bf16.msra.mxu1 %v5548_v54  ;;  %v3290_v36 = vadd.f32 %v3258_v18, %v2952_v46  ;;  %v6908_v44 = vadd.f32 %v6827_v60, %v3624_v41  ;;  %v3291_v8 = vadd.f32 %v3259_v25, %v2953_v53  ;;  %v6914_v46 = vld [vmem:[%s8121_s1 + $0x200] sm:$0xff]   ;;  %v8561_v41 = vld [vmem:[#allocation92_spill] sm:$0xff] }
  0xc6   : > { %4868 = vmatmul.mubr.bf16.gmra.mrb[12].mxu1 %v8549_v9  ;;  %4899 = vmatprep.subr.bf16.mxu1 %v5549_v0  ;;  %v6905_v54 = vadd.f32 %v6827_v60, %v3623_v47  ;;  %v8557_v25 = vld [vmem:[#allocation90_spill] sm:$0xff]  ;;  %v8563_v53 = vld [vmem:[#allocation36_spill] sm:$0xff] }
  0xc7   : > { %5060 = vmatmul.mubr.bf16.gmra.mrb[12].mxu0 %v8550_v63  ;;  %4871 = vmatprep.mubr.bf16.mxu1 %v8551_v5  ;;  %8553 = vst [vmem:[#allocation10_spill] sm:$0xff] %v6908_v44  ;;  %v3625_v57 = vadd.f32 %v3593_v61, %v3290_v36  ;;  %v3626_v14 = vadd.f32 %v3594_v7, %v3291_v8  ;;  %v8558_v61 = vld [vmem:[#allocation93_spill] sm:$0xff]  ;;  %v8559_v7 = vld [vmem:[#allocation34_spill] sm:$0xff] }
  0xc8   : > { %8552 = vst [vmem:[#allocation7_spill] sm:$0xff] %v6905_v54  ;;  %5063 = vmatprep.mubr.bf16.mxu0 %v8554_v13  ;;  %5092 = vmatpush3.bf16.msra.mxu0 %v5547_v56  ;;  %v8560_v47 = vld [vmem:[#allocation94_spill] sm:$0xff]  ;;  %v458_v29 = vmul.f32 %v6878_v43, %v8563_v53  ;;  %v459_v18 = vmul.f32 %v6883_v31, %v8563_v53  ;;  %v6969_v5 = vld [vmem:[%s5715_s15 + $0x98] sm:$0xff]  ;;  %v7078_v13 = vld [vmem:[%s5715_s15 + $0xf0] sm:$0xff] }
  0xc9   : > { %5093 = vmatprep.subr.bf16.mxu0 %v5550_v22  ;;  %4900 = vmatpush3.bf16.msra.mxu1 %v5549_v0  ;;  %v6924_v56 = vadd.f32 %v6827_v60, %v3625_v57  ;;  %v6927_v0 = vadd.f32 %v6827_v60, %v3626_v14  ;;  %v8564_v36 = vld [vmem:[#allocation46_spill] sm:$0xff]  ;;  %v457_v57 = vmul.f32 %v6782_v39, %v8563_v53 }
  0xca   : > { %4901 = vmatprep.subr.bf16.mxu1 %v5551_v50  ;;  %v1137_v8 = vmul.f32 %v8564_v36, %v8532_v34  ;;  %v1138_v14 = vmul.f32 %v8564_v36, %v8533_v20  ;;  %v8565_v34 = vld [vmem:[#allocation58_spill] sm:$0xff]  ;;  %v6964_v20 = vld [vmem:[%s5715_s15 + $0x90] sm:$0xff]  ;;  %v461_v9 = vmul.f32 %v6969_v5, %v8563_v53  ;;  %v6986_v54 = vmul.f32 %v6672_v58, %v8546_v2 }
  0xcb   : > { %8555 = vst [vmem:[#allocation11_spill] sm:$0xff] %v6924_v56  ;;  %8556 = vst [vmem:[#allocation89_spill] sm:$0xff] %v6927_v0  ;;  %v464_v52 = vmul.f32 %v7007_v23, %v8563_v53  ;;  %v7166_v23 = vld [vmem:[%s5715_s15 + $0x158] sm:$0xff] }
  0xcc   : > { %5094 = vmatpush3.bf16.msra.mxu0 %v5550_v22  ;;  %v8562_v22 = vld [vmem:[#allocation95_spill] sm:$0xff]  ;;  %v6973_v56 = vadd.f32 %v1138_v14, %v457_v57  ;;  %8572 = vst [vmem:[#allocation74_spill] sm:$0xff] %v6986_v54  ;;  %v8573_v14 = vld [vmem:[#allocation21_spill] sm:$0xff]  ;;  %8578 = vst [vmem:[#allocation46_spill] sm:$0xff] %v7029_v37 }
  0xcd   : > { %4902 = vmatpush3.bf16.msra.mxu1 %v5551_v50  ;;  %5127 = vmatprep.subr.bf16.mxu0 %v6914_v46  ;;  %v456_v50 = vmul.f32 %v6777_v16, %v8563_v53  ;;  %v1140_v16 = vmul.f32 %v8564_v36, %v8546_v2  ;;  %v6989_v57 = vld [vmem:[%s5715_s15 + $0xa8] sm:$0xff]  ;;  %v1143_v44 = vmul.f32 %v8564_v36, %v8573_v14 }
  0xce   : > { %4872 = vmatmul.mubr.bf16.gmra.mrb[16].mxu1 %v8557_v25  ;;  %5175 = vmatprep.subr.bf16.mxu1 %v6921_v62  ;;  %v460_v25 = vmul.f32 %v6964_v20, %v8563_v53  ;;  %v463_v2 = vmul.f32 %v7002_v6, %v8563_v53  ;;  %8591 = vst [vmem:[#allocation105_spill] sm:$0xff] %v7078_v13  ;;  %8619 = vst [vmem:[#allocation122_spill] sm:$0xff] %v7166_v23 }
  0xcf   : > { %5064 = vmatmul.mubr.bf16.gmra.mrb[16].mxu0 %v8558_v61  ;;  %4875 = vmatprep.mubr.bf16.mxu1 %v8559_v7  ;;  %v6961_v39 = vadd.f32 %v1137_v8, %v456_v50  ;;  %v8569_v50 = vld [vmem:[#allocation18_spill] sm:$0xff] }
  0xd0   : > { %5067 = vmatprep.mubr.bf16.mxu0 %v8560_v47  ;;  %v1141_v8 = vmul.f32 %v8564_v36, %v8569_v50  ;;  %v7045_v47 = vmul.f32 %v6672_v58, %v8573_v14 }
  0xd6   : > { %4876 = vmatmul.mubr.bf16.gmra.mrb[20].mxu1 %v8561_v41  ;;  %v8566_v41 = vld [vmem:[#allocation59_spill] sm:$0xff] }
  0xd7   : > { %5068 = vmatmul.mubr.bf16.gmra.mrb[20].mxu0 %v6683_v11  ;;  %4879 = vmatprep.mubr.bf16.mxu1 %v8562_v22  ;;  %v1139_v22 = vmul.f32 %v8564_v36, %v8545_v27  ;;  %v6959_v7 = vpack.c.bf16 %v8566_v41, %v8565_v34  ;;  %v6977_v41 = vmul.f32 %v6672_v58, %v8545_v27  ;;  %v8570_v34 = vld [vmem:[#allocation19_spill] sm:$0xff]  ;;  %v8579_v11 = vld [vmem:[#allocation25_spill] sm:$0xff] }
  0xd8   : > { %5071 = vmatprep.mubr.bf16.mxu0 %v6691_v42  ;;  %v1142_v0 = vmul.f32 %v8564_v36, %v8570_v34  ;;  %v462_v27 = vmul.f32 %v6989_v57, %v8563_v53  ;;  %8582 = vst [vmem:[#allocation59_spill] sm:$0xff] %v7045_v47  ;;  %v8587_v47 = vld [vmem:[#allocation30_spill] sm:$0xff] }
  0xd9   : > { %8567 = vst [vmem:[#allocation15_spill] sm:$0xff] %v6959_v7  ;;  %8568 = vst [vmem:[#allocation16_spill] sm:$0xff] %v6977_v41  ;;  %v6997_v59 = vadd.f32 %v1139_v22, %v458_v29  ;;  %v7024_v29 = vmul.f32 %v6672_v58, %v8570_v34  ;;  %v8577_v22 = vld [vmem:[#allocation22_spill] sm:$0xff]  ;;  %v7071_v41 = vmul.f32 %v6672_v58, %v8579_v11 }
  0xda   : > { %v7035_v42 = vadd.f32 %v1142_v0, %v461_v9  ;;  %v7049_v54 = vmul.f32 %v6672_v58, %v8577_v22  ;;  %v7054_v0 = vld [vmem:[%s5715_s15 + $0xd8] sm:$0xff] }
  0xdb   : > { %8576 = vst [vmem:[#allocation36_spill] sm:$0xff] %v7024_v29  ;;  %v7041_v29 = vadd.f32 %v1143_v44, %v462_v27  ;;  %8584 = vst [vmem:[#allocation100_spill] sm:$0xff] %v7054_v0  ;;  %v8586_v27 = vld [vmem:[#allocation29_spill] sm:$0xff] }
  0xdc   : > { %8583 = vst [vmem:[#allocation99_spill] sm:$0xff] %v7049_v54  ;;  %v1147_v14 = vmul.f32 %v8564_v36, %v8586_v27  ;;  %8589 = vst [vmem:[#allocation103_spill] sm:$0xff] %v7071_v41 }
  0xdd   : > { %8581 = vst [vmem:[#allocation58_spill] sm:$0xff] %v7041_v29 }
  0xde   : > { %4880 = vmatmul.mubr.bf16.gmra.mrb[24].mxu1 %v8571_v12  ;;  %v6999_v12 = vadd.f32 %v1140_v16, %v459_v18  ;;  %v7020_v18 = vmul.f32 %v6672_v58, %v8569_v50  ;;  %v1144_v16 = vmul.f32 %v8564_v36, %v8577_v22  ;;  %v1145_v50 = vmul.f32 %v8564_v36, %v8579_v11 }
  0xdf   : > { %5072 = vmatmul.mubr.bf16.gmra.mrb[24].mxu0 %v6737_v32  ;;  %4883 = vmatprep.mubr.bf16.mxu1 %v6687_v48  ;;  %v7016_v48 = vld [vmem:[%s5715_s15 + $0x1a0] sm:$0xff]  ;;  %v7033_v32 = vadd.f32 %v1141_v8, %v460_v25  ;;  %v466_v25 = vmul.f32 %v7054_v0, %v8563_v53  ;;  %v1148_v22 = vmul.f32 %v8564_v36, %v8587_v47 }
  0xe0   : > { %5075 = vmatprep.mubr.bf16.mxu0 %v6959_v7  ;;  %8575 = vst [vmem:[#allocation32_spill] sm:$0xff] %v7020_v18  ;;  %v465_v7 = vmul.f32 %v7029_v37, %v8563_v53  ;;  %v8580_v18 = vld [vmem:[#allocation26_spill] sm:$0xff]  ;;  %v2650_v9 = vpack.c.bf16 %v7016_v48, %v7013_v21  ;;  %v7067_v54 = vadd.f32 %v1144_v16, %v463_v2  ;;  %v7091_v16 = vld [vmem:[%s5715_s15 + $0xf8] sm:$0xff] }
  0xe1   : > { %v1146_v34 = vmul.f32 %v8564_v36, %v8580_v18  ;;  %v7059_v8 = vld [vmem:[%s5715_s15 + $0xe0] sm:$0xff]  ;;  %v7075_v61 = vmul.f32 %v6672_v58, %v8580_v18  ;;  %v7082_v0 = vadd.f32 %v1145_v50, %v464_v52  ;;  %v7088_v2 = vmul.f32 %v6672_v58, %v8586_v27  ;;  %8595 = vst [vmem:[#allocation109_spill] sm:$0xff] %v7091_v16  ;;  %v8597_v52 = vld [vmem:[#allocation39_spill] sm:$0xff]  ;;  %v8598_v50 = vld [vmem:[#allocation40_spill] sm:$0xff] }
  0xe2   : > { %8585 = vst [vmem:[#allocation101_spill] sm:$0xff] %v7059_v8  ;;  %v467_v44 = vmul.f32 %v7059_v8, %v8563_v53  ;;  %8588 = vst [vmem:[#allocation102_spill] sm:$0xff] %v7067_v54  ;;  %v468_v8 = vmul.f32 %v7078_v13, %v8563_v53  ;;  %v469_v18 = vmul.f32 %v7091_v16, %v8563_v53  ;;  %v8599_v27 = vld [vmem:[#allocation72_spill] sm:$0xff] }
  0xe3   : > { %8590 = vst [vmem:[#allocation104_spill] sm:$0xff] %v7075_v61  ;;  %8592 = vst [vmem:[#allocation106_spill] sm:$0xff] %v7082_v0  ;;  %v7084_v37 = vadd.f32 %v1146_v34, %v465_v7  ;;  %v7098_v11 = vmul.f32 %v6672_v58, %v8587_v47  ;;  %v1149_v7 = vmul.f32 %v8564_v36, %v8597_v52  ;;  %v8604_v16 = vld [vmem:[#allocation8_spill] sm:$0xff] }
  0xe4   : > { %8594 = vst [vmem:[#allocation108_spill] sm:$0xff] %v7088_v2  ;;  %v1150_v34 = vmul.f32 %v8564_v36, %v8598_v50  ;;  %v7105_v2 = vadd.f32 %v1147_v14, %v466_v25  ;;  %v7107_v61 = vadd.f32 %v1148_v22, %v467_v44  ;;  %v8606_v14 = vld [vmem:[#allocation42_spill] sm:$0xff]  ;;  %v8607_v25 = vld [vmem:[#allocation43_spill] sm:$0xff]  ;;  %v8612_v13 = vld [vmem:[#allocation60_spill] sm:$0xff] }
  0xe5   : > { %8593 = vst [vmem:[#allocation107_spill] sm:$0xff] %v7084_v37  ;;  %8596 = vst [vmem:[#allocation110_spill] sm:$0xff] %v7098_v11  ;;  %v7115_v11 = vld [vmem:[%s5715_s15 + $0x110] sm:$0xff]  ;;  %v1151_v22 = vmul.f32 %v8564_v36, %v8606_v14  ;;  %v1152_v44 = vmul.f32 %v8564_v36, %v8607_v25  ;;  %v7149_v37 = vadd.f32 %v1149_v7, %v468_v8  ;;  %v8620_v8 = vld [vmem:[#allocation61_spill] sm:$0xff] }
  0xe6   : > { %4884 = vmatmul.mubr.bf16.gmra.mrb[28].mxu1 %v6706_v33  ;;  %8600 = vst [vmem:[#allocation72_spill] sm:$0xff] %v7105_v2  ;;  %8601 = vst [vmem:[#allocation111_spill] sm:$0xff] %v7107_v61  ;;  %v7110_v33 = vld [vmem:[%s5715_s15 + $0x108] sm:$0xff]  ;;  %v471_v41 = vmul.f32 %v7115_v11, %v8563_v53  ;;  %v1157_v2 = vmul.f32 %v8564_v36, %v8612_v13  ;;  %v7161_v0 = vmul.f32 %v6672_v58, %v8607_v25 }
  0xe7   : > { %5076 = vmatmul.mubr.bf16.gmra.mrb[28].mxu0 %v2650_v9  ;;  %4903 = vmatprep.mubr.bf16.mxu1 %v8599_v27  ;;  %8602 = vst [vmem:[#allocation112_spill] sm:$0xff] %v7110_v33  ;;  %v470_v47 = vmul.f32 %v7110_v33, %v8563_v53  ;;  %8603 = vst [vmem:[#allocation113_spill] sm:$0xff] %v7115_v11  ;;  %v7122_v9 = vmul.f32 %v6672_v58, %v8597_v52  ;;  %v7129_v27 = vld [vmem:[%s5715_s15 + $0x120] sm:$0xff] }
  0xe8   : > { %5095 = vmatprep.mubr.bf16.mxu0 %v8604_v16  ;;  %8608 = vst [vmem:[#allocation114_spill] sm:$0xff] %v7129_v27  ;;  %v472_v33 = vmul.f32 %v7129_v27, %v8563_v53  ;;  %v7135_v11 = vmul.f32 %v6672_v58, %v8598_v50  ;;  %v7138_v16 = vld [vmem:[%s5715_s15 + $0x128] sm:$0xff]  ;;  %8613 = vst [vmem:[#allocation118_spill] sm:$0xff] %v7149_v37  ;;  %v7151_v27 = vadd.f32 %v1150_v34, %v469_v18 }
  0xe9   : > { %8605 = vst [vmem:[#allocation8_spill] sm:$0xff] %v7122_v9  ;;  %8610 = vst [vmem:[#allocation116_spill] sm:$0xff] %v7138_v16  ;;  %v473_v52 = vmul.f32 %v7138_v16, %v8563_v53  ;;  %v7143_v9 = vld [vmem:[%s5715_s15 + $0x150] sm:$0xff]  ;;  %v7155_v50 = vmul.f32 %v6672_v58, %v8606_v14  ;;  %v477_v18 = vmul.f32 %v7166_v23, %v8563_v53  ;;  %v5553_v37 = vld [vmem:[%s8121_s1 + $0x208] sm:$0xff]  }
  0xea   : > { %8609 = vst [vmem:[#allocation115_spill] sm:$0xff] %v7135_v11  ;;  %8611 = vst [vmem:[#allocation117_spill] sm:$0xff] %v7143_v9  ;;  %v476_v61 = vmul.f32 %v7143_v9, %v8563_v53  ;;  %v8616_v11 = vld [vmem:[#allocation51_spill] sm:$0xff]  ;;  %v8618_v9 = vld [vmem:[#allocation52_spill] sm:$0xff]  ;;  %v1158_v7 = vmul.f32 %v8564_v36, %v8620_v8  ;;  %v7172_v34 = vadd.f32 %v1151_v22, %v470_v47 }
  0xeb   : > { %8614 = vst [vmem:[#allocation119_spill] sm:$0xff] %v7151_v27  ;;  %8615 = vst [vmem:[#allocation120_spill] sm:$0xff] %v7155_v50  ;;  %v1153_v16 = vmul.f32 %v8564_v36, %v8616_v11  ;;  %v1154_v54 = vmul.f32 %v8564_v36, %v8618_v9  ;;  %v7174_v14 = vadd.f32 %v1152_v44, %v471_v41  ;;  %v7177_v50 = vld [vmem:[%s5715_s15 + $0x138] sm:$0xff]  ;;  %v7191_v47 = vld [vmem:[%s5715_s15 + $0x140] sm:$0xff] }
  0xec   : > { %8617 = vst [vmem:[#allocation121_spill] sm:$0xff] %v7161_v0  ;;  %8621 = vst [vmem:[#allocation123_spill] sm:$0xff] %v7172_v34  ;;  %v474_v25 = vmul.f32 %v7177_v50, %v8563_v53  ;;  %v8624_v0 = vld [vmem:[#allocation53_spill] sm:$0xff]  ;;  %v7188_v23 = vmul.f32 %v6672_v58, %v8616_v11  ;;  %v475_v41 = vmul.f32 %v7191_v47, %v8563_v53  ;;  %v8629_v11 = vld [vmem:[#allocation54_spill] sm:$0xff] }
  0xed   : > { %8622 = vst [vmem:[#allocation124_spill] sm:$0xff] %v7174_v14  ;;  %8623 = vst [vmem:[#allocation125_spill] sm:$0xff] %v7177_v50  ;;  %v1155_v27 = vmul.f32 %v8564_v36, %v8624_v0  ;;  %v1189_v22 = vadd.f32 %v1157_v2, %v476_v61  ;;  %v8627_v44 = vld [vmem:[#allocation49_spill] sm:$0xff]  ;;  %v5557_v14 = vld [vmem:[%s8125_s5 + $0x8] sm:$0xff]   ;;  %v7201_v34 = vadd.f32 %v1153_v16, %v472_v33 }
  0xee   : > { %8625 = vst [vmem:[#allocation126_spill] sm:$0xff] %v7188_v23  ;;  %8626 = vst [vmem:[#allocation127_spill] sm:$0xff] %v7191_v47  ;;  %v1613_v50 = vmul.f32 %v6665_v3, %v8627_v44  ;;  %4904 = vmatmul.mubr.bf16.vlgmr.msra.gmra.mrb[0].mxu1 %v6366_v17  ;;  %v7205_v23 = vmul.f32 %v6672_v58, %v8618_v9  ;;  %v1156_v29 = vmul.f32 %v8564_v36, %v8629_v11  ;;  %v8630_v53 = vld [vmem:[#allocation9_spill] sm:$0xff]  ;;  %v8631_v2 = vld [vmem:[#allocation50_spill] sm:$0xff] }
  0xef   : > { %5096 = vmatmul.mubr.bf16.vlgmr.msra.gmra.mrb[0].mxu0 %v8630_v53  ;;  %4907 = vmatprep.mubr.bf16.mxu1 %v6346_v38  ;;  %v7211_v61 = vadd.f32 %v1154_v54, %v473_v52  ;;  %v1190_v17 = vadd.f32 %v1158_v7, %v477_v18  ;;  %v1614_v44 = vmul.f32 %v6665_v3, %v8631_v2  ;;  %v8632_v33 = vld [vmem:[#allocation14_spill] sm:$0xff]  ;;  %v7218_v16 = vld [vmem:[%s5715_s15 + $0x1a8] sm:$0x3]  ;;  %v5554_v54 = vld [vmem:[%s8121_s1 + $0x210] sm:$0xff]   ;;  %v2981_v18 = vrot.slane %v7013_v21, 1 }
  0xf0   : > { %8628 = vst [vmem:[#allocation128_spill] sm:$0xff] %v7205_v23  ;;  %5128 = vmatpush3.bf16.msra.mxu0 %v6914_v46  ;;  %5099 = vmatprep.mubr.bf16.mxu0 %v8632_v33  ;;  %v7220_v23 = vadd.f32 %v1155_v27, %v474_v25  ;;  %v7224_v36 = vmul.f32 %v6672_v58, %v8624_v0  ;;  %v7235_v52 = vld [vmem:[%s5715_s15 + $0x168] sm:$0xff]  ;;  %v5559_v27 = vld [vmem:[%s8125_s5 + $0x10] sm:$0xff]   ;;  %v2982_v7 = vrot.slane %v7016_v48, 1  ;;  %v2984_v33 = vrot.slane %v7218_v16, 1 }
  0xf1   : > { %v7228_v38 = vmul.f32 %v6672_v58, %v8629_v11  ;;  %5129 = vmatprep.subr.bf16.mxu0 %v5553_v37  ;;  %5176 = vmatpush3.bf16.msra.mxu1 %v6921_v62  ;;  %v1645_v46 = vadd.f32 %v1613_v50, %v1189_v22  ;;  %8635 = vst [vmem:[#allocation129_spill] sm:$0xff] %v7235_v52  ;;  %v7253_v50 = vld [vmem:[%s8123_s3 + $0x6] ss:$0 sm:$0xff]  ;;  %v8640_v11 = vld [vmem:[#allocation63_spill] sm:$0xff]  ;;  %v8644_v9 = vld [vmem:[#allocation20_spill] sm:$0xff] }
  0xf2   : > { %8633 = vst [vmem:[#allocation9_spill] sm:$0xff] %v7224_v36  ;;  %v1941_v25 = vmul.f32 %v7235_v52, %v6697_v24  ;;  %5177 = vmatprep.subr.bf16.mxu1 %v5557_v14  ;;  %v7244_v53 = vadd.f32 %v1156_v29, %v475_v41  ;;  %v7248_v62 = vmul.f32 %v6672_v58, %v8612_v13  ;;  %v7263_v41 = vld [vmem:[%s5715_s15 + $0x170] sm:$0xff] }
  0xf3   : > { %8634 = vst [vmem:[#allocation14_spill] sm:$0xff] %v7228_v38  ;;  %v2944_v22 = vmul.f32 %v7253_v50, %v7013_v21  ;;  %v7260_v52 = vmul.f32 %v6672_v58, %v8620_v8  ;;  %v1646_v29 = vadd.f32 %v1614_v44, %v1190_v17  ;;  %8639 = vst [vmem:[#allocation133_spill] sm:$0xff] %v7263_v41  ;;  %v8641_v38 = vld [vmem:[#allocation64_spill] sm:$0xff]  ;;  %v7276_v8 = vld [vmem:[%s8123_s3 + $0x7] ss:$0 sm:$0xff] }
  0xf4   : > { %8636 = vst [vmem:[#allocation130_spill] sm:$0xff] %v7244_v53  ;;  %8637 = vst [vmem:[#allocation131_spill] sm:$0xff] %v7248_v62  ;;  %v1942_v13 = vmul.f32 %v7263_v41, %v6697_v24  ;;  %5130 = vmatpush3.bf16.msra.mxu0 %v5553_v37  ;;  %v2945_v62 = vmul.f32 %v7253_v50, %v7016_v48  ;;  %v2279_v0 = vmul.f32 %v6672_v58, %v8640_v11  ;;  %v8642_v44 = vld [vmem:[#allocation67_spill] sm:$0xff]  ;;  %v5556_v37 = vld [vmem:[%s8121_s1 + $0x218] sm:$0xff]  }
  0xf5   : > { %8638 = vst [vmem:[#allocation132_spill] sm:$0xff] %v7260_v52  ;;  %v2280_v36 = vmul.f32 %v6672_v58, %v8641_v38  ;;  %v7280_v17 = vmul.f32 %v7276_v8, %v8642_v44  ;;  %5131 = vmatprep.subr.bf16.mxu0 %v5554_v54  ;;  %5178 = vmatpush3.bf16.msra.mxu1 %v5557_v14  ;;  %v5561_v58 = vld [vmem:[%s8125_s5 + $0x18] sm:$0xff]   ;;  %v3316_v44 = vrot.slane %v7013_v21, 2  ;;  %v3317_v11 = vrot.slane %v7016_v48, 2 }
  0xf6   : > { %v1973_v41 = vadd.f32 %v1941_v25, %v1645_v46  ;;  %4908 = vmatmul.mubr.bf16.gmra.mrb[4].mxu1 %v6414_v15  ;;  %5179 = vmatprep.subr.bf16.mxu1 %v5559_v27  ;;  %v7290_v38 = vsel %vm560_vm0, %v2981_v18, %v2982_v7  ;;  %v8643_v52 = vld [vmem:[#allocation17_spill] sm:$0xff]  ;;  %v2976_v14 = vadd.f32 %v2944_v22, %v6728_v28  ;;  %v3319_v25 = vrot.slane %v7218_v16, 2  ;;  %v8646_v16 = vld [vmem:[#allocation2_spill] sm:$0xff] }
  0xf7   : > { %5100 = vmatmul.mubr.bf16.gmra.mrb[4].mxu0 %v8643_v52  ;;  %4911 = vmatprep.mubr.bf16.mxu1 %v6453_v30  ;;  %v7298_v15 = vsel %vm560_vm0, %v2982_v7, %v2984_v33  ;;  %v3282_v46 = vmul.f32 %v7276_v8, %v7290_v38  ;;  %v1974_v18 = vadd.f32 %v1942_v13, %v1646_v29  ;;  %v8645_v30 = vld [vmem:[#allocation69_spill] sm:$0xff]  ;;  %v5558_v13 = vld [vmem:[%s8121_s1 + $0x220] sm:$0xff]   ;;  %v7341_v33 = vld [vmem:[%s8123_s3 + $0x8] ss:$0 sm:$0xff] }
  0xf8   : > { %5103 = vmatprep.mubr.bf16.mxu0 %v8644_v9  ;;  %5132 = vmatpush3.bf16.msra.mxu0 %v5554_v54  ;;  %v2977_v48 = vadd.f32 %v2945_v62, %v6739_v55  ;;  %v3283_v21 = vmul.f32 %v7276_v8, %v7298_v15  ;;  %v3281_v28 = vmul.f32 %v7276_v8, %v8645_v30  ;;  %v7321_v9 = vld [vmem:[%s8123_s3 + $0x5] ss:$0 sm:$0xff] }
  0xf9   : > { %v1593_v52 = vmul.f32 %v6665_v3, %v6390_v10  ;;  %v1594_v7 = vmul.f32 %v6665_v3, %v6393_v45  ;;  %5133 = vmatprep.subr.bf16.mxu0 %v5556_v37  ;;  %5180 = vmatpush3.bf16.msra.mxu1 %v5559_v27  ;;  %v1921_v55 = vmul.f32 %v6878_v43, %v6697_v24  ;;  %v5563_v54 = vld [vmem:[%s8125_s5 + $0x20] sm:$0xff]  }
  0xfa   : > { %v2614_v10 = vmul.f32 %v7321_v9, %v6652_v4  ;;  %v2615_v45 = vmul.f32 %v7321_v9, %v8646_v16  ;;  %5181 = vmatprep.subr.bf16.mxu1 %v5561_v58  ;;  %v7331_v27 = vsel %vm1193_vm1, %v3316_v44, %v3317_v11  ;;  %v1922_v43 = vmul.f32 %v6883_v31, %v6697_v24 }
  0xfb   : > { %8647 = vst [vmem:[#allocation67_spill] sm:$0xff] %v7331_v27  ;;  %v3314_v62 = vadd.f32 %v3282_v46, %v2976_v14  ;;  %v7336_v22 = vsel %vm1193_vm1, %v3317_v11, %v3319_v25  ;;  %v3617_v29 = vmul.f32 %v7341_v33, %v7331_v27  ;;  %v3315_v30 = vadd.f32 %v3283_v21, %v2977_v48  ;;  %v5560_v14 = vld [vmem:[%s8121_s1 + $0x228] sm:$0xff]   ;;  %v5608_v46 = vld [vmem:[%s5715_s15 + $0x180] sm:$0xff]  ;;  %v8650_v21 = vld [vmem:[#allocation33_spill] sm:$0xff] }
  0xfc   : > { %8648 = vst [vmem:[#allocation17_spill] sm:$0xff] %v7336_v22  ;;  %5134 = vmatpush3.bf16.msra.mxu0 %v5556_v37  ;;  %v3618_v44 = vmul.f32 %v7341_v33, %v7336_v22  ;;  %v2311_v16 = vadd.f32 %v2279_v0, %v1973_v41  ;;  %v2312_v4 = vadd.f32 %v2280_v36, %v1974_v18  ;;  %v8649_v41 = vld [vmem:[#allocation23_spill] sm:$0xff] }
  0xfd   : > { %v1625_v31 = vadd.f32 %v1593_v52, %v6961_v39  ;;  %v1626_v11 = vadd.f32 %v1594_v7, %v6973_v56  ;;  %5135 = vmatprep.subr.bf16.mxu0 %v5558_v13  ;;  %5182 = vmatpush3.bf16.msra.mxu1 %v5561_v58  ;;  %v2942_v37 = vmul.f32 %v5608_v46, %v7253_v50  ;;  %v5565_v39 = vld [vmem:[%s8125_s5 + $0x28] sm:$0xff]  }
  0xfe   : > { %v1923_v25 = vmul.f32 %v6964_v20, %v6697_v24  ;;  %4912 = vmatmul.mubr.bf16.gmra.mrb[8].mxu1 %v6461_v40  ;;  %5183 = vmatprep.subr.bf16.mxu1 %v5563_v54  ;;  %v2646_v56 = vadd.f32 %v2614_v10, %v2311_v16  ;;  %v2647_v0 = vadd.f32 %v2615_v45, %v2312_v4  ;;  %v5609_v58 = vld [vmem:[%s5715_s15 + $0x188] sm:$0xff] }
  0xff   : > { %v1595_v36 = vmul.f32 %v6665_v3, %v8547_v49  ;;  %5104 = vmatmul.mubr.bf16.gmra.mrb[8].mxu0 %v8649_v41  ;;  %4915 = vmatprep.mubr.bf16.mxu1 %v6500_v35  ;;  %v2943_v18 = vmul.f32 %v5609_v58, %v7253_v50  ;;  %v3649_v48 = vadd.f32 %v3617_v29, %v3314_v62  ;;  %v5562_v35 = vld [vmem:[%s8121_s1 + $0x230] sm:$0xff]   ;;  %v8654_v46 = vld [vmem:[#allocation79_spill] sm:$0xff] }
 0x100   : > { %v3615_v40 = vmul.f32 %v7341_v33, %v6710_v19  ;;  %5107 = vmatprep.mubr.bf16.mxu0 %v8650_v21  ;;  %5136 = vmatpush3.bf16.msra.mxu0 %v5558_v13  ;;  %v2974_v52 = vadd.f32 %v2942_v37, %v2646_v56  ;;  %v3650_v7 = vadd.f32 %v3618_v44, %v3315_v30  ;;  %v8657_v58 = vld [vmem:[#allocation35_spill] sm:$0xff] }
 0x101   : > { %v3616_v4 = vmul.f32 %v7341_v33, %v6714_v51  ;;  %5137 = vmatprep.subr.bf16.mxu0 %v5560_v14  ;;  %5184 = vmatpush3.bf16.msra.mxu1 %v5563_v54  ;;  %v2975_v10 = vadd.f32 %v2943_v18, %v2647_v0  ;;  %v7375_v16 = vadd.f32 %v6827_v60, %v3649_v48  ;;  %v5566_v51 = vld [vmem:[%s8125_s5 + $0x30] sm:$0xff]   ;;  %v8674_v27 = vld [vmem:[#allocation91_spill] sm:$0xff] }
 0x102   : > { %v7377_v45 = vadd.f32 %v1921_v55, %v1625_v31  ;;  %v1924_v19 = vmul.f32 %v6969_v5, %v6697_v24  ;;  %5185 = vmatprep.subr.bf16.mxu1 %v5565_v39  ;;  %v3312_v13 = vadd.f32 %v7280_v17, %v2974_v52  ;;  %v7386_v62 = vadd.f32 %v6827_v60, %v3650_v7  ;;  %v8653_v55 = vld [vmem:[#allocation78_spill] sm:$0xff]  ;;  %v8655_v0 = vld [vmem:[#allocation80_spill] sm:$0xff]  ;;  %v8660_v52 = vld [vmem:[#allocation45_spill] sm:$0xff] }
 0x103   : > { %8651 = vst [vmem:[#allocation20_spill] sm:$0xff] %v7375_v16  ;;  %v7388_v54 = vadd.f32 %v1922_v43, %v1626_v11  ;;  %v1596_v29 = vmul.f32 %v6665_v3, %v8548_v1  ;;  %v1597_v30 = vmul.f32 %v6665_v3, %v8653_v55  ;;  %v3313_v44 = vadd.f32 %v3281_v28, %v2975_v10  ;;  %v8671_v43 = vld [vmem:[#allocation106_spill] sm:$0xff]  ;;  %v8672_v16 = vld [vmem:[#allocation107_spill] sm:$0xff] }
 0x104   : > { %8652 = vst [vmem:[#allocation69_spill] sm:$0xff] %v7386_v62  ;;  %v7396_v31 = vmul.f32 %v7321_v9, %v8547_v49  ;;  %v1598_v37 = vmul.f32 %v6665_v3, %v8654_v46  ;;  %5138 = vmatpush3.bf16.msra.mxu0 %v5560_v14  ;;  %v3647_v17 = vadd.f32 %v3615_v40, %v3312_v13  ;;  %v5564_v49 = vld [vmem:[%s8121_s1 + $0x238] sm:$0xff]   ;;  %v8663_v13 = vld [vmem:[#allocation84_spill] sm:$0xff] }
 0x105   : > { %v1627_v11 = vadd.f32 %v1595_v36, %v6997_v59  ;;  %v7405_v56 = vmul.f32 %v7321_v9, %v8548_v1  ;;  %5139 = vmatprep.subr.bf16.mxu0 %v5562_v35  ;;  %5186 = vmatpush3.bf16.msra.mxu1 %v5565_v39  ;;  %v3648_v28 = vadd.f32 %v3616_v4, %v3313_v44  ;;  %v5567_v59 = vld [vmem:[%s8125_s5 + $0x38] sm:$0xff]   ;;  %v8662_v4 = vld [vmem:[#allocation75_spill] sm:$0xff] }
 0x106   : > { %v1925_v14 = vmul.f32 %v6989_v57, %v6697_v24  ;;  %v1599_v41 = vmul.f32 %v6665_v3, %v8655_v0  ;;  %4916 = vmatmul.mubr.bf16.gmra.mrb[12].mxu1 %v8544_v26  ;;  %5187 = vmatprep.subr.bf16.mxu1 %v5566_v51  ;;  %v7419_v1 = vadd.f32 %v6827_v60, %v3647_v17  ;;  %v8659_v40 = vld [vmem:[#allocation81_spill] sm:$0xff] }
 0x107   : > { %v1628_v36 = vadd.f32 %v1596_v29, %v6999_v12  ;;  %v1629_v39 = vadd.f32 %v1597_v30, %v7033_v32  ;;  %5108 = vmatmul.mubr.bf16.gmra.mrb[12].mxu0 %v8657_v58  ;;  %4919 = vmatprep.mubr.bf16.mxu1 %v8550_v63  ;;  %v7426_v18 = vadd.f32 %v6827_v60, %v3648_v28  ;;  %v8661_v63 = vld [vmem:[#allocation58_spill] sm:$0xff]  ;;  %v8673_v62 = vld [vmem:[#allocation101_spill] sm:$0xff] }
 0x108   : > { %8656 = vst [vmem:[#allocation23_spill] sm:$0xff] %v7419_v1  ;;  %v1630_v26 = vadd.f32 %v1598_v37, %v7035_v42  ;;  %v1926_v48 = vmul.f32 %v7002_v6, %v6697_v24  ;;  %v1600_v21 = vmul.f32 %v6665_v3, %v8659_v40  ;;  %5111 = vmatprep.mubr.bf16.mxu0 %v8660_v52  ;;  %v8665_v37 = vld [vmem:[#allocation46_spill] sm:$0xff] }
 0x109   : > { %8658 = vst [vmem:[#allocation33_spill] sm:$0xff] %v7426_v18  ;;  %5140 = vmatpush3.bf16.msra.mxu0 %v5562_v35  ;;  %v7434_v12 = vadd.f32 %v1923_v25, %v1627_v11  ;;  %v7438_v32 = vmul.f32 %v7321_v9, %v8653_v55  ;;  %5188 = vmatpush3.bf16.msra.mxu1 %v5566_v51  ;;  %v8664_v35 = vld [vmem:[#allocation85_spill] sm:$0xff]  ;;  %v8666_v28 = vld [vmem:[#allocation102_spill] sm:$0xff] }
 0x10a   : > { %5141 = vmatprep.subr.bf16.mxu0 %v5564_v49  ;;  %v1631_v7 = vadd.f32 %v1599_v41, %v8661_v63  ;;  %v1927_v10 = vmul.f32 %v8662_v4, %v6697_v24  ;;  %v1601_v29 = vmul.f32 %v6665_v3, %v8663_v13  ;;  %v1602_v25 = vmul.f32 %v6665_v3, %v8664_v35  ;;  %v8667_v52 = vld [vmem:[#allocation86_spill] sm:$0xff]  ;;  %v8669_v63 = vld [vmem:[#allocation87_spill] sm:$0xff] }
 0x10b   : > { %5189 = vmatprep.subr.bf16.mxu1 %v5567_v59  ;;  %v7449_v30 = vadd.f32 %v1924_v19, %v1628_v36  ;;  %v7451_v44 = vadd.f32 %v1925_v14, %v1629_v39  ;;  %v7455_v51 = vmul.f32 %v7321_v9, %v8654_v46  ;;  %v1928_v17 = vmul.f32 %v8665_v37, %v6697_v24  ;;  %v8668_v36 = vld [vmem:[#allocation100_spill] sm:$0xff] }
 0x10c   : > { %v7459_v11 = vadd.f32 %v1926_v48, %v1630_v26  ;;  %v1632_v41 = vadd.f32 %v1600_v21, %v8666_v28  ;;  %v7464_v58 = vmul.f32 %v7321_v9, %v8655_v0  ;;  %v1603_v19 = vmul.f32 %v6665_v3, %v8667_v52  ;;  %v8670_v48 = vld [vmem:[#allocation24_spill] sm:$0xff] }
 0x10d   : > { %5142 = vmatpush3.bf16.msra.mxu0 %v5564_v49  ;;  %v7470_v14 = vmul.f32 %v7321_v9, %v8659_v40  ;;  %v1929_v39 = vmul.f32 %v8668_v36, %v6697_v24  ;;  %v1604_v26 = vmul.f32 %v6665_v3, %v8669_v63  ;;  %v1605_v21 = vmul.f32 %v6665_v3, %v8670_v48  ;;  %v8683_v36 = vld [vmem:[#allocation56_spill] sm:$0xff] }
 0x10e   : > { %5190 = vmatpush3.bf16.msra.mxu1 %v5567_v59  ;;  %v7478_v28 = vadd.f32 %v1927_v10, %v1631_v7  ;;  %v1633_v42 = vadd.f32 %v1601_v29, %v8671_v43  ;;  %v1634_v49 = vadd.f32 %v1602_v25, %v8672_v16  ;;  %v1930_v22 = vmul.f32 %v8673_v62, %v6697_v24  ;;  %v8677_v59 = vld [vmem:[#allocation27_spill] sm:$0xff]  ;;  %v8679_v43 = vld [vmem:[#allocation93_spill] sm:$0xff]  ;;  %v8680_v29 = vld [vmem:[#allocation72_spill] sm:$0xff] }
 0x10f   : > { %4920 = vmatmul.mubr.bf16.gmra.mrb[16].mxu1 %v8674_v27  ;;  %v7487_v1 = vmul.f32 %v7321_v9, %v8663_v13  ;;  %v7491_v18 = vmul.f32 %v7321_v9, %v8664_v35  ;;  %v1606_v7 = vmul.f32 %v6665_v3, %v8677_v59  ;;  %v8678_v10 = vld [vmem:[#allocation47_spill] sm:$0xff]  ;;  %v7497_v16 = vadd.f32 %v1928_v17, %v1632_v41  ;;  %v8681_v27 = vld [vmem:[#allocation105_spill] sm:$0xff] }
 0x110   : > { %5112 = vmatmul.mubr.bf16.gmra.mrb[16].mxu0 %v8678_v10  ;;  %4923 = vmatprep.mubr.bf16.mxu1 %v8679_v43  ;;  %v1635_v25 = vadd.f32 %v1603_v19, %v8680_v29  ;;  %v1931_v2 = vmul.f32 %v8681_v27, %v6697_v24  ;;  %v8682_v13 = vld [vmem:[#allocation109_spill] sm:$0xff]  ;;  %v8684_v35 = vld [vmem:[#allocation111_spill] sm:$0xff]  ;;  %v8686_v10 = vld [vmem:[#allocation112_spill] sm:$0xff]  ;;  %v7511_v41 = vadd.f32 %v1929_v39, %v1633_v42 }
 0x111   : > { %8675 = vst [vmem:[#allocation78_spill] sm:$0xff] %v7487_v1  ;;  %8676 = vst [vmem:[#allocation79_spill] sm:$0xff] %v7491_v18  ;;  %v1932_v62 = vmul.f32 %v8682_v13, %v6697_v24  ;;  %5115 = vmatprep.mubr.bf16.mxu0 %v8683_v36  ;;  %v1636_v18 = vadd.f32 %v1604_v26, %v8684_v35  ;;  %v8685_v1 = vld [vmem:[#allocation118_spill] sm:$0xff]  ;;  %v1933_v53 = vmul.f32 %v8686_v10, %v6697_v24  ;;  %v8687_v43 = vld [vmem:[#allocation28_spill] sm:$0xff] }
 0x112   : > { %v1637_v60 = vadd.f32 %v1605_v21, %v8685_v1  ;;  %v1607_v17 = vmul.f32 %v6665_v3, %v8687_v43  ;;  %v7513_v19 = vadd.f32 %v1930_v22, %v1634_v49  ;;  %v8688_v29 = vld [vmem:[#allocation31_spill] sm:$0xff]  ;;  %v8689_v13 = vld [vmem:[#allocation16_spill] sm:$0xff]  ;;  %v7521_v35 = vmul.f32 %v7321_v9, %v8667_v52  ;;  %v8691_v21 = vld [vmem:[#allocation113_spill] sm:$0xff] }
 0x113   : > { %v1608_v27 = vmul.f32 %v6665_v3, %v8688_v29  ;;  %v2291_v36 = vadd.f32 %v8689_v13, %v7377_v45  ;;  %v8690_v1 = vld [vmem:[#allocation119_spill] sm:$0xff]  ;;  %v1934_v10 = vmul.f32 %v8691_v21, %v6697_v24  ;;  %v8692_v42 = vld [vmem:[#allocation74_spill] sm:$0xff]  ;;  %v7528_v22 = vadd.f32 %v1931_v2, %v1635_v25  ;;  %v8698_v52 = vld [vmem:[#allocation116_spill] sm:$0xff] }
 0x114   : > { %v1638_v26 = vadd.f32 %v1606_v7, %v8690_v1  ;;  %v2292_v39 = vadd.f32 %v8692_v42, %v7388_v54  ;;  %v7532_v49 = vmul.f32 %v7321_v9, %v8669_v63  ;;  %v7536_v45 = vmul.f32 %v7321_v9, %v8670_v48  ;;  %v8695_v21 = vld [vmem:[#allocation123_spill] sm:$0xff]  ;;  %v8696_v2 = vld [vmem:[#allocation114_spill] sm:$0xff]  ;;  %v8697_v42 = vld [vmem:[#allocation124_spill] sm:$0xff] }
 0x115   : > { %8693 = vst [vmem:[#allocation80_spill] sm:$0xff] %v7528_v22  ;;  %v7540_v13 = vmul.f32 %v7321_v9, %v8677_v59  ;;  %v7542_v7 = vadd.f32 %v1932_v62, %v1636_v18  ;;  %v7544_v1 = vadd.f32 %v1933_v53, %v1637_v60  ;;  %v1639_v54 = vadd.f32 %v1607_v17, %v8695_v21  ;;  %v8699_v48 = vld [vmem:[#allocation94_spill] sm:$0xff]  ;;  %v8700_v60 = vld [vmem:[#allocation57_spill] sm:$0xff]  ;;  %v8701_v53 = vld [vmem:[#allocation3_spill] sm:$0xff] }
 0x116   : > { %8694 = vst [vmem:[#allocation35_spill] sm:$0xff] %v7536_v45  ;;  %v1935_v25 = vmul.f32 %v8696_v2, %v6697_v24  ;;  %v1640_v63 = vadd.f32 %v1608_v27, %v8697_v42  ;;  %v1936_v22 = vmul.f32 %v8698_v52, %v6697_v24  ;;  %v2626_v45 = vadd.f32 %v7396_v31, %v2291_v36 }
 0x117   : > { %4924 = vmatmul.mubr.bf16.gmra.mrb[20].mxu1 %v8699_v48  ;;  %v2922_v62 = vmul.f32 %v7253_v50, %v6964_v20  ;;  %v7556_v18 = vadd.f32 %v1934_v10, %v1638_v26  ;;  %v2627_v17 = vadd.f32 %v7405_v56, %v2292_v39  ;;  %v2923_v27 = vmul.f32 %v7253_v50, %v6969_v5  ;;  %v8703_v20 = vld [vmem:[#allocation37_spill] sm:$0xff]  ;;  %v8706_v39 = vld [vmem:[#allocation32_spill] sm:$0xff] }
 0x118   : > { %5116 = vmatmul.mubr.bf16.gmra.mrb[20].mxu0 %v8700_v60  ;;  %4927 = vmatprep.mubr.bf16.mxu1 %v8701_v53  ;;  %v7565_v21 = vmul.f32 %v7321_v9, %v8687_v43  ;;  %v7569_v31 = vmul.f32 %v7321_v9, %v8688_v29  ;;  %v1609_v48 = vmul.f32 %v6665_v3, %v8703_v20  ;;  %v8704_v10 = vld [vmem:[#allocation125_spill] sm:$0xff]  ;;  %v8707_v60 = vld [vmem:[#allocation36_spill] sm:$0xff]  ;;  %v8708_v43 = vld [vmem:[#allocation38_spill] sm:$0xff] }
 0x119   : > { %v1937_v36 = vmul.f32 %v8704_v10, %v6697_v24  ;;  %v8705_v26 = vld [vmem:[#allocation65_spill] sm:$0xff]  ;;  %v7576_v56 = vadd.f32 %v1935_v25, %v1639_v54  ;;  %v1938_v5 = vmul.f32 %v7191_v47, %v6697_v24  ;;  %v2293_v42 = vadd.f32 %v8706_v39, %v7434_v12  ;;  %v8709_v10 = vld [vmem:[#allocation18_spill] sm:$0xff]  ;;  %v8712_v39 = vld [vmem:[#allocation19_spill] sm:$0xff] }
 0x11a   : > { %8702 = vst [vmem:[#allocation81_spill] sm:$0xff] %v7569_v31  ;;  %5119 = vmatprep.mubr.bf16.mxu0 %v8705_v26  ;;  %v2294_v53 = vadd.f32 %v8707_v60, %v7449_v30  ;;  %v7584_v29 = vadd.f32 %v1936_v22, %v1640_v63  ;;  %v1610_v52 = vmul.f32 %v6665_v3, %v8708_v43  ;;  %v5610_v3 = vld [vmem:[%s8123_s3 + $0x2] ss:$0 sm:$0xff]  ;;  %v8713_v22 = vld [vmem:[#allocation41_spill] sm:$0xff] }
 0x11b   : > { %v2954_v31 = vadd.f32 %v2922_v62, %v2626_v45  ;;  %v3260_v26 = vmul.f32 %v7276_v8, %v8709_v10  ;;  %v7592_v54 = vmul.f32 %v7321_v9, %v8703_v20  ;;  %v7596_v25 = vmul.f32 %v7321_v9, %v8708_v43  ;;  %v8714_v62 = vld [vmem:[#allocation117_spill] sm:$0xff] }
 0x11c   : > { %v2955_v12 = vadd.f32 %v2923_v27, %v2627_v17  ;;  %v3261_v30 = vmul.f32 %v7276_v8, %v8712_v39  ;;  %v1641_v63 = vadd.f32 %v1609_v48, %v7201_v34  ;;  %v1611_v45 = vmul.f32 %v5610_v3, %v8713_v22  ;;  %v8715_v34 = vld [vmem:[#allocation59_spill] sm:$0xff] }
 0x11d   : > { %8710 = vst [vmem:[#allocation45_spill] sm:$0xff] %v7592_v54  ;;  %8711 = vst [vmem:[#allocation58_spill] sm:$0xff] %v7596_v25  ;;  %v1939_v10 = vmul.f32 %v8714_v62, %v6697_v24  ;;  %v2924_v60 = vmul.f32 %v7253_v50, %v6989_v57  ;;  %v2628_v47 = vadd.f32 %v7438_v32, %v2293_v42  ;;  %v5611_v25 = vld [vmem:[%s8123_s3 + $0x3] ss:$0 sm:$0xff]  ;;  %v8717_v54 = vld [vmem:[#allocation97_spill] sm:$0xff] }
 0x11e   : > { %v2629_v17 = vadd.f32 %v7455_v51, %v2294_v53  ;;  %v2925_v27 = vmul.f32 %v7253_v50, %v7002_v6  ;;  %v2295_v48 = vadd.f32 %v8715_v34, %v7451_v44  ;;  %v1642_v39 = vadd.f32 %v1610_v52, %v7211_v61  ;;  %v8716_v24 = vld [vmem:[#allocation122_spill] sm:$0xff]  ;;  %v8720_v44 = vld [vmem:[#allocation99_spill] sm:$0xff] }
 0x11f   : > { %v1940_v62 = vmul.f32 %v5611_v25, %v8716_v24  ;;  %4928 = vmatmul.mubr.bf16.gmra.mrb[24].mxu1 %v8717_v54  ;;  %v3292_v57 = vadd.f32 %v3260_v26, %v2954_v31  ;;  %v3595_v32 = vmul.f32 %v7341_v33, %v8653_v55  ;;  %v8718_v51 = vld [vmem:[#allocation66_spill] sm:$0xff]  ;;  %v3293_v42 = vadd.f32 %v3261_v30, %v2955_v12  ;;  %v8722_v55 = vld [vmem:[#allocation21_spill] sm:$0xff] }
 0x120   : > { %5120 = vmatmul.mubr.bf16.gmra.mrb[24].mxu0 %v8718_v51  ;;  %v8719_v6 = vld [vmem:[#allocation62_spill] sm:$0xff]  ;;  %v3596_v61 = vmul.f32 %v7341_v33, %v8654_v46  ;;  %v2296_v52 = vadd.f32 %v8720_v44, %v7459_v11  ;;  %v7629_v53 = vadd.f32 %v1937_v36, %v1641_v63  ;;  %v7633_v54 = vmul.f32 %v7321_v9, %v8713_v22  ;;  %v8724_v63 = vld [vmem:[#allocation44_spill] sm:$0xff] }
 0x121   : > { %4931 = vmatprep.mubr.bf16.mxu1 %v8719_v6  ;;  %v8721_v31 = vld [vmem:[#allocation70_spill] sm:$0xff]  ;;  %v3262_v26 = vmul.f32 %v7276_v8, %v8722_v55  ;;  %v2956_v30 = vadd.f32 %v2924_v60, %v2628_v47  ;;  %v2957_v34 = vadd.f32 %v2925_v27, %v2629_v17  ;;  %v2630_v46 = vadd.f32 %v7464_v58, %v2295_v48  ;;  %v8727_v17 = vld [vmem:[#allocation25_spill] sm:$0xff] }
 0x122   : > { %5123 = vmatprep.mubr.bf16.mxu0 %v8721_v31  ;;  %v8723_v25 = vld [vmem:[#allocation22_spill] sm:$0xff]  ;;  %v2926_v11 = vmul.f32 %v7253_v50, %v8662_v4  ;;  %v7643_v36 = vadd.f32 %v1938_v5, %v1642_v39  ;;  %v1612_v51 = vmul.f32 %v5610_v3, %v8724_v63  ;;  %v1643_v6 = vadd.f32 %v1611_v45, %v7220_v23  ;;  %v8725_v5 = vld [vmem:[#allocation103_spill] sm:$0xff]  ;;  %v8726_v23 = vld [vmem:[#allocation104_spill] sm:$0xff] }
 0x123   : > { %v3263_v12 = vmul.f32 %v7276_v8, %v8723_v25  ;;  %v3627_v44 = vadd.f32 %v3595_v32, %v3292_v57  ;;  %v2988_v31 = vpack.c.bf16 %v7298_v15, %v7290_v38  ;;  %v3628_v55 = vadd.f32 %v3596_v61, %v3293_v42  ;;  %v8728_v27 = vld [vmem:[#allocation130_spill] sm:$0xff]  ;;  %v8732_v57 = vld [vmem:[#allocation68_spill] sm:$0xff] }
 0x124   : > { %v2631_v25 = vadd.f32 %v7470_v14, %v2296_v52  ;;  %v2927_v47 = vmul.f32 %v7253_v50, %v8665_v37  ;;  %v3597_v58 = vmul.f32 %v7341_v33, %v8655_v0  ;;  %v3598_v4 = vmul.f32 %v7341_v33, %v8659_v40  ;;  %v8729_v40 = vld [vmem:[#allocation15_spill] sm:$0xff] }
 0x125   : > { %v2297_v3 = vadd.f32 %v8725_v5, %v7478_v28  ;;  %v2298_v45 = vadd.f32 %v8726_v23, %v7497_v16  ;;  %v3294_v60 = vadd.f32 %v3262_v26, %v2956_v30  ;;  %v3295_v38 = vadd.f32 %v3263_v12, %v2957_v34  ;;  %v8730_v28 = vld [vmem:[#allocation5_spill] sm:$0xff]  ;;  %v8731_v16 = vld [vmem:[#allocation12_spill] sm:$0xff]  ;;  %v8736_v12 = vld [vmem:[#allocation78_spill] sm:$0xff] }
 0x126   : > { %v2958_v15 = vadd.f32 %v2926_v11, %v2630_v46  ;;  %v3264_v14 = vmul.f32 %v7276_v8, %v8727_v17  ;;  %v1644_v37 = vadd.f32 %v1612_v51, %v8728_v27  ;;  %v7663_v48 = vadd.f32 %v1939_v10, %v1643_v6  ;;  %v8734_v10 = vld [vmem:[#allocation26_spill] sm:$0xff]  ;;  %v8735_v26 = vld [vmem:[#allocation73_spill] sm:$0xff]  ;;  %v8737_v34 = vld [vmem:[#allocation79_spill] sm:$0xff] }
 0x127   : > { %v7667_v0 = vmul.f32 %v7321_v9, %v8724_v63  ;;  %4932 = vmatmul.mubr.bf16.gmra.mrb[28].mxu1 %v8729_v40  ;;  %v7671_v39 = vadd.f32 %v8730_v28, %v3627_v44  ;;  %v8733_v32 = vpack.c.bf16 %v8731_v16, %v8732_v57  ;;  %v7677_v42 = vadd.f32 %v8730_v28, %v3628_v55  ;;  %v8738_v11 = vld [vmem:[#allocation100_spill] sm:$0xff]  ;;  %v8739_v6 = vld [vmem:[#allocation101_spill] sm:$0xff]  ;;  %v8743_v40 = vld [vmem:[#allocation110_spill] sm:$0xff] }
 0x128   : > { %5124 = vmatmul.mubr.bf16.gmra.mrb[28].mxu0 %v2988_v31  ;;  %v2959_v61 = vadd.f32 %v2927_v47, %v2631_v25  ;;  %v3265_v52 = vmul.f32 %v7276_v8, %v8734_v10  ;;  %v2632_v30 = vadd.f32 %v8736_v12, %v2297_v3  ;;  %v2633_v46 = vadd.f32 %v8737_v34, %v2298_v45  ;;  %v8740_v23 = vld [vmem:[#allocation84_spill] sm:$0xff]  ;;  %v8741_v17 = vld [vmem:[#allocation49_spill] sm:$0xff]  ;;  %v8744_v57 = vld [vmem:[#allocation50_spill] sm:$0xff] }
 0x129   : > { %5191 = vmatprep.mubr.bf16.mxu1 %v8733_v32  ;;  %5143 = vmatprep.mubr.bf16.mxu0 %v8735_v26  ;;  %v2928_v51 = vmul.f32 %v7253_v50, %v8738_v11  ;;  %v2929_v44 = vmul.f32 %v7253_v50, %v8739_v6  ;;  %v3629_v31 = vadd.f32 %v3597_v58, %v3294_v60  ;;  %v8742_v3 = vld [vmem:[#allocation108_spill] sm:$0xff] }
 0x12a   : > { %v3630_v5 = vadd.f32 %v3598_v4, %v3295_v38  ;;  %v3296_v55 = vadd.f32 %v3264_v14, %v2958_v15  ;;  %v3599_v25 = vmul.f32 %v7341_v33, %v8740_v23  ;;  %v7690_v47 = vadd.f32 %v1940_v62, %v1644_v37  ;;  %v8745_v62 = vld [vmem:[#allocation85_spill] sm:$0xff]  ;;  %v8754_v6 = vld [vmem:[#allocation8_spill] sm:$0xff] }
 0x12b   : > { %v7694_v27 = vmul.f32 %v7321_v9, %v8741_v17  ;;  %v2299_v45 = vadd.f32 %v8742_v3, %v7511_v41  ;;  %v2300_v16 = vadd.f32 %v8743_v40, %v7513_v19  ;;  %v7702_v58 = vmul.f32 %v7321_v9, %v8744_v57  ;;  %v8746_v37 = vld [vmem:[#allocation29_spill] sm:$0xff]  ;;  %v8747_v41 = vld [vmem:[#allocation30_spill] sm:$0xff] }
 0x12c   : > { %v3733_v4 = vpack.c.bf16 %v7677_v42, %v7671_v39  ;;  %v3297_v60 = vadd.f32 %v3265_v52, %v2959_v61  ;;  %v3600_v38 = vmul.f32 %v7341_v33, %v8745_v62  ;;  %v2960_v15 = vadd.f32 %v2928_v51, %v2632_v30  ;;  %v8748_v39 = vld [vmem:[#allocation105_spill] sm:$0xff]  ;;  %v8749_v61 = vld [vmem:[#allocation6_spill] sm:$0xff]  ;;  %v8753_v51 = vld [vmem:[#allocation80_spill] sm:$0xff] }
 0x12d   : > { %v2961_v14 = vadd.f32 %v2929_v44, %v2633_v46  ;;  %v3266_v32 = vmul.f32 %v7276_v8, %v8746_v37  ;;  %v3267_v10 = vmul.f32 %v7276_v8, %v8747_v41  ;;  %v7713_v19 = vadd.f32 %v8730_v28, %v3629_v31  ;;  %v8750_v52 = vld [vmem:[#allocation13_spill] sm:$0xff]  ;;  %v8755_v31 = vld [vmem:[#allocation71_spill] sm:$0xff]  ;;  %v8759_v3 = vld [vmem:[#allocation86_spill] sm:$0xff] }
 0x12e   : > { %v7716_v9 = vadd.f32 %v8730_v28, %v3630_v5  ;;  %v3631_v26 = vadd.f32 %v3599_v25, %v3296_v55  ;;  %v2930_v42 = vmul.f32 %v7253_v50, %v8748_v39  ;;  %v8751_v12 = vpack.c.bf16 %v8749_v61, %v8750_v52  ;;  %v8752_v46 = vld [vmem:[#allocation109_spill] sm:$0xff]  ;;  %v8756_v5 = vld [vmem:[#allocation10_spill] sm:$0xff]  ;;  %v8757_v55 = vld [vmem:[#allocation7_spill] sm:$0xff] }
 0x12f   : > { %v2634_v30 = vadd.f32 %v7521_v35, %v2299_v45  ;;  %v2635_v34 = vadd.f32 %v7532_v49, %v2300_v16  ;;  %v2931_v11 = vmul.f32 %v7253_v50, %v8752_v46  ;;  %v2301_v44 = vadd.f32 %v8754_v6, %v8753_v51  ;;  %v8760_v35 = vld [vmem:[#allocation115_spill] sm:$0xff]  ;;  %v8761_v49 = vld [vmem:[#allocation76_spill] sm:$0xff] }
 0x130   : > { %5192 = vmatmul.mubr.bf16.vlgmr.msra.gmra.mrb[32].mxu1 %v8751_v12  ;;  %5144 = vmatmul.mubr.bf16.vlgmr.msra.gmra.mrb[0].mxu0 %v8755_v31  ;;  %v8758_v23 = vpack.c.bf16 %v8756_v5, %v8757_v55  ;;  %v3632_v25 = vadd.f32 %v3600_v38, %v3297_v60  ;;  %v3601_v40 = vmul.f32 %v7341_v33, %v8759_v3  ;;  %v8762_v37 = vld [vmem:[#allocation87_spill] sm:$0xff]  ;;  %v8763_v39 = vld [vmem:[#allocation120_spill] sm:$0xff]  ;;  %v8769_v5 = vld [vmem:[#allocation113_spill] sm:$0xff] }
 0x131   : > { %v2302_v45 = vadd.f32 %v8760_v35, %v7542_v7  ;;  %5147 = vmatprep.mubr.bf16.mxu0 %v8761_v49  ;;  %v3298_v16 = vadd.f32 %v3266_v32, %v2960_v15  ;;  %v3299_v62 = vadd.f32 %v3267_v10, %v2961_v14  ;;  %v3602_v41 = vmul.f32 %v7341_v33, %v8762_v37  ;;  %v8764_v60 = vld [vmem:[#allocation39_spill] sm:$0xff]  ;;  %v8765_v12 = vld [vmem:[#allocation40_spill] sm:$0xff]  ;;  %v8766_v7 = vld [vmem:[#allocation121_spill] sm:$0xff] }
 0x132   : > { %5195 = vmatprep.mubr.bf16.mxu1 %v8758_v23  ;;  %v2303_v61 = vadd.f32 %v8763_v39, %v7544_v1  ;;  %v3734_v52 = vpack.c.bf16 %v7716_v9, %v7713_v19  ;;  %v3268_v38 = vmul.f32 %v7276_v8, %v8764_v60  ;;  %v3269_v46 = vmul.f32 %v7276_v8, %v8765_v12  ;;  %v8767_v32 = vld [vmem:[#allocation35_spill] sm:$0xff]  ;;  %v8768_v6 = vld [vmem:[#allocation112_spill] sm:$0xff]  ;;  %v7780_v60 = vld [vmem:[%s8124_s4] ss:$0 sm:$0xff] }
 0x133   : > { %v2304_v51 = vadd.f32 %v8766_v7, %v7556_v18  ;;  %v2962_v15 = vadd.f32 %v2930_v42, %v2634_v30  ;;  %v2963_v14 = vadd.f32 %v2931_v11, %v2635_v34  ;;  %v2636_v10 = vadd.f32 %v8767_v32, %v2301_v44  ;;  %v8770_v30 = vld [vmem:[#allocation24_spill] sm:$0xff]  ;;  %v8771_v11 = vld [vmem:[#allocation81_spill] sm:$0xff]  ;;  %v8774_v35 = vld [vmem:[#allocation11_spill] sm:$0xff] }
 0x134   : > { %v2932_v31 = vmul.f32 %v7253_v50, %v8768_v6  ;;  %v3709_v1 = vadd.f32 %v8730_v28, %v3631_v26  ;;  %v3710_v19 = vadd.f32 %v8730_v28, %v3632_v25  ;;  %v2637_v9 = vadd.f32 %v7540_v13, %v2302_v45  ;;  %v8772_v44 = vld [vmem:[#allocation116_spill] sm:$0xff]  ;;  %v8773_v25 = vld [vmem:[#allocation89_spill] sm:$0xff]  ;;  %v8780_v7 = vld [vmem:[#allocation51_spill] sm:$0xff] }
 0x135   : > { %v2933_v55 = vmul.f32 %v7253_v50, %v8769_v5  ;;  %v3633_v23 = vadd.f32 %v3601_v40, %v3298_v16  ;;  %v3634_v3 = vadd.f32 %v3602_v41, %v3299_v62  ;;  %v2638_v18 = vadd.f32 %v7565_v21, %v2303_v61  ;;  %v8776_v16 = vld [vmem:[#allocation42_spill] sm:$0xff]  ;;  %v8777_v62 = vld [vmem:[#allocation77_spill] sm:$0xff]  ;;  %v8778_v41 = vld [vmem:[#allocation43_spill] sm:$0xff] }
 0x136   : > { %v2934_v42 = vmul.f32 %v7253_v50, %v8696_v2  ;;  %v3603_v34 = vmul.f32 %v7341_v33, %v8770_v30  ;;  %v3604_v26 = vmul.f32 %v7341_v33, %v8677_v59  ;;  %v2639_v28 = vadd.f32 %v8771_v11, %v2304_v51  ;;  %v8779_v61 = vld [vmem:[#allocation82_spill] sm:$0xff]  ;;  %v8783_v6 = vld [vmem:[#allocation128_spill] sm:$0xff] }
 0x137   : > { %v2935_v13 = vmul.f32 %v7253_v50, %v8772_v44  ;;  %v8775_v40 = vpack.c.bf16 %v8773_v25, %v8774_v35  ;;  %v3300_v45 = vadd.f32 %v3268_v38, %v2962_v15  ;;  %v3301_v21 = vadd.f32 %v3269_v46, %v2963_v14  ;;  %v8781_v15 = vld [vmem:[#allocation52_spill] sm:$0xff]  ;;  %v8782_v32 = vld [vmem:[#allocation126_spill] sm:$0xff]  ;;  %v8789_v25 = vld [vmem:[#allocation45_spill] sm:$0xff] }
 0x138   : > { %v2964_v49 = vadd.f32 %v2932_v31, %v2636_v10  ;;  %v3270_v2 = vmul.f32 %v7276_v8, %v8776_v16  ;;  %5148 = vmatmul.mubr.bf16.gmra.mrb[4].mxu0 %v8777_v62  ;;  %v3735_v37 = vpack.c.bf16 %v3710_v19, %v3709_v1  ;;  %v2965_v59 = vadd.f32 %v2933_v55, %v2637_v9  ;;  %v8784_v5 = vld [vmem:[#allocation28_spill] sm:$0xff]  ;;  %v8787_v11 = vld [vmem:[#allocation14_spill] sm:$0xff]  ;;  %v8792_v16 = vld [vmem:[#allocation117_spill] sm:$0xff] }
 0x139   : > { %5196 = vmatmul.mubr.bf16.gmra.mrb[36].mxu1 %v8775_v40  ;;  %v3271_v39 = vmul.f32 %v7276_v8, %v8778_v41  ;;  %5151 = vmatprep.mubr.bf16.mxu0 %v8779_v61  ;;  %v3711_v38 = vadd.f32 %v7780_v60, %v3633_v23  ;;  %v3712_v12 = vadd.f32 %v7780_v60, %v3634_v3  ;;  %v8785_v3 = vld [vmem:[#allocation31_spill] sm:$0xff]  ;;  %v8790_v40 = vld [vmem:[#allocation58_spill] sm:$0xff] }
 0x13a   : > { %5199 = vmatprep.mubr.bf16.mxu1 %v3733_v4  ;;  %v2966_v46 = vadd.f32 %v2934_v42, %v2638_v18  ;;  %v3272_v4 = vmul.f32 %v7276_v8, %v8780_v7  ;;  %v2967_v51 = vadd.f32 %v2935_v13, %v2639_v28  ;;  %v3273_v14 = vmul.f32 %v7276_v8, %v8781_v15  ;;  %v8786_v42 = vld [vmem:[#allocation9_spill] sm:$0xff] }
 0x13b   : > { %v2305_v10 = vadd.f32 %v8782_v32, %v7576_v56  ;;  %v2306_v31 = vadd.f32 %v8783_v6, %v7584_v29  ;;  %v3635_v1 = vadd.f32 %v3603_v34, %v3300_v45  ;;  %v3636_v19 = vadd.f32 %v3604_v26, %v3301_v21  ;;  %v8788_v26 = vld [vmem:[#allocation125_spill] sm:$0xff]  ;;  %v8791_v21 = vld [vmem:[#allocation127_spill] sm:$0xff]  ;;  %v8796_v32 = vld [vmem:[#allocation54_spill] sm:$0xff] }
 0x13c   : > { %v3302_v9 = vadd.f32 %v3270_v2, %v2964_v49  ;;  %v3605_v55 = vmul.f32 %v7341_v33, %v8784_v5  ;;  %v3303_v23 = vadd.f32 %v3271_v39, %v2965_v59  ;;  %v3606_v18 = vmul.f32 %v7341_v33, %v8785_v3  ;;  %v8793_v2 = vld [vmem:[#allocation83_spill] sm:$0xff]  ;;  %v8794_v39 = vld [vmem:[#allocation88_spill] sm:$0xff]  ;;  %v8795_v7 = vld [vmem:[#allocation53_spill] sm:$0xff] }
 0x13d   : > { %v2307_v30 = vadd.f32 %v8786_v42, %v7629_v53  ;;  %v2308_v28 = vadd.f32 %v8787_v11, %v7643_v36  ;;  %v3304_v56 = vadd.f32 %v3272_v4, %v2966_v46  ;;  %v3607_v29 = vmul.f32 %v7341_v33, %v8703_v20  ;;  %v8798_v6 = vld [vmem:[#allocation132_spill] sm:$0xff] }
 0x13e   : > { %v3608_v34 = vmul.f32 %v7341_v33, %v8708_v43  ;;  %v2936_v44 = vmul.f32 %v7253_v50, %v8788_v26  ;;  %v3305_v13 = vadd.f32 %v3273_v14, %v2967_v51  ;;  %v2640_v35 = vadd.f32 %v8789_v25, %v2305_v10  ;;  %v8797_v10 = vld [vmem:[#allocation131_spill] sm:$0xff]  ;;  %v8803_v26 = vld [vmem:[#allocation90_spill] sm:$0xff] }
 0x13f   : > { %v2641_v45 = vadd.f32 %v8790_v40, %v2306_v31  ;;  %v2937_v53 = vmul.f32 %v7253_v50, %v8791_v21  ;;  %v3713_v36 = vadd.f32 %v7780_v60, %v3635_v1  ;;  %v3714_v49 = vadd.f32 %v7780_v60, %v3636_v19  ;;  %v8799_v1 = vld [vmem:[#allocation60_spill] sm:$0xff] }
 0x140   : > { %v3637_v20 = vadd.f32 %v3605_v55, %v3302_v9  ;;  %v2938_v43 = vmul.f32 %v7253_v50, %v8792_v16  ;;  %5152 = vmatmul.mubr.bf16.gmra.mrb[8].mxu0 %v8793_v2  ;;  %v2642_v62 = vadd.f32 %v7633_v54, %v2307_v30  ;;  %v2643_v59 = vadd.f32 %v7667_v0, %v2308_v28  ;;  %v8800_v9 = vld [vmem:[#allocation61_spill] sm:$0xff] }
 0x141   : > { %5200 = vmatmul.mubr.bf16.gmra.mrb[40].mxu1 %v3734_v52  ;;  %v2939_v41 = vmul.f32 %v7253_v50, %v8716_v24  ;;  %5155 = vmatprep.mubr.bf16.mxu0 %v8794_v39  ;;  %v3736_v52 = vpack.c.bf16 %v3712_v12, %v3711_v38  ;;  %v3638_v61 = vadd.f32 %v3606_v18, %v3303_v23 }
 0x142   : > { %5203 = vmatprep.mubr.bf16.mxu1 %v3735_v37  ;;  %v3639_v46 = vadd.f32 %v3607_v29, %v3304_v56  ;;  %v3274_v4 = vmul.f32 %v7276_v8, %v8795_v7  ;;  %v3640_v51 = vadd.f32 %v3608_v34, %v3305_v13  ;;  %v2968_v15 = vadd.f32 %v2936_v44, %v2640_v35  ;;  %v8801_v56 = vld [vmem:[#allocation129_spill] sm:$0xff] }
 0x143   : > { %v2969_v14 = vadd.f32 %v2937_v53, %v2641_v45  ;;  %v3275_v37 = vmul.f32 %v7276_v8, %v8796_v32  ;;  %v3737_v54 = vpack.c.bf16 %v3714_v49, %v3713_v36  ;;  %v3715_v0 = vadd.f32 %v7780_v60, %v3637_v20  ;;  %v8805_v45 = vld [vmem:[#allocation63_spill] sm:$0xff]  ;;  %v8806_v53 = vld [vmem:[#allocation64_spill] sm:$0xff] }
 0x144   : > { %v2309_v24 = vadd.f32 %v8797_v10, %v7663_v48  ;;  %v2310_v38 = vadd.f32 %v8798_v6, %v7690_v47  ;;  %v2970_v12 = vadd.f32 %v2938_v43, %v2642_v62  ;;  %v2971_v31 = vadd.f32 %v2939_v41, %v2643_v59  ;;  %v8807_v62 = vld [vmem:[#allocation55_spill] sm:$0xff]  ;;  %v8808_v41 = vld [vmem:[#allocation2_spill] sm:$0xff]  ;;  %v8814_v10 = vld [vmem:[#allocation33_spill] sm:$0xff] }
 0x145   : > { %v3276_v19 = vmul.f32 %v7276_v8, %v8799_v1  ;;  %v3277_v5 = vmul.f32 %v7276_v8, %v8800_v9  ;;  %v3716_v55 = vadd.f32 %v7780_v60, %v3638_v61  ;;  %v3717_v23 = vadd.f32 %v7780_v60, %v3639_v46  ;;  %v8810_v46 = vld [vmem:[#allocation95_spill] sm:$0xff] }
 0x146   : > { %v3609_v3 = vmul.f32 %v7341_v33, %v8713_v22  ;;  %v3610_v48 = vmul.f32 %v7341_v33, %v8724_v63  ;;  %v3718_v47 = vadd.f32 %v7780_v60, %v3640_v51  ;;  %v3306_v18 = vadd.f32 %v3274_v4, %v2968_v15  ;;  %v8802_v22 = vld [vmem:[#allocation133_spill] sm:$0xff] }
 0x147   : > { %v3307_v42 = vadd.f32 %v3275_v37, %v2969_v14  ;;  %v3611_v30 = vmul.f32 %v7341_v33, %v8741_v17  ;;  %v2644_v11 = vadd.f32 %v7694_v27, %v2309_v24  ;;  %v2645_v28 = vadd.f32 %v7702_v58, %v2310_v38  ;;  %v8804_v17 = vld [vmem:[#allocation34_spill] sm:$0xff]  ;;  %v8811_v37 = vld [vmem:[#allocation48_spill] sm:$0xff]  ;;  %v8815_v24 = vld [vmem:[#allocation23_spill] sm:$0xff] }
 0x148   : > { %v2940_v29 = vmul.f32 %v7253_v50, %v8801_v56  ;;  %v2941_v34 = vmul.f32 %v8802_v22, %v7253_v50  ;;  %5156 = vmatmul.mubr.bf16.gmra.mrb[12].mxu0 %v8803_v26  ;;  %v3308_v63 = vadd.f32 %v3276_v19, %v2970_v12  ;;  %v3309_v44 = vadd.f32 %v3277_v5, %v2971_v31  ;;  %v8817_v38 = vld [vmem:[#allocation4_spill] sm:$0xff]  ;;  %v8818_v12 = vld [vmem:[#allocation67_spill] sm:$0xff]  ;;  %v8819_v31 = vld [vmem:[#allocation17_spill] sm:$0xff] }
 0x149   : > { %5204 = vmatmul.mubr.bf16.gmra.mrb[44].mxu1 %v3736_v52  ;;  %v3612_v13 = vmul.f32 %v7341_v33, %v8744_v57  ;;  %5159 = vmatprep.mubr.bf16.mxu0 %v8804_v17  ;;  %v3738_v25 = vpack.c.bf16 %v3716_v55, %v3715_v0  ;;  %v3641_v27 = vadd.f32 %v3609_v3, %v3306_v18  ;;  %v8809_v52 = vld [vmem:[#allocation92_spill] sm:$0xff]  ;;  %v8813_v0 = vld [vmem:[#allocation98_spill] sm:$0xff]  ;;  %v8820_v19 = vld [vmem:[#allocation69_spill] sm:$0xff] }
 0x14a   : > { %5207 = vmatprep.mubr.bf16.mxu1 %v3737_v54  ;;  %v3642_v35 = vadd.f32 %v3610_v48, %v3307_v42  ;;  %v2972_v58 = vadd.f32 %v2940_v29, %v2644_v11  ;;  %v2973_v40 = vadd.f32 %v2941_v34, %v2645_v28  ;;  %v3278_v21 = vmul.f32 %v7276_v8, %v8805_v45 }
 0x14b   : > { %v3279_v50 = vmul.f32 %v7276_v8, %v8806_v53  ;;  %v3739_v36 = vpack.c.bf16 %v3718_v47, %v3717_v23  ;;  %v3643_v49 = vadd.f32 %v3611_v30, %v3308_v63  ;;  %v3644_v20 = vadd.f32 %v3612_v13, %v3309_v44 }
 0x14c   : > { %v3719_v16 = vadd.f32 %v7780_v60, %v3641_v27  ;;  %v3720_v57 = vadd.f32 %v7780_v60, %v3642_v35  ;;  %v3310_v43 = vadd.f32 %v3278_v21, %v2972_v58  ;;  %v3613_v59 = vmul.f32 %v7341_v33, %v8807_v62 }
 0x14d   : > { %v3311_v2 = vadd.f32 %v3279_v50, %v2973_v40  ;;  %v3614_v39 = vmul.f32 %v7341_v33, %v8808_v41  ;;  %v3721_v8 = vadd.f32 %v7780_v60, %v3643_v49  ;;  %v3722_v61 = vadd.f32 %v7780_v60, %v3644_v20  ;;  %v8812_v33 = vld [vmem:[#allocation96_spill] sm:$0xff] }
 0x14e   : > { %v3740_v7 = vpack.c.bf16 %v3720_v57, %v3719_v16  ;;  %v3645_v4 = vadd.f32 %v3613_v59, %v3310_v43  ;;  %v8816_v6 = vpack.c.bf16 %v8814_v10, %v8815_v24  ;;  %v3323_v1 = vpack.c.bf16 %v8819_v31, %v8818_v12  ;;  %v7939_v16 = vld [vmem:[%s8126_s6] ss:$0 sm:$0xff] }
 0x14f   : > { %v3646_v51 = vadd.f32 %v3614_v39, %v3311_v2  ;;  %v3741_v15 = vpack.c.bf16 %v3722_v61, %v3721_v8  ;;  %v7950_v2 = vld [vmem:[%s8122_s2] ss:$0 sm:$0xff] }
 0x150   : > { %5160 = vmatmul.mubr.bf16.gmra.mrb[16].mxu0 %v8809_v52  ;;  %v3723_v14 = vadd.f32 %v7780_v60, %v3645_v4 }
 0x151   : > { %5208 = vmatmul.mubr.bf16.gmra.mrb[48].mxu1 %v3738_v25  ;;  %5163 = vmatprep.mubr.bf16.mxu0 %v8810_v46  ;;  %v3724_v32 = vadd.f32 %v7780_v60, %v3646_v51  ;;  %v8821_v60 = vld [vmem:[#allocation20_spill] sm:$0xff] }
 0x152   : > { %5211 = vmatprep.mubr.bf16.mxu1 %v3739_v36  ;;  %v8822_v9 = vpack.c.bf16 %v8820_v19, %v8821_v60 }
 0x153   : > { %v3742_v54 = vpack.c.bf16 %v3724_v32, %v3723_v14 }
 0x158   : > { %5164 = vmatmul.mubr.bf16.gmra.mrb[20].mxu0 %v8811_v37 }
 0x159   : > { %5212 = vmatmul.mubr.bf16.gmra.mrb[52].mxu1 %v3740_v7  ;;  %5167 = vmatprep.mubr.bf16.mxu0 %v8812_v33 }
 0x15a   : > { %5215 = vmatprep.mubr.bf16.mxu1 %v3741_v15 }
 0x160   : > { %5168 = vmatmul.mubr.bf16.gmra.mrb[24].mxu0 %v8813_v0 }
 0x161   : > { %5216 = vmatmul.mubr.bf16.gmra.mrb[56].mxu1 %v3742_v54  ;;  %5171 = vmatprep.mubr.bf16.mxu0 %v8817_v38 }
 0x162   : > { %5219 = vmatprep.mubr.bf16.mxu1 %v8816_v6 }
 0x168   : > { %5172 = vmatmul.mubr.bf16.gmra.mrb[28].mxu0 %v3323_v1 }
 0x169   : > { %5220 = vmatmul.mubr.bf16.gmra.mrb[60].mxu1 %v8822_v9 }
 0x1c1   : > { %v4905_v5 = vpop.f32.mrb[0].mxu1 }
 0x1c2   : > { %v1749_v55 = vpop.f32.mrb[1].mxu1 }
 0x1c3   : > { %v4906_v23 = vpop.f32.mrb[2].mxu1 }
 0x1c4   : > { %v1752_v3 = vpop.f32.mrb[3].mxu1 }
 0x1c9   : > { %v7880_v48 = vpop.f32.mrb[4].mxu1 }
 0x1ca   : > { %v7882_v47 = vpop.f32.mrb[5].mxu1 }
 0x1cb   : > { %v7884_v18 = vpop.f32.mrb[6].mxu1 }
 0x1cc   : > { %v7886_v42 = vpop.f32.mrb[7].mxu1 }
 0x1d1   : > { %v7888_v30 = vpop.f32.mrb[8].mxu1 }
 0x1d2   : > { %v7890_v11 = vpop.f32.mrb[9].mxu1 }
 0x1d3   : > { %v7892_v28 = vpop.f32.mrb[10].mxu1 }
 0x1d4   : > { %v7894_v56 = vpop.f32.mrb[11].mxu1 }
 0x1d9   : > { %v7896_v29 = vpop.f32.mrb[12].mxu1 }
 0x1da   : > { %v7898_v22 = vpop.f32.mrb[13].mxu1 }
 0x1db   : > { %v7900_v34 = vpop.f32.mrb[14].mxu1 }
 0x1dc   : > { %v7902_v26 = vpop.f32.mrb[15].mxu1 }
 0x1e2   : > { %v7904_v63 = vpop.f32.mrb[16].mxu1 }
 0x1e3   : > { %v7906_v44 = vpop.f32.mrb[17].mxu1 }
 0x1e4   : > { %v7908_v13 = vpop.f32.mrb[18].mxu1 }
 0x1e5   : > { %v7910_v17 = vpop.f32.mrb[19].mxu1 }
 0x1ea   : > { %v7912_v25 = vpop.f32.mrb[20].mxu1 }
 0x1eb   : > { %v7914_v27 = vpop.f32.mrb[21].mxu1 }
 0x1ec   : > { %v7916_v35 = vpop.f32.mrb[22].mxu1 }
 0x1ed   : > { %v7918_v58 = vpop.f32.mrb[23].mxu1 }
 0x1f2   : > { %v7920_v40 = vpop.f32.mrb[24].mxu1 }
 0x1f3   : > { %v7922_v45 = vpop.f32.mrb[25].mxu1 }
 0x1f4   : > { %v7924_v21 = vpop.f32.mrb[26].mxu1 }
 0x1f5   : > { %v7926_v53 = vpop.f32.mrb[27].mxu1 }
 0x1fa   : > { %v7928_v50 = vpop.f32.mrb[28].mxu1 }
 0x1fb   : > { %v7930_v36 = vpop.f32.mrb[29].mxu1 }
 0x1fc   : > { %v7932_v49 = vpop.f32.mrb[30].mxu1 }
 0x1fd   : > { %v7934_v20 = vpop.f32.mrb[31].mxu1 }
 0x203   : > { %v5193_v57 = vpop.f32.mrb[32].mxu1  ;;  %v5145_v43 = vpop.f32.mrb[0].mxu0 }
 0x204   : > { %v3859_v62 = vadd.f32 %v5193_v57, %v7939_v16  ;;  %v3850_v59 = vpop.f32.mrb[33].mxu1  ;;  %v5223_v41 = vadd.f32 %v5145_v43, %v4905_v5  ;;  %v3423_v39 = vpop.f32.mrb[1].mxu0 }
 0x205   : > { %v3851_v52 = vadd.f32 %v7939_v16, %v3850_v59  ;;  %v5194_v8 = vpop.f32.mrb[34].mxu1  ;;  %v5224_v61 = vadd.f32 %v3423_v39, %v1749_v55  ;;  %v5146_v46 = vpop.f32.mrb[2].mxu0 }
 0x206   : > { %4011 = vst [vmem:[%s7945_s24 + $0x10] sm:$0xff] %v3859_v62  ;;  %v3862_v7 = vadd.f32 %v5194_v8, %v7939_v16  ;;  %v3853_v4 = vpop.f32.mrb[35].mxu1  ;;  %v3660_v51 = vadd.f32 %v5223_v41, %v7950_v2  ;;  %v5225_v15 = vadd.f32 %v5146_v46, %v4906_v23  ;;  %v3426_v14 = vpop.f32.mrb[3].mxu0 }
 0x207   : > { %4009 = vst [vmem:[%s7945_s24] sm:$0xff] %v3851_v52  ;;  %v3854_v32 = vadd.f32 %v7939_v16, %v3853_v4  ;;  %v3658_v37 = vadd.f32 %v5224_v61, %v7950_v2  ;;  %v5226_v33 = vadd.f32 %v3426_v14, %v1752_v3 }
 0x208   : > { %4012 = vst [vmem:[%s7945_s24 + $0x18] sm:$0xff] %v3862_v7  ;;  %3979 = vst [vmem:[%s7957_s28 + $0x10] sm:$0xff] %v3660_v51  ;;  %v3661_v54 = vadd.f32 %v5225_v15, %v7950_v2  ;;  %v4081_v19 = vmul.f32 %v3660_v51, %v3660_v51 }
 0x209   : > { %4010 = vst [vmem:[%s7945_s24 + $0x8] sm:$0xff] %v3854_v32  ;;  %3977 = vst [vmem:[%s7957_s28] sm:$0xff] %v3658_v37  ;;  %v3659_v0 = vadd.f32 %v5226_v33, %v7950_v2  ;;  %v4079_v24 = vmul.f32 %v3658_v37, %v3658_v37 }
 0x20a   : > { %3980 = vst [vmem:[%s7957_s28 + $0x18] sm:$0xff] %v3661_v54  ;;  %v4082_v41 = vmul.f32 %v3661_v54, %v3661_v54 }
 0x20b   : > { %3978 = vst [vmem:[%s7957_s28 + $0x8] sm:$0xff] %v3659_v0  ;;  %v4041_v6 = vadd.f32 %v3659_v0, %v3658_v37  ;;  %v4080_v38 = vmul.f32 %v3659_v0, %v3659_v0  ;;  %v5149_v12 = vpop.f32.mrb[4].mxu0 }
 0x20c   : > { %v5197_v10 = vpop.f32.mrb[36].mxu1  ;;  %v5227_v60 = vadd.f32 %v5149_v12, %v7880_v48  ;;  %v3439_v9 = vpop.f32.mrb[5].mxu0 }
 0x20d   : > { %v3875_v31 = vadd.f32 %v5197_v10, %v7939_v16  ;;  %v3866_v1 = vpop.f32.mrb[37].mxu1  ;;  %v4042_v23 = vadd.f32 %v4041_v6, %v3660_v51  ;;  %v4111_v3 = vadd.f32 %v4080_v38, %v4079_v24  ;;  %v5228_v57 = vadd.f32 %v3439_v9, %v7882_v47  ;;  %v5150_v43 = vpop.f32.mrb[6].mxu0 }
 0x20e   : > { %v3867_v5 = vadd.f32 %v7939_v16, %v3866_v1  ;;  %v5198_v55 = vpop.f32.mrb[38].mxu1  ;;  %v3664_v48 = vadd.f32 %v5227_v60, %v7950_v2  ;;  %v5229_v39 = vadd.f32 %v5150_v43, %v7884_v18  ;;  %v3442_v52 = vpop.f32.mrb[7].mxu0 }
 0x20f   : > { %4015 = vst [vmem:[%s7945_s24 + $0x30] sm:$0xff] %v3875_v31  ;;  %v3878_v62 = vadd.f32 %v5198_v55, %v7939_v16  ;;  %v3869_v59 = vpop.f32.mrb[39].mxu1  ;;  %v4112_v61 = vadd.f32 %v4111_v3, %v4081_v19  ;;  %v3662_v47 = vadd.f32 %v5228_v57, %v7950_v2  ;;  %v4043_v46 = vadd.f32 %v4042_v23, %v3661_v54 }
 0x210   : > { %4013 = vst [vmem:[%s7945_s24 + $0x20] sm:$0xff] %v3867_v5  ;;  %v3870_v8 = vadd.f32 %v7939_v16, %v3869_v59  ;;  %v5230_v7 = vadd.f32 %v3442_v52, %v7886_v42  ;;  %3983 = vst [vmem:[%s7957_s28 + $0x30] sm:$0xff] %v3664_v48  ;;  %v3665_v4 = vadd.f32 %v5229_v39, %v7950_v2 }
 0x211   : > { %4016 = vst [vmem:[%s7945_s24 + $0x38] sm:$0xff] %v3878_v62  ;;  %3981 = vst [vmem:[%s7957_s28 + $0x20] sm:$0xff] %v3662_v47  ;;  %v4044_v51 = vadd.f32 %v4043_v46, %v3662_v47  ;;  %v4083_v18 = vmul.f32 %v3662_v47, %v3662_v47  ;;  %v4113_v15 = vadd.f32 %v4112_v61, %v4082_v41 }
 0x212   : > { %4014 = vst [vmem:[%s7945_s24 + $0x28] sm:$0xff] %v3870_v8  ;;  %v3663_v14 = vadd.f32 %v5230_v7, %v7950_v2  ;;  %3984 = vst [vmem:[%s7957_s28 + $0x38] sm:$0xff] %v3665_v4  ;;  %v4085_v24 = vmul.f32 %v3664_v48, %v3664_v48  ;;  %v4086_v23 = vmul.f32 %v3665_v4, %v3665_v4 }
 0x213   : > { %v4114_v37 = vadd.f32 %v4113_v15, %v4083_v18  ;;  %v5153_v0 = vpop.f32.mrb[8].mxu0 }
 0x214   : > { %v5201_v32 = vpop.f32.mrb[40].mxu1  ;;  %3982 = vst [vmem:[%s7957_s28 + $0x28] sm:$0xff] %v3663_v14  ;;  %v4045_v33 = vadd.f32 %v4044_v51, %v3663_v14  ;;  %v4084_v54 = vmul.f32 %v3663_v14, %v3663_v14  ;;  %v5231_v6 = vadd.f32 %v5153_v0, %v7888_v30  ;;  %v3455_v38 = vpop.f32.mrb[9].mxu0 }
 0x215   : > { %v3891_v42 = vadd.f32 %v5201_v32, %v7939_v16  ;;  %v3882_v10 = vpop.f32.mrb[41].mxu1  ;;  %v5232_v60 = vadd.f32 %v3455_v38, %v7890_v11  ;;  %v5154_v9 = vpop.f32.mrb[10].mxu0 }
 0x216   : > { %v3883_v12 = vadd.f32 %v7939_v16, %v3882_v10  ;;  %v5202_v31 = vpop.f32.mrb[42].mxu1  ;;  %v4046_v1 = vadd.f32 %v4045_v33, %v3664_v48  ;;  %v4115_v19 = vadd.f32 %v4114_v37, %v4084_v54  ;;  %v3668_v30 = vadd.f32 %v5231_v6, %v7950_v2  ;;  %v3458_v57 = vpop.f32.mrb[11].mxu0 }
 0x217   : > { %4019 = vst [vmem:[%s7945_s24 + $0x50] sm:$0xff] %v3891_v42  ;;  %v3894_v5 = vadd.f32 %v5202_v31, %v7939_v16  ;;  %v3885_v55 = vpop.f32.mrb[43].mxu1  ;;  %v5233_v3 = vadd.f32 %v5154_v9, %v7892_v28  ;;  %v3666_v11 = vadd.f32 %v5232_v60, %v7950_v2  ;;  %v5234_v41 = vadd.f32 %v3458_v57, %v7894_v56 }
 0x218   : > { %4017 = vst [vmem:[%s7945_s24 + $0x40] sm:$0xff] %v3883_v12  ;;  %v3886_v43 = vadd.f32 %v7939_v16, %v3885_v55  ;;  %v4116_v62 = vadd.f32 %v4115_v19, %v4085_v24  ;;  %v4047_v59 = vadd.f32 %v4046_v1, %v3665_v4  ;;  %3987 = vst [vmem:[%s7957_s28 + $0x50] sm:$0xff] %v3668_v30 }
 0x219   : > { %4020 = vst [vmem:[%s7945_s24 + $0x58] sm:$0xff] %v3894_v5  ;;  %v3669_v48 = vadd.f32 %v5233_v3, %v7950_v2  ;;  %3985 = vst [vmem:[%s7957_s28 + $0x40] sm:$0xff] %v3666_v11  ;;  %v4087_v28 = vmul.f32 %v3666_v11, %v3666_v11  ;;  %v3667_v8 = vadd.f32 %v5234_v41, %v7950_v2 }
 0x21a   : > { %4018 = vst [vmem:[%s7945_s24 + $0x48] sm:$0xff] %v3886_v43  ;;  %v4048_v39 = vadd.f32 %v4047_v59, %v3666_v11  ;;  %v4117_v52 = vadd.f32 %v4116_v62, %v4086_v23  ;;  %v4089_v18 = vmul.f32 %v3668_v30, %v3668_v30 }
 0x21b   : > { %3988 = vst [vmem:[%s7957_s28 + $0x58] sm:$0xff] %v3669_v48  ;;  %3986 = vst [vmem:[%s7957_s28 + $0x48] sm:$0xff] %v3667_v8  ;;  %v4088_v7 = vmul.f32 %v3667_v8, %v3667_v8  ;;  %v5157_v4 = vpop.f32.mrb[12].mxu0  ;;  %v4090_v6 = vmul.f32 %v3669_v48, %v3669_v48 }
 0x21c   : > { %v5205_v61 = vpop.f32.mrb[44].mxu1  ;;  %v4118_v47 = vadd.f32 %v4117_v52, %v4087_v28  ;;  %v4049_v46 = vadd.f32 %v4048_v39, %v3667_v8  ;;  %v5235_v15 = vadd.f32 %v5157_v4, %v7896_v29  ;;  %v3471_v14 = vpop.f32.mrb[13].mxu0 }
 0x21d   : > { %v3907_v56 = vadd.f32 %v5205_v61, %v7939_v16  ;;  %v3898_v51 = vpop.f32.mrb[45].mxu1  ;;  %v5236_v0 = vadd.f32 %v3471_v14, %v7898_v22  ;;  %v5158_v42 = vpop.f32.mrb[14].mxu0 }
 0x21e   : > { %v3899_v32 = vadd.f32 %v7939_v16, %v3898_v51  ;;  %v5206_v37 = vpop.f32.mrb[46].mxu1  ;;  %v4050_v33 = vadd.f32 %v4049_v46, %v3668_v30  ;;  %v4119_v54 = vadd.f32 %v4118_v47, %v4088_v7  ;;  %v3672_v29 = vadd.f32 %v5235_v15, %v7950_v2  ;;  %v3474_v12 = vpop.f32.mrb[15].mxu0 }
 0x21f   : > { %4023 = vst [vmem:[%s7945_s24 + $0x70] sm:$0xff] %v3907_v56  ;;  %v3910_v10 = vadd.f32 %v5206_v37, %v7939_v16  ;;  %v3901_v24 = vpop.f32.mrb[47].mxu1  ;;  %v5237_v38 = vadd.f32 %v5158_v42, %v7900_v34  ;;  %v3670_v22 = vadd.f32 %v5236_v0, %v7950_v2  ;;  %v5238_v60 = vadd.f32 %v3474_v12, %v7902_v26 }
 0x220   : > { %4021 = vst [vmem:[%s7945_s24 + $0x60] sm:$0xff] %v3899_v32  ;;  %v3902_v31 = vadd.f32 %v7939_v16, %v3901_v24  ;;  %v4120_v1 = vadd.f32 %v4119_v54, %v4089_v18  ;;  %v4051_v19 = vadd.f32 %v4050_v33, %v3669_v48  ;;  %3991 = vst [vmem:[%s7957_s28 + $0x70] sm:$0xff] %v3672_v29 }
 0x221   : > { %4024 = vst [vmem:[%s7945_s24 + $0x78] sm:$0xff] %v3910_v10  ;;  %v3673_v9 = vadd.f32 %v5237_v38, %v7950_v2  ;;  %3989 = vst [vmem:[%s7957_s28 + $0x60] sm:$0xff] %v3670_v22  ;;  %v4091_v34 = vmul.f32 %v3670_v22, %v3670_v22  ;;  %v3671_v23 = vadd.f32 %v5238_v60, %v7950_v2 }
 0x222   : > { %4022 = vst [vmem:[%s7945_s24 + $0x68] sm:$0xff] %v3902_v31  ;;  %v4052_v5 = vadd.f32 %v4051_v19, %v3670_v22  ;;  %v4121_v55 = vadd.f32 %v4120_v1, %v4090_v6  ;;  %v4093_v59 = vmul.f32 %v3672_v29, %v3672_v29 }
 0x223   : > { %3992 = vst [vmem:[%s7957_s28 + $0x78] sm:$0xff] %v3673_v9  ;;  %3990 = vst [vmem:[%s7957_s28 + $0x68] sm:$0xff] %v3671_v23  ;;  %v4092_v43 = vmul.f32 %v3671_v23, %v3671_v23  ;;  %v5161_v62 = vpop.f32.mrb[16].mxu0  ;;  %v4094_v4 = vmul.f32 %v3673_v9, %v3673_v9 }
 0x224   : > { %v5209_v30 = vpop.f32.mrb[48].mxu1  ;;  %v4122_v3 = vadd.f32 %v4121_v55, %v4091_v34  ;;  %v4053_v57 = vadd.f32 %v4052_v5, %v3671_v23  ;;  %v5239_v41 = vadd.f32 %v5161_v62, %v7904_v63  ;;  %v3487_v48 = vpop.f32.mrb[17].mxu0 }
 0x225   : > { %v3923_v26 = vadd.f32 %v5209_v30, %v7939_v16  ;;  %v3914_v11 = vpop.f32.mrb[49].mxu1  ;;  %v5240_v61 = vadd.f32 %v3487_v48, %v7906_v44  ;;  %v5162_v47 = vpop.f32.mrb[18].mxu0 }
 0x226   : > { %v3915_v39 = vadd.f32 %v7939_v16, %v3914_v11  ;;  %v5210_v28 = vpop.f32.mrb[50].mxu1  ;;  %v4054_v52 = vadd.f32 %v4053_v57, %v3672_v29  ;;  %v4123_v8 = vadd.f32 %v4122_v3, %v4092_v43  ;;  %v3676_v63 = vadd.f32 %v5239_v41, %v7950_v2  ;;  %v3490_v51 = vpop.f32.mrb[19].mxu0 }
 0x227   : > { %4027 = vst [vmem:[%s7945_s24 + $0x90] sm:$0xff] %v3923_v26  ;;  %v3926_v46 = vadd.f32 %v5210_v28, %v7939_v16  ;;  %v3917_v7 = vpop.f32.mrb[51].mxu1  ;;  %v5241_v56 = vadd.f32 %v5162_v47, %v7908_v13  ;;  %v3674_v44 = vadd.f32 %v5240_v61, %v7950_v2  ;;  %v5242_v32 = vadd.f32 %v3490_v51, %v7910_v17 }
 0x228   : > { %4025 = vst [vmem:[%s7945_s24 + $0x80] sm:$0xff] %v3915_v39  ;;  %v3918_v18 = vadd.f32 %v7939_v16, %v3917_v7  ;;  %v4124_v15 = vadd.f32 %v4123_v8, %v4093_v59  ;;  %v4055_v14 = vadd.f32 %v4054_v52, %v3673_v9  ;;  %3995 = vst [vmem:[%s7957_s28 + $0x90] sm:$0xff] %v3676_v63 }
 0x229   : > { %4028 = vst [vmem:[%s7945_s24 + $0x98] sm:$0xff] %v3926_v46  ;;  %v3677_v37 = vadd.f32 %v5241_v56, %v7950_v2  ;;  %3993 = vst [vmem:[%s7957_s28 + $0x80] sm:$0xff] %v3674_v44  ;;  %v4095_v13 = vmul.f32 %v3674_v44, %v3674_v44  ;;  %v3675_v0 = vadd.f32 %v5242_v32, %v7950_v2 }
 0x22a   : > { %4026 = vst [vmem:[%s7945_s24 + $0x88] sm:$0xff] %v3918_v18  ;;  %v4056_v33 = vadd.f32 %v4055_v14, %v3674_v44  ;;  %v4125_v54 = vadd.f32 %v4124_v15, %v4094_v4  ;;  %v4097_v12 = vmul.f32 %v3676_v63, %v3676_v63 }
 0x22b   : > { %3996 = vst [vmem:[%s7957_s28 + $0x98] sm:$0xff] %v3677_v37  ;;  %3994 = vst [vmem:[%s7957_s28 + $0x88] sm:$0xff] %v3675_v0  ;;  %v4096_v6 = vmul.f32 %v3675_v0, %v3675_v0  ;;  %v5165_v29 = vpop.f32.mrb[20].mxu0  ;;  %v4098_v30 = vmul.f32 %v3677_v37, %v3677_v37 }
 0x22c   : > { %v5213_v42 = vpop.f32.mrb[52].mxu1  ;;  %v4126_v10 = vadd.f32 %v4125_v54, %v4095_v13  ;;  %v4057_v24 = vadd.f32 %v4056_v33, %v3675_v0  ;;  %v5243_v31 = vadd.f32 %v5165_v29, %v7912_v25  ;;  %v3503_v1 = vpop.f32.mrb[21].mxu0 }
 0x22d   : > { %v3939_v17 = vadd.f32 %v5213_v42, %v7939_v16  ;;  %v3930_v38 = vpop.f32.mrb[53].mxu1  ;;  %v5244_v5 = vadd.f32 %v3503_v1, %v7914_v27  ;;  %v5166_v34 = vpop.f32.mrb[22].mxu0 }
 0x22e   : > { %v3931_v22 = vadd.f32 %v7939_v16, %v3930_v38  ;;  %v5214_v19 = vpop.f32.mrb[54].mxu1  ;;  %v4058_v60 = vadd.f32 %v4057_v24, %v3676_v63  ;;  %v4127_v9 = vadd.f32 %v4126_v10, %v4096_v6  ;;  %v3680_v25 = vadd.f32 %v5243_v31, %v7950_v2  ;;  %v3506_v57 = vpop.f32.mrb[23].mxu0 }
 0x22f   : > { %4031 = vst [vmem:[%s7945_s24 + $0xb0] sm:$0xff] %v3939_v17  ;;  %v3942_v55 = vadd.f32 %v5214_v19, %v7939_v16  ;;  %v3933_v23 = vpop.f32.mrb[55].mxu1  ;;  %v5245_v3 = vadd.f32 %v5166_v34, %v7916_v35  ;;  %v3678_v27 = vadd.f32 %v5244_v5, %v7950_v2  ;;  %v5246_v11 = vadd.f32 %v3506_v57, %v7918_v58 }
 0x230   : > { %4029 = vst [vmem:[%s7945_s24 + $0xa0] sm:$0xff] %v3931_v22  ;;  %v3934_v43 = vadd.f32 %v7939_v16, %v3933_v23  ;;  %v4128_v62 = vadd.f32 %v4127_v9, %v4097_v12  ;;  %v4059_v26 = vadd.f32 %v4058_v60, %v3677_v37  ;;  %3999 = vst [vmem:[%s7957_s28 + $0xb0] sm:$0xff] %v3680_v25 }
 0x231   : > { %4032 = vst [vmem:[%s7945_s24 + $0xb8] sm:$0xff] %v3942_v55  ;;  %v3681_v59 = vadd.f32 %v5245_v3, %v7950_v2  ;;  %3997 = vst [vmem:[%s7957_s28 + $0xa0] sm:$0xff] %v3678_v27  ;;  %v4099_v35 = vmul.f32 %v3678_v27, %v3678_v27  ;;  %v3679_v39 = vadd.f32 %v5246_v11, %v7950_v2 }
 0x232   : > { %4030 = vst [vmem:[%s7945_s24 + $0xa8] sm:$0xff] %v3934_v43  ;;  %v4060_v41 = vadd.f32 %v4059_v26, %v3678_v27  ;;  %v4129_v48 = vadd.f32 %v4128_v62, %v4098_v30  ;;  %v4101_v7 = vmul.f32 %v3680_v25, %v3680_v25 }
 0x233   : > { %4000 = vst [vmem:[%s7957_s28 + $0xb8] sm:$0xff] %v3681_v59  ;;  %3998 = vst [vmem:[%s7957_s28 + $0xa8] sm:$0xff] %v3679_v39  ;;  %v4100_v61 = vmul.f32 %v3679_v39, %v3679_v39  ;;  %v5169_v47 = vpop.f32.mrb[24].mxu0  ;;  %v4102_v33 = vmul.f32 %v3681_v59, %v3681_v59 }
 0x234   : > { %v5217_v28 = vpop.f32.mrb[56].mxu1  ;;  %v4130_v52 = vadd.f32 %v4129_v48, %v4099_v35  ;;  %v4061_v8 = vadd.f32 %v4060_v41, %v3679_v39  ;;  %v5247_v4 = vadd.f32 %v5169_v47, %v7920_v40  ;;  %v3519_v63 = vpop.f32.mrb[25].mxu0 }
 0x235   : > { %v3955_v58 = vadd.f32 %v5217_v28, %v7939_v16  ;;  %v3946_v46 = vpop.f32.mrb[57].mxu1  ;;  %v5248_v44 = vadd.f32 %v3519_v63, %v7922_v45  ;;  %v5170_v14 = vpop.f32.mrb[26].mxu0 }
 0x236   : > { %v3947_v56 = vadd.f32 %v7939_v16, %v3946_v46  ;;  %v5218_v51 = vpop.f32.mrb[58].mxu1  ;;  %v4062_v18 = vadd.f32 %v4061_v8, %v3680_v25  ;;  %v4131_v15 = vadd.f32 %v4130_v52, %v4100_v61  ;;  %v3684_v40 = vadd.f32 %v5247_v4, %v7950_v2  ;;  %v3522_v54 = vpop.f32.mrb[27].mxu0 }
 0x237   : > { %4035 = vst [vmem:[%s7945_s24 + $0xd0] sm:$0xff] %v3955_v58  ;;  %v3958_v32 = vadd.f32 %v5218_v51, %v7939_v16  ;;  %v3949_v37 = vpop.f32.mrb[59].mxu1  ;;  %v5249_v13 = vadd.f32 %v5170_v14, %v7924_v21  ;;  %v3682_v45 = vadd.f32 %v5248_v44, %v7950_v2  ;;  %v5250_v24 = vadd.f32 %v3522_v54, %v7926_v53 }
 0x238   : > { %4033 = vst [vmem:[%s7945_s24 + $0xc0] sm:$0xff] %v3947_v56  ;;  %v3950_v0 = vadd.f32 %v7939_v16, %v3949_v37  ;;  %v4132_v42 = vadd.f32 %v4131_v15, %v4101_v7  ;;  %v4063_v10 = vadd.f32 %v4062_v18, %v3681_v59  ;;  %4003 = vst [vmem:[%s7957_s28 + $0xd0] sm:$0xff] %v3684_v40 }
 0x239   : > { %4036 = vst [vmem:[%s7945_s24 + $0xd8] sm:$0xff] %v3958_v32  ;;  %v3685_v6 = vadd.f32 %v5249_v13, %v7950_v2  ;;  %4001 = vst [vmem:[%s7957_s28 + $0xc0] sm:$0xff] %v3682_v45  ;;  %v4103_v21 = vmul.f32 %v3682_v45, %v3682_v45  ;;  %v3683_v38 = vadd.f32 %v5250_v24, %v7950_v2 }
 0x23a   : > { %4034 = vst [vmem:[%s7945_s24 + $0xc8] sm:$0xff] %v3950_v0  ;;  %v4064_v29 = vadd.f32 %v4063_v10, %v3682_v45  ;;  %v4133_v17 = vadd.f32 %v4132_v42, %v4102_v33  ;;  %v4105_v9 = vmul.f32 %v3684_v40, %v3684_v40 }
 0x23b   : > { %4004 = vst [vmem:[%s7957_s28 + $0xd8] sm:$0xff] %v3685_v6  ;;  %4002 = vst [vmem:[%s7957_s28 + $0xc8] sm:$0xff] %v3683_v38  ;;  %v4104_v22 = vmul.f32 %v3683_v38, %v3683_v38  ;;  %v5173_v19 = vpop.f32.mrb[28].mxu0  ;;  %v4106_v27 = vmul.f32 %v3685_v6, %v3685_v6 }
 0x23c   : > { %v5221_v12 = vpop.f32.mrb[60].mxu1  ;;  %v4134_v31 = vadd.f32 %v4133_v17, %v4103_v21  ;;  %v4065_v1 = vadd.f32 %v4064_v29, %v3683_v38  ;;  %v5251_v5 = vadd.f32 %v5173_v19, %v7928_v50  ;;  %v3535_v34 = vpop.f32.mrb[29].mxu0 }
 0x23d   : > { %v3971_v53 = vadd.f32 %v5221_v12, %v7939_v16  ;;  %v3962_v60 = vpop.f32.mrb[61].mxu1  ;;  %v5252_v3 = vadd.f32 %v3535_v34, %v7930_v36  ;;  %v5174_v57 = vpop.f32.mrb[30].mxu0 }
 0x23e   : > { %v3963_v55 = vadd.f32 %v7939_v16, %v3962_v60  ;;  %v5222_v23 = vpop.f32.mrb[62].mxu1  ;;  %v4066_v30 = vadd.f32 %v4065_v1, %v3684_v40  ;;  %v4135_v25 = vadd.f32 %v4134_v31, %v4104_v22  ;;  %v3688_v50 = vadd.f32 %v5251_v5, %v7950_v2  ;;  %v3538_v11 = vpop.f32.mrb[31].mxu0 }
 0x23f   : > { %4039 = vst [vmem:[%s7945_s24 + $0xf0] sm:$0xff] %v3971_v53  ;;  %v3974_v43 = vadd.f32 %v5222_v23, %v7939_v16  ;;  %v3965_v62 = vpop.f32.mrb[63].mxu1  ;;  %v5253_v26 = vadd.f32 %v5174_v57, %v7932_v49  ;;  %v3686_v41 = vadd.f32 %v5252_v3, %v7950_v2  ;;  %v5254_v48 = vadd.f32 %v3538_v11, %v7934_v20 }
 0x240   : > { %4037 = vst [vmem:[%s7945_s24 + $0xe0] sm:$0xff] %v3963_v55  ;;  %v3966_v59 = vadd.f32 %v7939_v16, %v3965_v62  ;;  %v4136_v36 = vadd.f32 %v4135_v25, %v4105_v9  ;;  %v4067_v35 = vadd.f32 %v4066_v30, %v3685_v6  ;;  %4007 = vst [vmem:[%s7957_s28 + $0xf0] sm:$0xff] %v3688_v50 }
 0x241   : > { %4040 = vst [vmem:[%s7945_s24 + $0xf8] sm:$0xff] %v3974_v43  ;;  %v3689_v39 = vadd.f32 %v5253_v26, %v7950_v2  ;;  %4005 = vst [vmem:[%s7957_s28 + $0xe0] sm:$0xff] %v3686_v41  ;;  %v4107_v49 = vmul.f32 %v3686_v41, %v3686_v41  ;;  %v3687_v8 = vadd.f32 %v5254_v48, %v7950_v2 }
 0x242   : > { %4038 = vst [vmem:[%s7945_s24 + $0xe8] sm:$0xff] %v3966_v59  ;;  %v4068_v28 = vadd.f32 %v4067_v35, %v3686_v41  ;;  %v4137_v52 = vadd.f32 %v4136_v36, %v4106_v27  ;;  %v4109_v58 = vmul.f32 %v3688_v50, %v3688_v50 }
 0x243   : > { %4008 = vst [vmem:[%s7957_s28 + $0xf8] sm:$0xff] %v3689_v39  ;;  %4006 = vst [vmem:[%s7957_s28 + $0xe8] sm:$0xff] %v3687_v8  ;;  %v4108_v47 = vmul.f32 %v3687_v8, %v3687_v8  ;;  %v4110_v7 = vmul.f32 %v3689_v39, %v3689_v39 }
 0x244   : > { %v4138_v16 = vadd.f32 %v4137_v52, %v4107_v49  ;;  %v4069_v61 = vadd.f32 %v4068_v28, %v3687_v8 }
 0x246   : > { %v4070_v46 = vadd.f32 %v4069_v61, %v3688_v50  ;;  %v4139_v20 = vadd.f32 %v4138_v16, %v4108_v47 }
 0x248   : > { %v4071_v4 = vadd.f32 %v4070_v46, %v3689_v39  ;;  %v4140_v63 = vadd.f32 %v4139_v20, %v4109_v58 }
 0x24a   : > { %v4072_v56 = vrot.slane %v4071_v4, 4  ;;  %v4141_v51 = vadd.f32 %v4140_v63, %v4110_v7 }
 0x24c   : > { %v4073_v18 = vadd.f32 %v4072_v56, %v4071_v4  ;;  %v4142_v15 = vrot.slane %v4141_v51, 4 }
 0x24e   : > { %v4074_v44 = vrot.slane %v4073_v18, 2  ;;  %v4143_v14 = vadd.f32 %v4142_v15, %v4141_v51 }
 0x250   : > { %v4075_v2 = vadd.f32 %v4074_v44, %v4073_v18  ;;  %v4144_v32 = vrot.slane %v4143_v14, 2 }
 0x252   : > { %v4076_v37 = vrot.slane %v4075_v2, 1  ;;  %v4145_v33 = vadd.f32 %v4144_v32, %v4143_v14 }
 0x254   : > { %v4077_v40 = vadd.f32 %v4076_v37, %v4075_v2  ;;  %v4146_v13 = vrot.slane %v4145_v33, 1 }
 0x256   : > { %4078 = vst [vmem:[%s355_s13] sm:$0x1] %v4077_v40  ;;  %v4147_v54 = vadd.f32 %v4146_v13, %v4145_v33 }
 0x258   : > { %4148 = vst [vmem:[%s355_s13 + $0x1] sm:$0x1] %v4147_v54 }
 0x259 PF: > { %s20_s30 = sadd.s32 1, %s5619_s30  }
 0x25a   : > { %p17_p4 = scmp.ge.s32.totalorder %s20_s30, 4  }
 0x25c   :  { %19 = sbr.rel (!%p17_p4) target bundleno = 1 (0x1), region = 110 }

</bundles_post_ra>
